<compile_context>
chip_gen: v7x
topology: tpu7x:2x2x1
jax: 0.10.0
libtpu: 0.0.40
codegen_flags: <defaults>
</compile_context>

<pallas_src>
import functools

import jax
import jax.numpy as jnp
from jax import lax
from jax.experimental import pallas as pl
from jax.experimental.pallas import tpu as pltpu


# ----------------------------------------------------------------------------
# Kernel 1: fused Conv3x3 (pad=1, no bias) + GroupNorm(32) + ReLU
#   - input block is UNPADDED; zero padding is built in VMEM (no HBM pad pass)
#   - dx taps folded into the lane/K dim -> 3 dots of (H*W, 3*Cin) x (3*Cin, Cout)
#   - bf16 matmul operands, f32 accumulation and f32 GroupNorm/ReLU
# ----------------------------------------------------------------------------
def conv3x3_gn_relu_kernel(x_ref, w_ref, a_ref, g_ref, b_ref, o_ref, *,
                           H, W, Cin, Cout, eps):
    # x_ref: (1, H, W, Cin) bf16      w_ref: (3, 3*Cin, Cout) bf16 (dy, dx*Cin+c, o)
    # a_ref: (Cout, Cout) f32 group-averaging matrix
    # g_ref/b_ref: (1, Cout) f32 GroupNorm affine
    x = x_ref[0]                                            # (H, W, Cin) bf16

    # Zero-pad (pad=1) in VMEM.
    zrow = jnp.zeros((1, W, Cin), x.dtype)
    xp = jnp.concatenate([zrow, x, zrow], axis=0)           # (H+2, W, Cin)
    zcol = jnp.zeros((H + 2, 1, Cin), x.dtype)
    xp = jnp.concatenate([zcol, xp, zcol], axis=1)          # (H+2, W+2, Cin)

    # Fold the three dx taps into channels once: xcat[h, w, dx*Cin + c] = xp[h, w+dx, c]
    xcat = jnp.concatenate(
        [xp[:, 0:W, :], xp[:, 1:W + 1, :], xp[:, 2:W + 2, :]], axis=-1)  # (H+2, W, 3*Cin)

    acc = jnp.zeros((H * W, Cout), jnp.float32)
    for dy in range(3):
        lhs = xcat[dy:dy + H].reshape(H * W, 3 * Cin)       # bf16, contiguous row slice
        acc = acc + jnp.dot(lhs, w_ref[dy], preferred_element_type=jnp.float32)

    # GroupNorm(32): per-channel stats reduced over H*W, then group-averaged via A.
    mean_c = jnp.mean(acc, axis=0, keepdims=True)           # (1, Cout)
    m2_c = jnp.mean(acc * acc, axis=0, keepdims=True)       # (1, Cout)
    mean_g = jnp.dot(mean_c, a_ref[...], preferred_element_type=jnp.float32)
    m2_g = jnp.dot(m2_c, a_ref[...], preferred_element_type=jnp.float32)
    var_g = jnp.maximum(m2_g - mean_g * mean_g, 0.0)        # biased var, clamped >= 0

    y = (acc - mean_g) * lax.rsqrt(var_g + eps) * g_ref[...] + b_ref[...]
    y = jnp.maximum(y, 0.0)
    o_ref[...] = y.reshape(1, H, W, Cout).astype(o_ref.dtype)


def conv3x3_gn_relu(x, w, gamma, beta, *, groups=32, eps=1e-5):
    # x: (N, H, W, Cin) bf16 NHWC;  w: (3, 3, Cin, Cout) f32
    N, H, W, Cin = x.shape
    Cout = w.shape[-1]
    cg = Cout // groups
    w_r = w.reshape(3, 3 * Cin, Cout).astype(jnp.bfloat16)
    gid = jnp.arange(Cout, dtype=jnp.int32) // cg
    A = (gid[:, None] == gid[None, :]).astype(jnp.float32) * (1.0 / float(cg))

    kern = functools.partial(conv3x3_gn_relu_kernel, H=H, W=W, Cin=Cin,
                             Cout=Cout, eps=eps)
    return pl.pallas_call(
        kern,
        out_shape=jax.ShapeDtypeStruct((N, H, W, Cout), jnp.bfloat16),
        grid=(N,),
        in_specs=[
            pl.BlockSpec((1, H, W, Cin), lambda n: (n, 0, 0, 0)),
            pl.BlockSpec((3, 3 * Cin, Cout), lambda n: (0, 0, 0)),
            pl.BlockSpec((Cout, Cout), lambda n: (0, 0)),
            pl.BlockSpec((1, Cout), lambda n: (0, 0)),
            pl.BlockSpec((1, Cout), lambda n: (0, 0)),
        ],
        out_specs=pl.BlockSpec((1, H, W, Cout), lambda n: (n, 0, 0, 0)),
        compiler_params=pltpu.CompilerParams(dimension_semantics=("parallel",)),
    )(x, w_r, A, gamma, beta)


# ----------------------------------------------------------------------------
# Kernel 2: fused Conv1x1 + bilinear 2x upsample (align_corners=False) + Sigmoid.
# The 1x1 conv is applied BEFORE upsampling (linear ops commute; bias commutes
# because the interp weights sum to 1), so only the small logit tensor is
# interpolated.  Output is written lane-dense as (1, H, 2, W, 2*Cqp):
#   out[0, h, s, w, j] == final[2h+s, 2w + j//Cqp, j%Cqp]
# so the wrapper's reshape to (N, 2H, 2W, Cqp) is a pure row-major bitcast.
# ----------------------------------------------------------------------------
def upsample_conv1x1_sigmoid_kernel(x_ref, w_ref, b_ref, o_ref, *, H, W, C, Cqp):
    # x_ref: (1, H, W, C) bf16   w_ref: (C, Cqp) bf16   b_ref: (1, Cqp) f32
    x = x_ref[0].reshape(H * W, C)
    z = jnp.dot(x, w_ref[...], preferred_element_type=jnp.float32) + b_ref[...]
    z = z.reshape(H, W, Cqp)                                # pre-sigmoid logits, f32

    # Vertical pass (half-pixel bilinear weights 0.25 / 0.75, edge-clamped).
    zu = jnp.concatenate([z[:1], z[:-1]], axis=0)
    zd = jnp.concatenate([z[1:], z[-1:]], axis=0)
    ev = 0.25 * zu + 0.75 * z                               # even output rows
    ov = 0.75 * z + 0.25 * zd                               # odd output rows

    def hfold(y):
        # horizontal pass + sigmoid; fold even/odd output columns into lanes
        yl = jnp.concatenate([y[:, :1], y[:, :-1]], axis=1)
        yr = jnp.concatenate([y[:, 1:], y[:, -1:]], axis=1)
        e = jax.nn.sigmoid(0.25 * yl + 0.75 * y)            # even output cols
        o = jax.nn.sigmoid(0.75 * y + 0.25 * yr)            # odd output cols
        return jnp.concatenate([e, o], axis=-1)             # (H, W, 2*Cqp)

    o_ref[0, :, 0] = hfold(ev)
    o_ref[0, :, 1] = hfold(ov)


def upsample_conv1x1_sigmoid(x, w, b):
    # x: (N, H, W, C) bf16;  w: (C, Cq) f32;  b: (1, Cq) f32
    N, H, W, C = x.shape
    Cq = w.shape[-1]
    Cqp = ((Cq + 63) // 64) * 64                            # lane-dense padded width
    wp = jnp.zeros((C, Cqp), jnp.bfloat16).at[:, :Cq].set(w.astype(jnp.bfloat16))
    bp = jnp.zeros((1, Cqp), jnp.float32).at[:, :Cq].set(b)

    kern = functools.partial(upsample_conv1x1_sigmoid_kernel, H=H, W=W, C=C, Cqp=Cqp)
    folded = pl.pallas_call(
        kern,
        out_shape=jax.ShapeDtypeStruct((N, H, 2, W, 2 * Cqp), jnp.float32),
        grid=(N,),
        in_specs=[
            pl.BlockSpec((1, H, W, C), lambda n: (n, 0, 0, 0)),
            pl.BlockSpec((C, Cqp), lambda n: (0, 0)),
            pl.BlockSpec((1, Cqp), lambda n: (0, 0)),
        ],
        out_specs=pl.BlockSpec((1, H, 2, W, 2 * Cqp), lambda n: (n, 0, 0, 0, 0)),
        compiler_params=pltpu.CompilerParams(dimension_semantics=("parallel",)),
    )(x, wp, bp)
    # Free row-major reshape to (N, 2H, 2W, Cqp), then drop the padded channels.
    return folded.reshape(N, 2 * H, 2 * W, Cqp)[..., :Cq]


# ----------------------------------------------------------------------------
# MaskBranch parameters + forward
# ----------------------------------------------------------------------------
def init_mask_branch_params(key, in_channels, out_channels, kernel_size,
                            num_layers, num_grids):
    assert kernel_size == 3, "kernel implemented for kernel_size=3, padding=1"
    params = {"head": [], "output": []}
    for i in range(num_layers):
        cin = in_channels if i == 0 else out_channels
        key, k1, k2, k3 = jax.random.split(key, 4)
        w = jax.random.normal(k1, (3, 3, cin, out_channels), jnp.float32) * 0.05
        gamma = 1.0 + 0.1 * jax.random.normal(k2, (1, out_channels), jnp.float32)
        beta = 0.1 * jax.random.normal(k3, (1, out_channels), jnp.float32)
        params["head"].append((w, gamma, beta))
    for grid in num_grids:
        key, k1, k2 = jax.random.split(key, 3)
        # Faithful to the reference: the 1x1 conv consumes `in_channels` channels.
        w = jax.random.normal(k1, (in_channels, grid ** 2), jnp.float32) * 0.1
        b = 0.1 * jax.random.normal(k2, (1, grid ** 2), jnp.float32)
        params["output"].append((w, b))
    return params


def mask_branch_forward(x_nchw, params, layer_index):
    x = jnp.transpose(x_nchw, (0, 2, 3, 1)).astype(jnp.bfloat16)   # NCHW -> NHWC, bf16
    assert x.shape[-1] == params["head"][0][0].shape[2]
    for (w, gamma, beta) in params["head"]:
        x = conv3x3_gn_relu(x, w, gamma, beta)
    w1, b1 = params["output"][layer_index]
    # As in the PyTorch module, the 1x1 conv expects head out_channels == in_channels.
    assert x.shape[-1] == w1.shape[0], "head out_channels must equal in_channels"
    y = upsample_conv1x1_sigmoid(x, w1, b1)
    return jnp.transpose(y, (0, 3, 1, 2))                          # NHWC -> NCHW


# ----------------------------------------------------------------------------
# Pure-JAX reference (spec op order: head -> interpolate -> 1x1 conv -> sigmoid),
# using the same mixed-precision policy (bf16 matmul operands, f32 accumulate,
# bf16 activation storage) so the comparison isolates kernel correctness.
# ----------------------------------------------------------------------------
def _ref_upsample2x(x):
    xu = jnp.concatenate([x[:, :1], x[:, :-1]], axis=1)
    xd = jnp.concatenate([x[:, 1:], x[:, -1:]], axis=1)
    ev, ov = 0.25 * xu + 0.75 * x, 0.75 * x + 0.25 * xd
    x = jnp.stack([ev, ov], axis=2).reshape(x.shape[0], 2 * x.shape[1],
                                            x.shape[2], x.shape[3])
    xl = jnp.concatenate([x[:, :, :1], x[:, :, :-1]], axis=2)
    xr = jnp.concatenate([x[:, :, 1:], x[:, :, -1:]], axis=2)
    ev, ov = 0.25 * xl + 0.75 * x, 0.75 * x + 0.25 * xr
    x = jnp.stack([ev, ov], axis=3).reshape(x.shape[0], x.shape[1],
                                            2 * x.shape[2], x.shape[3])
    return x


def ref_forward(x_nchw, params, layer_index, groups=32, eps=1e-5):
    x = jnp.transpose(x_nchw, (0, 2, 3, 1)).astype(jnp.bfloat16)
    for (w, gamma, beta) in params["head"]:
        y = lax.conv_general_dilated(
            x, w.astype(jnp.bfloat16), (1, 1), ((1, 1), (1, 1)),
            dimension_numbers=("NHWC", "HWIO", "NHWC"),
            preferred_element_type=jnp.float32)
        N, H, W, C = y.shape
        yg = y.reshape(N, H, W, groups, C // groups)
        mean = yg.mean(axis=(1, 2, 4), keepdims=True)
        var = ((yg - mean) ** 2).mean(axis=(1, 2, 4), keepdims=True)
        yg = (yg - mean) * lax.rsqrt(var + eps)
        y = yg.reshape(N, H, W, C) * gamma + beta
        x = jnp.maximum(y, 0.0).astype(jnp.bfloat16)           # bf16 "storage"
    u = _ref_upsample2x(x.astype(jnp.float32))
    w1, b1 = params["output"][layer_index]
    logits = jnp.einsum("nhwc,cq->nhwq", u.astype(jnp.bfloat16),
                        w1.astype(jnp.bfloat16),
                        preferred_element_type=jnp.float32) + b1
    return jnp.transpose(jax.nn.sigmoid(logits), (0, 3, 1, 2))


# ----------------------------------------------------------------------------
if __name__ == "__main__":
    # Module config (GroupNorm(32, C) forces C to be a multiple of 32).
    N, H, W = 2, 16, 16
    in_channels = 64
    out_channels = 64          # must equal in_channels for the 1x1 output conv
    kernel_size, padding = 3, 1
    num_layers = 2
    num_grids = (4, 6)
    layer_index = 1

    key = jax.random.PRNGKey(0)
    key, kx = jax.random.split(key)
    x = jax.random.normal(kx, (N, in_channels, H, W), jnp.float32)   # NCHW input

    params = init_mask_branch_params(key, in_channels, out_channels,
                                     kernel_size, num_layers, num_grids)

    fwd = jax.jit(functools.partial(mask_branch_forward, layer_index=layer_index))
    out = jax.block_until_ready(fwd(x, params))

    expected_shape = (N, num_grids[layer_index] ** 2, 2 * H, 2 * W)
    assert out.shape == expected_shape, (out.shape, expected_shape)

    ref = jax.block_until_ready(ref_forward(x, params, layer_index))
    max_err = float(jnp.max(jnp.abs(out - ref)))
    assert jnp.allclose(out, ref, atol=5e-3, rtol=5e-3), max_err

    print("KERNEL_OK")
</pallas_src>

<mosaic_0001>
module attributes {stable_mosaic.version = 11 : i64} {
  func.func @upsample_conv1x1_sigmoid_kernel(%arg0: i32, %arg1: memref<1x16x16x64xbf16, #tpu.memory_space<vmem>>, %arg2: memref<64x64xbf16, #tpu.memory_space<vmem>>, %arg3: memref<1x64xf32, #tpu.memory_space<vmem>>, %arg4: memref<1x16x2x16x128xf32, #tpu.memory_space<vmem>>) attributes {dimension_semantics = [#tpu.dimension_semantics<parallel>], iteration_bounds = array<i64: 2>, scalar_prefetch = 0 : i64, scratch_operands = 0 : i64, tpu.core_type = #tpu.core_type<tc>, window_params = [{transform_indices = @transform_0, window_bounds = array<i64: 1, 16, 16, 64>}, {pipeline_mode = #tpu.pipeline_mode<synchronous>, transform_indices = @transform_1, window_bounds = array<i64: 64, 64>}, {pipeline_mode = #tpu.pipeline_mode<synchronous>, transform_indices = @transform_2, window_bounds = array<i64: 1, 64>}, {transform_indices = @transform_3, window_bounds = array<i64: 1, 16, 2, 16, 128>}]} {
    %c0 = arith.constant 0 : index
    %c0_0 = arith.constant 0 : index
    %c0_1 = arith.constant 0 : index
    %c0_2 = arith.constant 0 : index
    %0 = vector.load %arg1[%c0, %c0_0, %c0_1, %c0_2] : memref<1x16x16x64xbf16, #tpu.memory_space<vmem>>, vector<1x16x16x64xbf16>
    %1 = vector.shape_cast %0 : vector<1x16x16x64xbf16> to vector<16x16x64xbf16>
    %2 = vector.shape_cast %1 : vector<16x16x64xbf16> to vector<256x64xbf16>
    %c0_3 = arith.constant 0 : index
    %c0_4 = arith.constant 0 : index
    %3 = vector.load %arg2[%c0_3, %c0_4] : memref<64x64xbf16, #tpu.memory_space<vmem>>, vector<64x64xbf16>
    %cst = arith.constant dense<0.000000e+00> : vector<256x64xf32>
    %4 = tpu.matmul %2, %3, %cst {dimension_numbers = #tpu.dot_dimension_numbers<[1], [0], [0], [1], [0, 0, 1, 1], [], []>} : vector<256x64xbf16>, vector<64x64xbf16>, vector<256x64xf32> -> vector<256x64xf32>
    %c0_5 = arith.constant 0 : index
    %c0_6 = arith.constant 0 : index
    %5 = vector.load %arg3[%c0_5, %c0_6] : memref<1x64xf32, #tpu.memory_space<vmem>>, vector<1x64xf32>
    %6 = vector.broadcast %5 : vector<1x64xf32> to vector<256x64xf32>
    %7 = arith.addf %4, %6 : vector<256x64xf32>
    %8 = vector.shape_cast %7 : vector<256x64xf32> to vector<16x16x64xf32>
    %9 = vector.extract_strided_slice %8 {offsets = [0, 0, 0], sizes = [1, 16, 64], strides = [1, 1, 1]} : vector<16x16x64xf32> to vector<1x16x64xf32>
    %10 = vector.extract_strided_slice %8 {offsets = [0, 0, 0], sizes = [15, 16, 64], strides = [1, 1, 1]} : vector<16x16x64xf32> to vector<15x16x64xf32>
    %11 = tpu.concatenate %9, %10 in 0 : vector<1x16x64xf32>, vector<15x16x64xf32> -> vector<16x16x64xf32>
    %12 = vector.extract_strided_slice %8 {offsets = [1, 0, 0], sizes = [15, 16, 64], strides = [1, 1, 1]} : vector<16x16x64xf32> to vector<15x16x64xf32>
    %13 = vector.extract_strided_slice %8 {offsets = [15, 0, 0], sizes = [1, 16, 64], strides = [1, 1, 1]} : vector<16x16x64xf32> to vector<1x16x64xf32>
    %14 = tpu.concatenate %12, %13 in 0 : vector<15x16x64xf32>, vector<1x16x64xf32> -> vector<16x16x64xf32>
    %cst_7 = arith.constant 2.500000e-01 : f32
    %15 = vector.broadcast %cst_7 : f32 to vector<16x16x64xf32>
    %16 = arith.mulf %15, %11 : vector<16x16x64xf32>
    %cst_8 = arith.constant 7.500000e-01 : f32
    %17 = vector.broadcast %cst_8 : f32 to vector<16x16x64xf32>
    %18 = arith.mulf %17, %8 : vector<16x16x64xf32>
    %19 = arith.addf %16, %18 : vector<16x16x64xf32>
    %cst_9 = arith.constant 7.500000e-01 : f32
    %20 = vector.broadcast %cst_9 : f32 to vector<16x16x64xf32>
    %21 = arith.mulf %20, %8 : vector<16x16x64xf32>
    %cst_10 = arith.constant 2.500000e-01 : f32
    %22 = vector.broadcast %cst_10 : f32 to vector<16x16x64xf32>
    %23 = arith.mulf %22, %14 : vector<16x16x64xf32>
    %24 = arith.addf %21, %23 : vector<16x16x64xf32>
    %25 = vector.extract_strided_slice %19 {offsets = [0, 0, 0], sizes = [16, 1, 64], strides = [1, 1, 1]} : vector<16x16x64xf32> to vector<16x1x64xf32>
    %26 = vector.extract_strided_slice %19 {offsets = [0, 0, 0], sizes = [16, 15, 64], strides = [1, 1, 1]} : vector<16x16x64xf32> to vector<16x15x64xf32>
    %27 = tpu.concatenate %25, %26 in 1 : vector<16x1x64xf32>, vector<16x15x64xf32> -> vector<16x16x64xf32>
    %28 = vector.extract_strided_slice %19 {offsets = [0, 1, 0], sizes = [16, 15, 64], strides = [1, 1, 1]} : vector<16x16x64xf32> to vector<16x15x64xf32>
    %29 = vector.extract_strided_slice %19 {offsets = [0, 15, 0], sizes = [16, 1, 64], strides = [1, 1, 1]} : vector<16x16x64xf32> to vector<16x1x64xf32>
    %30 = tpu.concatenate %28, %29 in 1 : vector<16x15x64xf32>, vector<16x1x64xf32> -> vector<16x16x64xf32>
    %cst_11 = arith.constant 2.500000e-01 : f32
    %31 = vector.broadcast %cst_11 : f32 to vector<16x16x64xf32>
    %32 = arith.mulf %31, %27 : vector<16x16x64xf32>
    %cst_12 = arith.constant 7.500000e-01 : f32
    %33 = vector.broadcast %cst_12 : f32 to vector<16x16x64xf32>
    %34 = arith.mulf %33, %19 : vector<16x16x64xf32>
    %35 = arith.addf %32, %34 : vector<16x16x64xf32>
    %36 = arith.negf %35 : vector<16x16x64xf32>
    %37 = math.exp %36 : vector<16x16x64xf32>
    %cst_13 = arith.constant 1.000000e+00 : f32
    %38 = vector.broadcast %cst_13 : f32 to vector<16x16x64xf32>
    %39 = arith.addf %38, %37 : vector<16x16x64xf32>
    %40 = arith.divf %38, %39 : vector<16x16x64xf32>
    %cst_14 = arith.constant 7.500000e-01 : f32
    %41 = vector.broadcast %cst_14 : f32 to vector<16x16x64xf32>
    %42 = arith.mulf %41, %19 : vector<16x16x64xf32>
    %cst_15 = arith.constant 2.500000e-01 : f32
    %43 = vector.broadcast %cst_15 : f32 to vector<16x16x64xf32>
    %44 = arith.mulf %43, %30 : vector<16x16x64xf32>
    %45 = arith.addf %42, %44 : vector<16x16x64xf32>
    %46 = arith.negf %45 : vector<16x16x64xf32>
    %47 = math.exp %46 : vector<16x16x64xf32>
    %cst_16 = arith.constant 1.000000e+00 : f32
    %48 = vector.broadcast %cst_16 : f32 to vector<16x16x64xf32>
    %49 = arith.addf %48, %47 : vector<16x16x64xf32>
    %50 = arith.divf %48, %49 : vector<16x16x64xf32>
    %51 = tpu.concatenate %40, %50 in 2 : vector<16x16x64xf32>, vector<16x16x64xf32> -> vector<16x16x128xf32>
    %c0_17 = arith.constant 0 : index
    %c0_18 = arith.constant 0 : index
    %c0_19 = arith.constant 0 : index
    %c0_20 = arith.constant 0 : index
    %c0_21 = arith.constant 0 : index
    %52 = vector.load %arg4[%c0_17, %c0_18, %c0_19, %c0_20, %c0_21] : memref<1x16x2x16x128xf32, #tpu.memory_space<vmem>>, vector<1x16x1x16x128xf32>
    %53 = vector.shape_cast %52 : vector<1x16x1x16x128xf32> to vector<16x16x128xf32>
    %54 = vector.shape_cast %51 : vector<16x16x128xf32> to vector<1x16x1x16x128xf32>
    tpu.vector_store %arg4[%c0_17, %c0_18, %c0_19, %c0_20, %c0_21], %54 {strides = array<i32>} : memref<1x16x2x16x128xf32, #tpu.memory_space<vmem>>, vector<1x16x1x16x128xf32>,
    %55 = vector.extract_strided_slice %24 {offsets = [0, 0, 0], sizes = [16, 1, 64], strides = [1, 1, 1]} : vector<16x16x64xf32> to vector<16x1x64xf32>
    %56 = vector.extract_strided_slice %24 {offsets = [0, 0, 0], sizes = [16, 15, 64], strides = [1, 1, 1]} : vector<16x16x64xf32> to vector<16x15x64xf32>
    %57 = tpu.concatenate %55, %56 in 1 : vector<16x1x64xf32>, vector<16x15x64xf32> -> vector<16x16x64xf32>
    %58 = vector.extract_strided_slice %24 {offsets = [0, 1, 0], sizes = [16, 15, 64], strides = [1, 1, 1]} : vector<16x16x64xf32> to vector<16x15x64xf32>
    %59 = vector.extract_strided_slice %24 {offsets = [0, 15, 0], sizes = [16, 1, 64], strides = [1, 1, 1]} : vector<16x16x64xf32> to vector<16x1x64xf32>
    %60 = tpu.concatenate %58, %59 in 1 : vector<16x15x64xf32>, vector<16x1x64xf32> -> vector<16x16x64xf32>
    %cst_22 = arith.constant 2.500000e-01 : f32
    %61 = vector.broadcast %cst_22 : f32 to vector<16x16x64xf32>
    %62 = arith.mulf %61, %57 : vector<16x16x64xf32>
    %cst_23 = arith.constant 7.500000e-01 : f32
    %63 = vector.broadcast %cst_23 : f32 to vector<16x16x64xf32>
    %64 = arith.mulf %63, %24 : vector<16x16x64xf32>
    %65 = arith.addf %62, %64 : vector<16x16x64xf32>
    %66 = arith.negf %65 : vector<16x16x64xf32>
    %67 = math.exp %66 : vector<16x16x64xf32>
    %cst_24 = arith.constant 1.000000e+00 : f32
    %68 = vector.broadcast %cst_24 : f32 to vector<16x16x64xf32>
    %69 = arith.addf %68, %67 : vector<16x16x64xf32>
    %70 = arith.divf %68, %69 : vector<16x16x64xf32>
    %cst_25 = arith.constant 7.500000e-01 : f32
    %71 = vector.broadcast %cst_25 : f32 to vector<16x16x64xf32>
    %72 = arith.mulf %71, %24 : vector<16x16x64xf32>
    %cst_26 = arith.constant 2.500000e-01 : f32
    %73 = vector.broadcast %cst_26 : f32 to vector<16x16x64xf32>
    %74 = arith.mulf %73, %60 : vector<16x16x64xf32>
    %75 = arith.addf %72, %74 : vector<16x16x64xf32>
    %76 = arith.negf %75 : vector<16x16x64xf32>
    %77 = math.exp %76 : vector<16x16x64xf32>
    %cst_27 = arith.constant 1.000000e+00 : f32
    %78 = vector.broadcast %cst_27 : f32 to vector<16x16x64xf32>
    %79 = arith.addf %78, %77 : vector<16x16x64xf32>
    %80 = arith.divf %78, %79 : vector<16x16x64xf32>
    %81 = tpu.concatenate %70, %80 in 2 : vector<16x16x64xf32>, vector<16x16x64xf32> -> vector<16x16x128xf32>
    %c0_28 = arith.constant 0 : index
    %c0_29 = arith.constant 0 : index
    %c1 = arith.constant 1 : index
    %c0_30 = arith.constant 0 : index
    %c0_31 = arith.constant 0 : index
    %82 = vector.load %arg4[%c0_28, %c0_29, %c1, %c0_30, %c0_31] : memref<1x16x2x16x128xf32, #tpu.memory_space<vmem>>, vector<1x16x1x16x128xf32>
    %83 = vector.shape_cast %82 : vector<1x16x1x16x128xf32> to vector<16x16x128xf32>
    %84 = vector.shape_cast %81 : vector<16x16x128xf32> to vector<1x16x1x16x128xf32>
    tpu.vector_store %arg4[%c0_28, %c0_29, %c1, %c0_30, %c0_31], %84 {strides = array<i32>} : memref<1x16x2x16x128xf32, #tpu.memory_space<vmem>>, vector<1x16x1x16x128xf32>,
    return
  }
  func.func @transform_0(%arg0: i32) -> (i32, i32, i32, i32) {
    %c0_i32 = arith.constant 0 : i32
    %c0_i32_0 = arith.constant 0 : i32
    %c0_i32_1 = arith.constant 0 : i32
    %c0_i32_2 = arith.constant 0 : i32
    return %arg0, %c0_i32, %c0_i32_0, %c0_i32_1 : i32, i32, i32, i32
  }
  func.func @transform_1(%arg0: i32) -> (i32, i32) {
    %c0_i32 = arith.constant 0 : i32
    %c0_i32_0 = arith.constant 0 : i32
    %c0_i32_1 = arith.constant 0 : i32
    return %c0_i32, %c0_i32_0 : i32, i32
  }
  func.func @transform_2(%arg0: i32) -> (i32, i32) {
    %c0_i32 = arith.constant 0 : i32
    %c0_i32_0 = arith.constant 0 : i32
    %c0_i32_1 = arith.constant 0 : i32
    return %c0_i32, %c0_i32_0 : i32, i32
  }
  func.func @transform_3(%arg0: i32) -> (i32, i32, i32, i32, i32) {
    %c0_i32 = arith.constant 0 : i32
    %c0_i32_0 = arith.constant 0 : i32
    %c0_i32_1 = arith.constant 0 : i32
    %c0_i32_2 = arith.constant 0 : i32
    %c0_i32_3 = arith.constant 0 : i32
    return %arg0, %c0_i32, %c0_i32_0, %c0_i32_1, %c0_i32_2 : i32, i32, i32, i32, i32
  }
}

module attributes {stable_mosaic.version = 11 : i64} {
  func.func @conv3x3_gn_relu_kernel(%arg0: i32, %arg1: memref<1x16x16x64xbf16, #tpu.memory_space<vmem>>, %arg2: memref<3x192x64xbf16, #tpu.memory_space<vmem>>, %arg3: memref<64x64xf32, #tpu.memory_space<vmem>>, %arg4: memref<1x64xf32, #tpu.memory_space<vmem>>, %arg5: memref<1x64xf32, #tpu.memory_space<vmem>>, %arg6: memref<1x16x16x64xbf16, #tpu.memory_space<vmem>>) attributes {dimension_semantics = [#tpu.dimension_semantics<parallel>], iteration_bounds = array<i64: 2>, scalar_prefetch = 0 : i64, scratch_operands = 0 : i64, tpu.core_type = #tpu.core_type<tc>, window_params = [{transform_indices = @transform_0, window_bounds = array<i64: 1, 16, 16, 64>}, {pipeline_mode = #tpu.pipeline_mode<synchronous>, transform_indices = @transform_1, window_bounds = array<i64: 3, 192, 64>}, {pipeline_mode = #tpu.pipeline_mode<synchronous>, transform_indices = @transform_2, window_bounds = array<i64: 64, 64>}, {pipeline_mode = #tpu.pipeline_mode<synchronous>, transform_indices = @transform_3, window_bounds = array<i64: 1, 64>}, {pipeline_mode = #tpu.pipeline_mode<synchronous>, transform_indices = @transform_4, window_bounds = array<i64: 1, 64>}, {transform_indices = @transform_5, window_bounds = array<i64: 1, 16, 16, 64>}]} {
    %c0 = arith.constant 0 : index
    %c0_0 = arith.constant 0 : index
    %c0_1 = arith.constant 0 : index
    %c0_2 = arith.constant 0 : index
    %0 = vector.load %arg1[%c0, %c0_0, %c0_1, %c0_2] : memref<1x16x16x64xbf16, #tpu.memory_space<vmem>>, vector<1x16x16x64xbf16>
    %1 = vector.shape_cast %0 : vector<1x16x16x64xbf16> to vector<16x16x64xbf16>
    %cst = arith.constant 0.000000e+00 : bf16
    %2 = vector.broadcast %cst : bf16 to vector<1x16x64xbf16>
    %3 = tpu.concatenate %2, %1, %2 in 0 : vector<1x16x64xbf16>, vector<16x16x64xbf16>, vector<1x16x64xbf16> -> vector<18x16x64xbf16>
    %cst_3 = arith.constant 0.000000e+00 : bf16
    %4 = vector.broadcast %cst_3 : bf16 to vector<18x1x64xbf16>
    %5 = tpu.concatenate %4, %3, %4 in 1 : vector<18x1x64xbf16>, vector<18x16x64xbf16>, vector<18x1x64xbf16> -> vector<18x18x64xbf16>
    %6 = vector.extract_strided_slice %5 {offsets = [0, 0, 0], sizes = [18, 16, 64], strides = [1, 1, 1]} : vector<18x18x64xbf16> to vector<18x16x64xbf16>
    %7 = vector.extract_strided_slice %5 {offsets = [0, 1, 0], sizes = [18, 16, 64], strides = [1, 1, 1]} : vector<18x18x64xbf16> to vector<18x16x64xbf16>
    %8 = vector.extract_strided_slice %5 {offsets = [0, 2, 0], sizes = [18, 16, 64], strides = [1, 1, 1]} : vector<18x18x64xbf16> to vector<18x16x64xbf16>
    %9 = tpu.concatenate %6, %7, %8 in 2 : vector<18x16x64xbf16>, vector<18x16x64xbf16>, vector<18x16x64xbf16> -> vector<18x16x192xbf16>
    %cst_4 = arith.constant 0.000000e+00 : f32
    %10 = vector.broadcast %cst_4 : f32 to vector<256x64xf32>
    %11 = vector.extract_strided_slice %9 {offsets = [0, 0, 0], sizes = [16, 16, 192], strides = [1, 1, 1]} : vector<18x16x192xbf16> to vector<16x16x192xbf16>
    %12 = vector.shape_cast %11 : vector<16x16x192xbf16> to vector<256x192xbf16>
    %c0_5 = arith.constant 0 : index
    %c0_6 = arith.constant 0 : index
    %c0_7 = arith.constant 0 : index
    %13 = vector.load %arg2[%c0_5, %c0_6, %c0_7] : memref<3x192x64xbf16, #tpu.memory_space<vmem>>, vector<1x192x64xbf16>
    %14 = vector.shape_cast %13 : vector<1x192x64xbf16> to vector<192x64xbf16>
    %cst_8 = arith.constant dense<0.000000e+00> : vector<256x64xf32>
    %15 = tpu.matmul %12, %14, %cst_8 {dimension_numbers = #tpu.dot_dimension_numbers<[1], [0], [0], [1], [0, 0, 1, 1], [], []>} : vector<256x192xbf16>, vector<192x64xbf16>, vector<256x64xf32> -> vector<256x64xf32>
    %16 = arith.addf %10, %15 : vector<256x64xf32>
    %17 = vector.extract_strided_slice %9 {offsets = [1, 0, 0], sizes = [16, 16, 192], strides = [1, 1, 1]} : vector<18x16x192xbf16> to vector<16x16x192xbf16>
    %18 = vector.shape_cast %17 : vector<16x16x192xbf16> to vector<256x192xbf16>
    %c1 = arith.constant 1 : index
    %c0_9 = arith.constant 0 : index
    %c0_10 = arith.constant 0 : index
    %19 = vector.load %arg2[%c1, %c0_9, %c0_10] : memref<3x192x64xbf16, #tpu.memory_space<vmem>>, vector<1x192x64xbf16>
    %20 = vector.shape_cast %19 : vector<1x192x64xbf16> to vector<192x64xbf16>
    %cst_11 = arith.constant dense<0.000000e+00> : vector<256x64xf32>
    %21 = tpu.matmul %18, %20, %cst_11 {dimension_numbers = #tpu.dot_dimension_numbers<[1], [0], [0], [1], [0, 0, 1, 1], [], []>} : vector<256x192xbf16>, vector<192x64xbf16>, vector<256x64xf32> -> vector<256x64xf32>
    %22 = arith.addf %16, %21 : vector<256x64xf32>
    %23 = vector.extract_strided_slice %9 {offsets = [2, 0, 0], sizes = [16, 16, 192], strides = [1, 1, 1]} : vector<18x16x192xbf16> to vector<16x16x192xbf16>
    %24 = vector.shape_cast %23 : vector<16x16x192xbf16> to vector<256x192xbf16>
    %c2 = arith.constant 2 : index
    %c0_12 = arith.constant 0 : index
    %c0_13 = arith.constant 0 : index
    %25 = vector.load %arg2[%c2, %c0_12, %c0_13] : memref<3x192x64xbf16, #tpu.memory_space<vmem>>, vector<1x192x64xbf16>
    %26 = vector.shape_cast %25 : vector<1x192x64xbf16> to vector<192x64xbf16>
    %cst_14 = arith.constant dense<0.000000e+00> : vector<256x64xf32>
    %27 = tpu.matmul %24, %26, %cst_14 {dimension_numbers = #tpu.dot_dimension_numbers<[1], [0], [0], [1], [0, 0, 1, 1], [], []>} : vector<256x192xbf16>, vector<192x64xbf16>, vector<256x64xf32> -> vector<256x64xf32>
    %28 = arith.addf %22, %27 : vector<256x64xf32>
    %cst_15 = arith.constant dense<0.000000e+00> : vector<64xf32>
    %29 = vector.multi_reduction <add>, %28, %cst_15 [0] : vector<256x64xf32> to vector<64xf32>
    %30 = vector.shape_cast %29 : vector<64xf32> to vector<1x64xf32>
    %cst_16 = arith.constant 2.560000e+02 : f32
    %31 = vector.broadcast %cst_16 : f32 to vector<1x64xf32>
    %32 = arith.divf %30, %31 : vector<1x64xf32>
    %33 = arith.mulf %28, %28 : vector<256x64xf32>
    %cst_17 = arith.constant dense<0.000000e+00> : vector<64xf32>
    %34 = vector.multi_reduction <add>, %33, %cst_17 [0] : vector<256x64xf32> to vector<64xf32>
    %35 = vector.shape_cast %34 : vector<64xf32> to vector<1x64xf32>
    %cst_18 = arith.constant 2.560000e+02 : f32
    %36 = vector.broadcast %cst_18 : f32 to vector<1x64xf32>
    %37 = arith.divf %35, %36 : vector<1x64xf32>
    %c0_19 = arith.constant 0 : index
    %c0_20 = arith.constant 0 : index
    %38 = vector.load %arg3[%c0_19, %c0_20] : memref<64x64xf32, #tpu.memory_space<vmem>>, vector<64x64xf32>
    %cst_21 = arith.constant dense<0.000000e+00> : vector<1x64xf32>
    %39 = tpu.matmul %32, %38, %cst_21 {dimension_numbers = #tpu.dot_dimension_numbers<[1], [0], [0], [1], [0, 0, 1, 1], [], []>} : vector<1x64xf32>, vector<64x64xf32>, vector<1x64xf32> -> vector<1x64xf32>
    %c0_22 = arith.constant 0 : index
    %c0_23 = arith.constant 0 : index
    %40 = vector.load %arg3[%c0_22, %c0_23] : memref<64x64xf32, #tpu.memory_space<vmem>>, vector<64x64xf32>
    %cst_24 = arith.constant dense<0.000000e+00> : vector<1x64xf32>
    %41 = tpu.matmul %37, %40, %cst_24 {dimension_numbers = #tpu.dot_dimension_numbers<[1], [0], [0], [1], [0, 0, 1, 1], [], []>} : vector<1x64xf32>, vector<64x64xf32>, vector<1x64xf32> -> vector<1x64xf32>
    %42 = arith.mulf %39, %39 : vector<1x64xf32>
    %43 = arith.subf %41, %42 : vector<1x64xf32>
    %cst_25 = arith.constant 0.000000e+00 : f32
    %44 = vector.broadcast %cst_25 : f32 to vector<1x64xf32>
    %45 = arith.maximumf %43, %44 : vector<1x64xf32>
    %46 = vector.broadcast %39 : vector<1x64xf32> to vector<256x64xf32>
    %47 = arith.subf %28, %46 : vector<256x64xf32>
    %cst_26 = arith.constant 9.99999974E-6 : f32
    %48 = vector.broadcast %cst_26 : f32 to vector<1x64xf32>
    %49 = arith.addf %45, %48 : vector<1x64xf32>
    %50 = math.rsqrt %49 : vector<1x64xf32>
    %51 = vector.broadcast %50 : vector<1x64xf32> to vector<256x64xf32>
    %52 = arith.mulf %47, %51 : vector<256x64xf32>
    %c0_27 = arith.constant 0 : index
    %c0_28 = arith.constant 0 : index
    %53 = vector.load %arg4[%c0_27, %c0_28] : memref<1x64xf32, #tpu.memory_space<vmem>>, vector<1x64xf32>
    %54 = vector.broadcast %53 : vector<1x64xf32> to vector<256x64xf32>
    %55 = arith.mulf %52, %54 : vector<256x64xf32>
    %c0_29 = arith.constant 0 : index
    %c0_30 = arith.constant 0 : index
    %56 = vector.load %arg5[%c0_29, %c0_30] : memref<1x64xf32, #tpu.memory_space<vmem>>, vector<1x64xf32>
    %57 = vector.broadcast %56 : vector<1x64xf32> to vector<256x64xf32>
    %58 = arith.addf %55, %57 : vector<256x64xf32>
    %cst_31 = arith.constant 0.000000e+00 : f32
    %59 = vector.broadcast %cst_31 : f32 to vector<256x64xf32>
    %60 = arith.maximumf %58, %59 : vector<256x64xf32>
    %61 = vector.shape_cast %60 : vector<256x64xf32> to vector<1x16x16x64xf32>
    %62 = arith.truncf %61 : vector<1x16x16x64xf32> to vector<1x16x16x64xbf16>
    %c0_32 = arith.constant 0 : index
    %c0_33 = arith.constant 0 : index
    %c0_34 = arith.constant 0 : index
    %c0_35 = arith.constant 0 : index
    %63 = vector.load %arg6[%c0_32, %c0_33, %c0_34, %c0_35] : memref<1x16x16x64xbf16, #tpu.memory_space<vmem>>, vector<1x16x16x64xbf16>
    tpu.vector_store %arg6[%c0_32, %c0_33, %c0_34, %c0_35], %62 {strides = array<i32>} : memref<1x16x16x64xbf16, #tpu.memory_space<vmem>>, vector<1x16x16x64xbf16>,
    return
  }
  func.func @transform_0(%arg0: i32) -> (i32, i32, i32, i32) {
    %c0_i32 = arith.constant 0 : i32
    %c0_i32_0 = arith.constant 0 : i32
    %c0_i32_1 = arith.constant 0 : i32
    %c0_i32_2 = arith.constant 0 : i32
    return %arg0, %c0_i32, %c0_i32_0, %c0_i32_1 : i32, i32, i32, i32
  }
  func.func @transform_1(%arg0: i32) -> (i32, i32, i32) {
    %c0_i32 = arith.constant 0 : i32
    %c0_i32_0 = arith.constant 0 : i32
    %c0_i32_1 = arith.constant 0 : i32
    %c0_i32_2 = arith.constant 0 : i32
    return %c0_i32, %c0_i32_0, %c0_i32_1 : i32, i32, i32
  }
  func.func @transform_2(%arg0: i32) -> (i32, i32) {
    %c0_i32 = arith.constant 0 : i32
    %c0_i32_0 = arith.constant 0 : i32
    %c0_i32_1 = arith.constant 0 : i32
    return %c0_i32, %c0_i32_0 : i32, i32
  }
  func.func @transform_3(%arg0: i32) -> (i32, i32) {
    %c0_i32 = arith.constant 0 : i32
    %c0_i32_0 = arith.constant 0 : i32
    %c0_i32_1 = arith.constant 0 : i32
    return %c0_i32, %c0_i32_0 : i32, i32
  }
  func.func @transform_4(%arg0: i32) -> (i32, i32) {
    %c0_i32 = arith.constant 0 : i32
    %c0_i32_0 = arith.constant 0 : i32
    %c0_i32_1 = arith.constant 0 : i32
    return %c0_i32, %c0_i32_0 : i32, i32
  }
  func.func @transform_5(%arg0: i32) -> (i32, i32, i32, i32) {
    %c0_i32 = arith.constant 0 : i32
    %c0_i32_0 = arith.constant 0 : i32
    %c0_i32_1 = arith.constant 0 : i32
    %c0_i32_2 = arith.constant 0 : i32
    return %arg0, %c0_i32, %c0_i32_0, %c0_i32_1 : i32, i32, i32, i32
  }
}

</mosaic_0001>

<bundles_post_ra>
// kernel: mask_branch_forward.3
= control target key start
LH: loop header
LB: loop body
LE: loop exit
PB: predicated region body
PF: predicated region fallthrough
CT: control target
= control target key end

     0   :  { %s3030_s18 = smov 0   ;;  %s4340_s0 = inlined_call_operand.vmem [shape: bf16[2,16,16,64], index: 0, kind: input, shape index: {}]   ;;  %s4341_s1 = inlined_call_operand.vmem [shape: bf16[3,192,64], index: 1, kind: input, shape index: {}]   ;;  %s4342_s2 = inlined_call_operand.vmem [shape: f32[64,64], index: 2, kind: input, shape index: {}]   ;;  %s4343_s3 = inlined_call_operand.vmem [shape: f32[1,64], index: 3, kind: input, shape index: {}]   ;;  %s4344_s4 = inlined_call_operand.vmem [shape: f32[1,64], index: 4, kind: input, shape index: {}]   ;;  %s4345_s5 = inlined_call_operand.vmem [shape: bf16[2,16,16,64], index: 5, kind: output, shape index: {}]  }
   0x1 LB: > { %s2491_s19 = sadd.s32 4294967295, %s2993_s18   ;;  %p2495_p0 = scmp.ge.s32.totalorder %s2993_s18, 1  ;;  %s2993_s18 = sphi %s3030_s18, %s15_s18  }
   0x2   : > { %p187_p1 = scmp.lt.s32.totalorder %s2993_s18, 3 }
   0x4   : > { %p188_p2 = pnand %p2495_p0, %p187_p1 }
   0x5   : > { %vm491_vm0 = vcmask (!%p188_p2), 1040384   ;;  %vm492_vm1 = vsmask.f32 (!%p188_p2), 256  ;;  %vm528_vm2 = vsmask.f32 (!%p188_p2), 7424  ;;  %v2995_v0 = vmov (!%p188_p2), 0  }
   0x6   : > { %191 = sbr.rel (%p188_p2) target bundleno = 870 (0x366), region = 40  ;;  %v341_v1 = vrot.slane (!%p188_p2), %v2995_v0, 7  ;;  %vm3039_vm3 = vmand (!%p188_p2), %vm491_vm0, %vm492_vm1  ;;  %p215_p3 = scmp.lt.s32.totalorder (!%p188_p2), %s2491_s19, 1  ;;  %1310 = vmatprep.subr.bf16.mxu0 (!%p188_p2), %v2995_v0  ;;  %v3047_v3 = vld [vmem:[%s4341_s1] sm:$0xff] (!%p188_p2)   ;;  %1074 = vmatprep.subr.bf16.mxu1 (!%p188_p2), %v2995_v0  ;;  %v3064_v6 = vld [vmem:[%s4341_s1 + $0x8] sm:$0xff] (!%p188_p2)   ;;  %vm801_vm4 = vcmask (!%p188_p2), 1046528  }
   0x7   : > { %1311 = vmatpush1.bf16.msra.mxu0 (!%p188_p2), %v3047_v3  ;;  %v3074_v10 = vld [vmem:[%s4341_s1 + $0x10] sm:$0xff] (!%p188_p2)   ;;  %v2945_v11 = vld [vmem:[%s4341_s1 + $0x60] sm:$0xff] (!%p188_p2)   ;;  %s2996_s7 = smov (!%p188_p2), 64   ;;  %v3148_v63 = vld [vmem:[%s4341_s1 + $0x18] sm:$0xff] (!%p188_p2)   ;;  %vm853_vm5 = vcmask (!%p188_p2), 523264   ;;  %vm2998_vm6 = vmmov (!%p188_p2), 0  }
   0x8   : > { %v3052_v4 = vsel (!%p188_p2), %vm3039_vm3, 0, %v341_v1  ;;  %v3056_v5 = vsel (!%p188_p2), %vm3039_vm3, %v341_v1, 0  ;;  %1312 = vmatprep.subr.bf16.mxu0 (!%p188_p2), %v2995_v0  ;;  %1075 = vmatpush1.bf16.msra.mxu1 (!%p188_p2), %v2945_v11  ;;  %v2969_v2 = vld [vmem:[%s4341_s1 + $0xc0] sm:$0xff] (!%p188_p2)   ;;  %vm2403_vm7 = vcmask (!%p188_p2), 519168  }
   0x9   : > { %v530_v7 = vshrl.u32 (!%p188_p2), %v3052_v4, 16  ;;  %v532_v8 = vshll.u32 (!%p188_p2), %v3052_v4, 16  ;;  %v537_v9 = vshll.u32 (!%p188_p2), %v3056_v5, 16  ;;  %1076 = vmatprep.subr.bf16.mxu1 (!%p188_p2), %v2995_v0 }
   0xb   : > { %v534_v12 = vrot.slane (!%p188_p2), %v532_v8, 1  ;;  %v539_v13 = vrot.slane (!%p188_p2), %v537_v9, 1  ;;  %1313 = vmatpush1.bf16.msra.mxu0 (!%p188_p2), %v3064_v6 }
   0xc   : > { %1314 = vmatprep.subr.bf16.mxu0 (!%p188_p2), %v2995_v0 }
   0xd   : > { %s4349_s19 = smov (!%p215_p3, %s2491_s19), 1  ;;  %v535_v15 = vor.u32 %v534_v12, %v530_v7 }
   0xe   : > { %s2686_s24 = sshll.u32 %s4349_s19, 7 }
   0xf   : > { %s3084_s6 = scalar_lea.vmem %s4340_s0, %s2686_s24  ;;  %v540_v19 = vsel %vm528_vm2, %v535_v15, %v539_v13  ;;  %1315 = vmatpush1.bf16.msra.mxu0 %v3074_v10  ;;  %s4267_s9 = scalar_lea.vmem %s4345_s5, %s2686_s24 }
  0x10   : > { %v2933_v14 = vld [vmem:[%s3084_s6] sm:$0xff]   ;;  %v2934_v16 = vld [vmem:[%s3084_s6 + $0x8] sm:$0xff]   ;;  %v2935_v22 = vld [vmem:[%s3084_s6 + $0x10] sm:$0xff]   ;;  %733 = vrot.lane.b32.xlu0 %v540_v19, %s2996_s7  ;;  %1316 = vmatprep.subr.bf16.mxu0 %v2995_v0 }
  0x11   : > { %v346_v17 = vshrl.u32 %v2933_v14, 16  ;;  %v349_v18 = vshll.u32 %v2933_v14, 16  ;;  %v353_v20 = vshrl.u32 %v2934_v16, 16  ;;  %v356_v21 = vshll.u32 %v2934_v16, 16  ;;  %v2936_v23 = vld [vmem:[%s3084_s6 + $0x18] sm:$0xff]   ;;  %v3096_v25 = vld [vmem:[%s3084_s6 + $0x20] sm:$0xff]  }
  0x12   : > { %v360_v27 = vshrl.u32 %v2935_v22, 16  ;;  %v367_v28 = vshrl.u32 %v2936_v23, 16  ;;  %v363_v31 = vshll.u32 %v2935_v22, 16  ;;  %v370_v32 = vshll.u32 %v2936_v23, 16  ;;  %v2938_v49 = vld [vmem:[%s3084_s6 + $0x28] sm:$0xff]   ;;  %v2939_v54 = vld [vmem:[%s3084_s6 + $0x30] sm:$0xff]  }
  0x13   : > { %v348_v24 = vrot.slane %v346_v17, 7  ;;  %v355_v26 = vrot.slane %v353_v20, 7  ;;  %v374_v40 = vshrl.u32 %v3096_v25, 16  ;;  %v3153_v11 = vld [vmem:[%s3084_s6 + $0x38] sm:$0xff]   ;;  %1317 = vmatpush1.bf16.msra.mxu0 %v3148_v63  ;;  %v2948_v16 = vld [vmem:[%s4341_s1 + $0x68] sm:$0xff]   ;;  %v377_v19 = vshll.u32 %v3096_v25, 16 }
  0x14   : > { %v362_v36 = vrot.slane %v360_v27, 7  ;;  %v369_v39 = vrot.slane %v367_v28, 7  ;;  %v381_v20 = vshrl.u32 %v2938_v49, 16  ;;  %1318 = vmatprep.subr.bf16.mxu0 %v2995_v0  ;;  %1077 = vmatpush1.bf16.msra.mxu1 %v2948_v16  ;;  %v2950_v25 = vld [vmem:[%s4341_s1 + $0x70] sm:$0xff]   ;;  %v2953_v16 = vld [vmem:[%s4341_s1 + $0x78] sm:$0xff]  }
  0x15   : > { %v351_v29 = vor.u32 %v349_v18, %v348_v24  ;;  %v3102_v30 = vsel %vm3039_vm3, %v348_v24, 0  ;;  %v358_v34 = vor.u32 %v356_v21, %v355_v26  ;;  %v3107_v35 = vsel %vm3039_vm3, %v355_v26, 0  ;;  %v3167_v21 = vld [vmem:[%s4341_s1 + $0x20] sm:$0xff]   ;;  %1078 = vmatprep.subr.bf16.mxu1 %v2995_v0 }
  0x16   : > { %v549_v33 = vshll.u32 %v3102_v30, 16  ;;  %v561_v38 = vshll.u32 %v3107_v35, 16  ;;  %v365_v48 = vor.u32 %v363_v31, %v362_v36  ;;  %v3126_v51 = vsel %vm3039_vm3, %v362_v36, 0 }
  0x17   : > { %v3111_v37 = vsel %vm3039_vm3, 0, %v351_v29  ;;  %v3119_v44 = vsel %vm3039_vm3, 0, %v358_v34  ;;  %v372_v52 = vor.u32 %v370_v32, %v369_v39  ;;  %v3130_v53 = vsel %vm3039_vm3, %v369_v39, 0  ;;  %1319 = vmatpush1.bf16.msra.mxu0 %v3167_v21 }
  0x18   : > { %v542_v41 = vshrl.u32 %v3111_v37, 16  ;;  %v544_v42 = vshll.u32 %v3111_v37, 16  ;;  %v551_v43 = vrot.slane %v549_v33, 1  ;;  %v554_v45 = vshrl.u32 %v3119_v44, 16  ;;  %1320 = vmatprep.subr.bf16.mxu0 %v2995_v0  ;;  %1079 = vmatpush1.bf16.msra.mxu1 %v2950_v25 }
  0x19   : > { %v556_v46 = vshll.u32 %v3119_v44, 16  ;;  %v563_v47 = vrot.slane %v561_v38, 1  ;;  %v3135_v56 = vsel %vm3039_vm3, 0, %v365_v48  ;;  %v573_v57 = vshll.u32 %v3126_v51, 16  ;;  %v3185_v38 = vld [vmem:[%s4341_s1 + $0x28] sm:$0xff]   ;;  %v2943_v48 = vld [vmem:[%s3084_s6 + $0x40] sm:$0xff]   ;;  %1080 = vmatprep.subr.bf16.mxu1 %v2995_v0 }
  0x1a   : > { %v546_v50 = vrot.slane %v544_v42, 1  ;;  %v585_v58 = vshll.u32 %v3130_v53, 16  ;;  %v566_v60 = vshrl.u32 %v3135_v56, 16  ;;  %v568_v61 = vshll.u32 %v3135_v56, 16 }
  0x1b   : > { %v558_v55 = vrot.slane %v556_v46, 1  ;;  %v3143_v62 = vsel %vm3039_vm3, 0, %v372_v52  ;;  %v575_v7 = vrot.slane %v573_v57, 1  ;;  %v376_v15 = vrot.slane %v374_v40, 7  ;;  %1321 = vmatpush1.bf16.msra.mxu0 %v3185_v38 }
  0x1c   : > { %v547_v59 = vor.u32 %v546_v50, %v542_v41  ;;  %v578_v8 = vshrl.u32 %v3143_v62, 16  ;;  %v580_v9 = vshll.u32 %v3143_v62, 16  ;;  %v570_v13 = vrot.slane %v568_v61, 1  ;;  %v2952_v61 = vld [vmem:[%s3084_s6 + $0x50] sm:$0xff]   ;;  %1322 = vmatprep.subr.bf16.mxu0 %v2995_v0  ;;  %1081 = vmatpush1.bf16.msra.mxu1 %v2953_v16 }
  0x1d   : > { %v559_v1 = vor.u32 %v558_v55, %v554_v45  ;;  %v587_v14 = vrot.slane %v585_v58, 1  ;;  %v3172_v23 = vsel %vm3039_vm3, %v376_v15, 0  ;;  %v384_v24 = vshll.u32 %v2938_v49, 16  ;;  %v2947_v55 = vld [vmem:[%s3084_s6 + $0x48] sm:$0xff]   ;;  %1082 = vmatprep.subr.bf16.mxu1 %v2995_v0 }
  0x1e   : > { %v552_v12 = vsel %vm528_vm2, %v547_v59, %v551_v43  ;;  %v582_v18 = vrot.slane %v580_v9, 1  ;;  %v571_v22 = vor.u32 %v570_v13, %v566_v60  ;;  %v388_v26 = vshrl.u32 %v2939_v54, 16 }
  0x1f   : > { %735 = vrot.lane.b32.xlu0 %v552_v12, %s2996_s7  ;;  %v564_v17 = vsel %vm528_vm2, %v559_v1, %v563_v47  ;;  %v379_v28 = vor.u32 %v377_v19, %v376_v15  ;;  %v597_v29 = vshll.u32 %v3172_v23, 16  ;;  %v383_v31 = vrot.slane %v381_v20, 7 }
  0x20   : > { %737 = vrot.lane.b32.xlu1 %v564_v17, %s2996_s7  ;;  %v583_v27 = vor.u32 %v582_v18, %v578_v8  ;;  %v576_v32 = vsel %vm528_vm2, %v571_v22, %v575_v7  ;;  %v390_v33 = vrot.slane %v388_v26, 7  ;;  %v391_v34 = vshll.u32 %v2939_v54, 16 }
  0x21   : > { %v395_v36 = vshrl.u32 %v3153_v11, 16  ;;  %v3190_v40 = vsel %vm3039_vm3, 0, %v379_v28  ;;  %v599_v41 = vrot.slane %v597_v29, 1  ;;  %v386_v42 = vor.u32 %v384_v24, %v383_v31 }
  0x22   : > { %v588_v39 = vsel %vm528_vm2, %v583_v27, %v587_v14  ;;  %v590_v43 = vshrl.u32 %v3190_v40, 16  ;;  %v592_v45 = vshll.u32 %v3190_v40, 16  ;;  %v3199_v46 = vsel %vm3039_vm3, %v383_v31, 0 }
  0x23   : > { %741 = vrot.lane.b32.xlu0 %v588_v39, %s2996_s7  ;;  %v393_v47 = vor.u32 %v391_v34, %v390_v33  ;;  %v3204_v49 = vsel %vm3039_vm3, 0, %v386_v42  ;;  %v609_v50 = vshll.u32 %v3199_v46, 16  ;;  %v3209_v52 = vsel %vm3039_vm3, %v390_v33, 0 }
  0x24   : > { %739 = vrot.lane.b32.xlu1 %v576_v32, %s2996_s7  ;;  %v397_v54 = vrot.slane %v395_v36, 7  ;;  %v594_v57 = vrot.slane %v592_v45, 1  ;;  %v602_v58 = vshrl.u32 %v3204_v49, 16  ;;  %v604_v59 = vshll.u32 %v3204_v49, 16  ;;  %v2955_v32 = vld [vmem:[%s4341_s1 + $0x80] sm:$0xff]  }
  0x25   : > { %v3216_v60 = vsel %vm3039_vm3, 0, %v393_v47  ;;  %v611_v1 = vrot.slane %v609_v50, 1  ;;  %v621_v9 = vshll.u32 %v3209_v52, 16  ;;  %v398_v14 = vshll.u32 %v3153_v11, 16  ;;  %v3238_v11 = vld [vmem:[%s4341_s1 + $0x30] sm:$0xff]   ;;  %1083 = vmatpush1.bf16.msra.mxu1 %v2955_v32  ;;  %v3308_v32 = vld [vmem:[%s4341_s1 + $0x48] sm:$0xff]  }
  0x26   : > { %v614_v7 = vshrl.u32 %v3216_v60, 16  ;;  %v616_v8 = vshll.u32 %v3216_v60, 16  ;;  %v595_v12 = vor.u32 %v594_v57, %v590_v43  ;;  %v606_v13 = vrot.slane %v604_v59, 1  ;;  %1323 = vmatpush1.bf16.msra.mxu0 %v3238_v11  ;;  %1084 = vmatprep.subr.bf16.mxu1 %v2995_v0 }
  0x27   : > { %v3228_v15 = vsel %vm3039_vm3, %v397_v54, 0  ;;  %v623_v18 = vrot.slane %v621_v9, 1  ;;  %v402_v20 = vshrl.u32 %v2943_v48, 16  ;;  %v400_v26 = vor.u32 %v398_v14, %v397_v54  ;;  %1324 = vmatprep.subr.bf16.mxu0 %v2995_v0 }
  0x28   : > { %v618_v17 = vrot.slane %v616_v8, 1  ;;  %v633_v19 = vshll.u32 %v3228_v15, 16  ;;  %v600_v22 = vsel %vm528_vm2, %v595_v12, %v599_v41  ;;  %v607_v24 = vor.u32 %v606_v13, %v602_v58  ;;  %v3254_v41 = vld [vmem:[%s4341_s1 + $0x38] sm:$0xff]   ;;  %v2958_v12 = vld [vmem:[%s4341_s1 + $0x88] sm:$0xff]  }
  0x29   : > { %v405_v25 = vshll.u32 %v2943_v48, 16  ;;  %743 = vrot.lane.b32.xlu1 %v600_v22, %s2996_s7  ;;  %v404_v29 = vrot.slane %v402_v20, 7  ;;  %v409_v31 = vshrl.u32 %v2947_v55, 16  ;;  %v3248_v34 = vsel %vm3039_vm3, 0, %v400_v26  ;;  %1085 = vmatpush1.bf16.msra.mxu1 %v2958_v12  ;;  %v2960_v26 = vld [vmem:[%s4341_s1 + $0x90] sm:$0xff]  }
  0x2a   : > { %v619_v27 = vor.u32 %v618_v17, %v614_v7  ;;  %v635_v28 = vrot.slane %v633_v19, 1  ;;  %v612_v33 = vsel %vm528_vm2, %v607_v24, %v611_v1  ;;  %v412_v36 = vshll.u32 %v2947_v55, 16  ;;  %v2957_v1 = vld [vmem:[%s3084_s6 + $0x58] sm:$0xff]   ;;  %1325 = vmatpush1.bf16.msra.mxu0 %v3254_v41  ;;  %v3296_v24 = vld [vmem:[%s4341_s1 + $0x40] sm:$0xff]   ;;  %1086 = vmatprep.subr.bf16.mxu1 %v2995_v0 }
  0x2b   : > { %v416_v39 = vshrl.u32 %v2952_v61, 16  ;;  %745 = vrot.lane.b32.xlu0 %v612_v33, %s2996_s7  ;;  %v626_v43 = vshrl.u32 %v3248_v34, 16  ;;  %v628_v45 = vshll.u32 %v3248_v34, 16  ;;  %v407_v47 = vor.u32 %v405_v25, %v404_v29  ;;  %1326 = vmatprep.subr.bf16.mxu0 %v2995_v0 }
  0x2c   : > { %v624_v42 = vsel %vm528_vm2, %v619_v27, %v623_v18  ;;  %v3263_v48 = vsel %vm3039_vm3, %v404_v29, 0  ;;  %v411_v50 = vrot.slane %v409_v31, 7  ;;  %v419_v55 = vshll.u32 %v2952_v61, 16 }
  0x2d   : > { %v418_v54 = vrot.slane %v416_v39, 7  ;;  %747 = vrot.lane.b32.xlu1 %v624_v42, %s2996_s7  ;;  %v630_v57 = vrot.slane %v628_v45, 1  ;;  %v3268_v58 = vsel %vm3039_vm3, 0, %v407_v47  ;;  %v645_v59 = vshll.u32 %v3263_v48, 16  ;;  %v2962_v42 = vld [vmem:[%s3084_s6 + $0x60] sm:$0xff]   ;;  %1087 = vmatpush1.bf16.msra.mxu1 %v2960_v26 }
  0x2e   : > { %v638_v7 = vshrl.u32 %v3268_v58, 16  ;;  %v640_v8 = vshll.u32 %v3268_v58, 16  ;;  %v414_v9 = vor.u32 %v412_v36, %v411_v50  ;;  %v3277_v61 = vsel %vm3039_vm3, %v411_v50, 0  ;;  %1327 = vmatpush1.bf16.msra.mxu0 %v3296_v24  ;;  %1088 = vmatprep.subr.bf16.mxu1 %v2995_v0 }
  0x2f   : > { %v631_v13 = vor.u32 %v630_v57, %v626_v43  ;;  %v647_v14 = vrot.slane %v645_v59, 1  ;;  %v657_v16 = vshll.u32 %v3277_v61, 16  ;;  %v421_v17 = vor.u32 %v419_v55, %v418_v54  ;;  %1328 = vmatprep.subr.bf16.mxu0 %v2995_v0 }
  0x30   : > { %v642_v18 = vrot.slane %v640_v8, 1  ;;  %v3287_v19 = vsel %vm3039_vm3, 0, %v414_v9  ;;  %v3291_v20 = vsel %vm3039_vm3, %v418_v54, 0  ;;  %v423_v22 = vshrl.u32 %v2957_v1, 16 }
  0x31   : > { %v636_v25 = vsel %vm528_vm2, %v631_v13, %v635_v28  ;;  %v650_v27 = vshrl.u32 %v3287_v19, 16  ;;  %v652_v29 = vshll.u32 %v3287_v19, 16  ;;  %v659_v31 = vrot.slane %v657_v16, 1  ;;  %v2963_v13 = vld [vmem:[%s4341_s1 + $0x98] sm:$0xff]  }
  0x32   : > { %749 = vrot.lane.b32.xlu0 %v636_v25, %s2996_s7  ;;  %v643_v33 = vor.u32 %v642_v18, %v638_v7  ;;  %v3313_v36 = vsel %vm3039_vm3, 0, %v421_v17  ;;  %v669_v28 = vshll.u32 %v3291_v20, 16  ;;  %v425_v39 = vrot.slane %v423_v22, 7  ;;  %1329 = vmatpush1.bf16.msra.mxu0 %v3308_v32 }
  0x33   : > { %v654_v43 = vrot.slane %v652_v29, 1  ;;  %v662_v45 = vshrl.u32 %v3313_v36, 16  ;;  %v664_v47 = vshll.u32 %v3313_v36, 16  ;;  %v426_v50 = vshll.u32 %v2957_v1, 16  ;;  %1330 = vmatprep.subr.bf16.mxu0 %v2995_v0  ;;  %1089 = vmatpush1.bf16.msra.mxu1 %v2963_v13  ;;  %v2965_v29 = vld [vmem:[%s4341_s1 + $0xa0] sm:$0xff]  }
  0x34   : > { %v648_v54 = vsel %vm528_vm2, %v643_v33, %v647_v14  ;;  %v671_v55 = vrot.slane %v669_v28, 1  ;;  %v3324_v57 = vsel %vm3039_vm3, %v425_v39, 0  ;;  %v430_v1 = vshrl.u32 %v2962_v42, 16  ;;  %v3336_v14 = vld [vmem:[%s4341_s1 + $0x50] sm:$0xff]   ;;  %1090 = vmatprep.subr.bf16.mxu1 %v2995_v0 }
  0x35   : > { %751 = vrot.lane.b32.xlu1 %v648_v54, %s2996_s7  ;;  %v655_v59 = vor.u32 %v654_v43, %v650_v27  ;;  %v666_v7 = vrot.slane %v664_v47, 1  ;;  %v428_v8 = vor.u32 %v426_v50, %v425_v39  ;;  %v681_v9 = vshll.u32 %v3324_v57, 16  ;;  %v2967_v43 = vld [vmem:[%s3084_s6 + $0x68] sm:$0xff]  }
  0x36   : > { %v433_v12 = vshll.u32 %v2962_v42, 16  ;;  %v432_v27 = vrot.slane %v430_v1, 7  ;;  %1331 = vmatpush1.bf16.msra.mxu0 %v3336_v14  ;;  %v3361_v42 = vld [vmem:[%s4341_s1 + $0x58] sm:$0xff]   ;;  %v802_v47 = vrot.slane %v3052_v4, 1 }
  0x37   : > { %v660_v16 = vsel %vm528_vm2, %v655_v59, %v659_v31  ;;  %v667_v17 = vor.u32 %v666_v7, %v662_v45  ;;  %v3341_v18 = vsel %vm3039_vm3, 0, %v428_v8  ;;  %v683_v22 = vrot.slane %v681_v9, 1  ;;  %1332 = vmatprep.subr.bf16.mxu0 %v2995_v0  ;;  %1091 = vmatpush1.bf16.msra.mxu1 %v2965_v29  ;;  %v2968_v7 = vld [vmem:[%s4341_s1 + $0xa8] sm:$0xff]  }
  0x38   : > { %753 = vrot.lane.b32.xlu0 %v660_v16, %s2996_s7  ;;  %v674_v26 = vshrl.u32 %v3341_v18, 16  ;;  %v676_v25 = vshll.u32 %v3341_v18, 16  ;;  %v435_v28 = vor.u32 %v433_v12, %v432_v27  ;;  %v3355_v39 = vsel %vm3039_vm3, %v432_v27, 0  ;;  %1092 = vmatprep.subr.bf16.mxu1 %v2995_v0 }
  0x39   : > { %v672_v31 = vsel %vm528_vm2, %v667_v17, %v671_v55  ;;  %v693_v45 = vshll.u32 %v3355_v39, 16  ;;  %v437_v55 = vshrl.u32 %v2967_v43, 16  ;;  %v440_v59 = vshll.u32 %v2967_v43, 16 }
  0x3a   : > { %755 = vrot.lane.b32.xlu1 %v672_v31, %s2996_s7  ;;  %v678_v33 = vrot.slane %v676_v25, 1  ;;  %v3369_v54 = vsel %vm3039_vm3, 0, %v435_v28  ;;  %v803_v12 = vrot.slane %v3056_v5, 1  ;;  %1333 = vmatpush1.bf16.msra.mxu0 %v3361_v42  ;;  %v2970_v25 = vld [vmem:[%s4341_s1 + $0xb0] sm:$0xff]   ;;  %v806_v28 = vrot.slane %v3102_v30, 1  ;;  %v2972_v30 = vld [vmem:[%s4341_s1 + $0xb8] sm:$0xff]  }
  0x3b   : > { %v686_v8 = vshrl.u32 %v3369_v54, 16  ;;  %v688_v9 = vshll.u32 %v3369_v54, 16  ;;  %v695_v1 = vrot.slane %v693_v45, 1  ;;  %v439_v16 = vrot.slane %v437_v55, 7  ;;  %1568 = vmatprep.subr.bf16.mxu0 %v2995_v0  ;;  %1093 = vmatpush1.bf16.msra.mxu1 %v2968_v7  ;;  %v2974_v7 = vld [vmem:[%s3084_s6 + $0x78] sm:$0xff]  }
  0x3c   : > { %v679_v50 = vor.u32 %v678_v33, %v674_v26  ;;  %v3382_v26 = vsel %vm801_vm4, %v802_v47, %v803_v12  ;;  %1094 = vmatprep.subr.bf16.mxu1 %v2995_v0  ;;  %v805_v33 = vrot.slane %v3111_v37, 1 }
  0x3d   : > { %v690_v17 = vrot.slane %v688_v9, 1  ;;  %v442_v27 = vor.u32 %v440_v59, %v439_v16  ;;  %v3390_v5 = vsel %vm3039_vm3, %v439_v16, 0  ;;  %2580 = vmatprep.mubr.msk.bf16.mxu0 %vm853_vm5, %v3382_v26 }
  0x3e   : > { %v684_v13 = vsel %vm528_vm2, %v679_v50, %v683_v22  ;;  %v2971_v22 = vld [vmem:[%s3084_s6 + $0x70] sm:$0xff]   ;;  %v705_v31 = vshll.u32 %v3390_v5, 16  ;;  %v807_v9 = vsel %vm801_vm4, %v805_v33, %v806_v28 }
  0x3f   : > { %757 = vrot.lane.b32.xlu0 %v684_v13, %s2996_s7  ;;  %v691_v29 = vor.u32 %v690_v17, %v686_v8  ;;  %v3401_v43 = vsel %vm3039_vm3, 0, %v442_v27  ;;  %v444_v45 = vshrl.u32 %v2971_v22, 16  ;;  %v447_v47 = vshll.u32 %v2971_v22, 16  ;;  %1095 = vmatpush1.bf16.msra.mxu1 %v2970_v25 }
  0x40   : > { %v698_v55 = vshrl.u32 %v3401_v43, 16  ;;  %v700_v59 = vshll.u32 %v3401_v43, 16  ;;  %v707_v13 = vrot.slane %v705_v31, 1  ;;  %1096 = vmatprep.subr.bf16.mxu1 %v2995_v0  ;;  %2552 = vmatprep.mubr.msk.bf16.mxu1 %vm853_vm5, %v807_v9  ;;  %v454_v25 = vshll.u32 %v2974_v7, 16 }
  0x41   : > { %v696_v50 = vsel %vm528_vm2, %v691_v29, %v695_v1  ;;  %v446_v8 = vrot.slane %v444_v45, 7  ;;  %v451_v1 = vshrl.u32 %v2974_v7, 16 }
  0x42   : > { %759 = vrot.lane.b32.xlu1 %v696_v50, %s2996_s7  ;;  %v702_v12 = vrot.slane %v700_v59, 1 }
  0x43   : > { %v449_v16 = vor.u32 %v447_v47, %v446_v8  ;;  %v3416_v17 = vsel %vm3039_vm3, %v446_v8, 0  ;;  %v453_v29 = vrot.slane %v451_v1, 7  ;;  %1097 = vmatpush1.bf16.msra.mxu1 %v2972_v30 }
  0x44   : > { %v703_v27 = vor.u32 %v702_v12, %v698_v55  ;;  %v717_v22 = vshll.u32 %v3416_v17, 16  ;;  %2800 = vmatprep.subr.bf16.mxu1 %v2995_v0 }
  0x45   : > { %v3421_v33 = vsel %vm3039_vm3, 0, %v449_v16  ;;  %v456_v47 = vor.u32 %v454_v25, %v453_v29  ;;  %v3430_v50 = vsel %vm3039_vm3, %v453_v29, 0 }
  0x46   : > { %v708_v31 = vsel %vm528_vm2, %v703_v27, %v707_v13  ;;  %v710_v28 = vshrl.u32 %v3421_v33, 16  ;;  %v712_v45 = vshll.u32 %v3421_v33, 16  ;;  %v719_v59 = vrot.slane %v717_v22, 1 }
  0x47   : > { %761 = vrot.lane.b32.xlu0 %v708_v31, %s2996_s7  ;;  %v729_v7 = vshll.u32 %v3430_v50, 16  ;;  %v3435_v8 = vsel %vm3039_vm3, 0, %v456_v47  ;;  %v809_v47 = vrot.slane %v3107_v35, 1 }
  0x48   : > { %v714_v55 = vrot.slane %v712_v45, 1  ;;  %v722_v12 = vshrl.u32 %v3435_v8, 16  ;;  %v724_v13 = vshll.u32 %v3435_v8, 16  ;;  %v2975_v45 = vld [vmem:[%s4341_s1 + $0xd0] sm:$0xff]  }
  0x49   : > { %v731_v25 = vrot.slane %v729_v7, 1 }
  0x4a   : > { %v715_v30 = vor.u32 %v714_v55, %v710_v28  ;;  %v726_v16 = vrot.slane %v724_v13, 1  ;;  %v2973_v28 = vld [vmem:[%s4341_s1 + $0xc8] sm:$0xff]   ;;  %v2977_v13 = vld [vmem:[%s4341_s1 + $0xe0] sm:$0xff]  }
  0x4c   : > { %v720_v1 = vsel %vm528_vm2, %v715_v30, %v719_v59  ;;  %v727_v27 = vor.u32 %v726_v16, %v722_v12  ;;  %v2976_v59 = vld [vmem:[%s4341_s1 + $0xd8] sm:$0xff]   ;;  %v811_v30 = vrot.slane %v3135_v56, 1  ;;  %v812_v12 = vrot.slane %v3126_v51, 1  ;;  %v2978_v51 = vld [vmem:[%s4341_s1 + $0xe8] sm:$0xff]  }
  0x4d   : > { %763 = vrot.lane.b32.xlu1 %v720_v1, %s2996_s7  ;;  %v815_v16 = vrot.slane %v3130_v53, 1  ;;  %v2980_v53 = vld [vmem:[%s4341_s1 + $0xf8] sm:$0xff]  }
  0x4e   : > { %v732_v22 = vsel %vm528_vm2, %v727_v27, %v731_v25  ;;  %v3488_v1 = vsel %vm801_vm4, %v811_v30, %v812_v12 }
  0x4f   : > { %765 = vrot.lane.b32.xlu0 %v732_v22, %s2996_s7  ;;  %v818_v22 = vrot.slane %v3172_v23, 1  ;;  %v2982_v23 = vld [vmem:[%s4341_s1 + $0x108] sm:$0xff]  }
  0x82   : > { %v734_v29 = vpop.permute.xlu0 %733 }
  0x83   : > { %v3448_v31 = vsel %vm853_vm5, %v3052_v4, %v734_v29  ;;  %v808_v4 = vrot.slane %v3119_v44, 1 }
  0x84   : > { %1343 = vmatmul.mubr.bf16.vlgmr.msra.gmra.mrb[0].mxu0 %v3448_v31 }
  0x85   : > { %1569 = vmatpush1.bf16.msra.mxu0 %v2969_v2  ;;  %2581 = vmatprep.mubr.msk.bf16.mxu0 %vm853_vm5, %v807_v9  ;;  %v3463_v9 = vsel %vm801_vm4, %v808_v4, %v809_v47  ;;  %v824_v4 = vrot.slane %v3209_v52, 1 }
  0x86   : > { %1570 = vmatprep.subr.bf16.mxu0 %v2995_v0 }
  0x89   : > { %1571 = vmatpush1.bf16.msra.mxu0 %v2973_v28  ;;  %v821_v28 = vrot.slane %v3199_v46, 1  ;;  %v2984_v46 = vld [vmem:[%s4341_s1 + $0x118] sm:$0xff]  }
  0x8a   : > { %1572 = vmatprep.subr.bf16.mxu0 %v2995_v0 }
  0x8d   : > { %1573 = vmatpush1.bf16.msra.mxu0 %v2975_v45 }
  0x8e   : > { %1574 = vmatprep.subr.bf16.mxu0 %v2995_v0 }
  0x91   : > { %v736_v55 = vpop.permute.xlu0 %735  ;;  %1575 = vmatpush1.bf16.msra.mxu0 %v2976_v59 }
  0x92   : > { %v858_v7 = vsel %vm853_vm5, %v3111_v37, %v736_v55  ;;  %v738_v35 = vpop.permute.xlu1 %737  ;;  %1576 = vmatprep.subr.bf16.mxu0 %v2995_v0 }
  0x93   : > { %1107 = vmatmul.mubr.bf16.vlgmr.msra.gmra.mrb[0].mxu1 %v858_v7  ;;  %1351 = vmatmul.mubr.bf16.gmra.mrb[4].mxu0 %v858_v7  ;;  %v3485_v37 = vsel %vm853_vm5, %v3119_v44, %v738_v35  ;;  %v814_v44 = vrot.slane %v3143_v62, 1  ;;  %v833_v35 = vrot.slane %v3277_v61, 1  ;;  %v835_v61 = vrot.slane %v3313_v36, 1 }
  0x94   : > { %2553 = vmatprep.mubr.msk.bf16.mxu1 %vm853_vm5, %v3463_v9  ;;  %2582 = vmatprep.mubr.msk.bf16.mxu0 %vm853_vm5, %v3463_v9 }
  0x95   : > { %2812 = vmatpush1.bf16.msra.mxu1 %v3047_v3  ;;  %1577 = vmatpush1.bf16.msra.mxu0 %v2977_v13  ;;  %v3515_v27 = vsel %vm801_vm4, %v814_v44, %v815_v16  ;;  %v836_v13 = vrot.slane %v3291_v20, 1  ;;  %v839_v20 = vrot.slane %v3324_v57, 1  ;;  %v842_v16 = vrot.slane %v3355_v39, 1 }
  0x96   : > { %2801 = vmatprep.subr.bf16.mxu1 %v2995_v0  ;;  %1578 = vmatprep.subr.bf16.mxu0 %v2995_v0  ;;  %v740_v3 = vpop.permute.xlu1 %739 }
  0x97   : > { %v3512_v25 = vsel %vm853_vm5, %v3135_v56, %v740_v3  ;;  %v817_v56 = vrot.slane %v3190_v40, 1  ;;  %v838_v3 = vrot.slane %v3341_v18, 1 }
  0x99   : > { %2813 = vmatpush1.bf16.msra.mxu1 %v3064_v6  ;;  %1579 = vmatpush1.bf16.msra.mxu0 %v2978_v51  ;;  %v2979_v6 = vld [vmem:[%s4341_s1 + $0xf0] sm:$0xff]   ;;  %v3542_v29 = vsel %vm801_vm4, %v817_v56, %v818_v22  ;;  %v3655_v51 = vsel %vm801_vm4, %v835_v61, %v836_v13  ;;  %v840_v44 = vsel %vm801_vm4, %v838_v3, %v839_v20  ;;  %v848_v56 = vrot.slane %v3416_v17, 1  ;;  %v1937_v13 = vld [vmem:[%s4342_s2 + $0x18] sm:$0xff] }
  0x9a   : > { %2802 = vmatprep.subr.bf16.mxu1 %v2995_v0  ;;  %1580 = vmatprep.subr.bf16.mxu0 %v2995_v0  ;;  %v1936_v61 = vld [vmem:[%s4342_s2 + $0x10] sm:$0xff] }
  0x9b   : > { %1115 = vmatmul.mubr.bf16.gmra.mrb[4].mxu1 %v3485_v37  ;;  %1359 = vmatmul.mubr.bf16.gmra.mrb[8].mxu0 %v3485_v37 }
  0x9c   : > { %2554 = vmatprep.mubr.msk.bf16.mxu1 %vm853_vm5, %v3488_v1  ;;  %2583 = vmatprep.mubr.msk.bf16.mxu0 %vm853_vm5, %v3488_v1 }
  0x9d   : > { %2814 = vmatpush1.bf16.msra.mxu1 %v3074_v10  ;;  %1581 = vmatpush1.bf16.msra.mxu0 %v2979_v6  ;;  %v742_v10 = vpop.permute.xlu0 %741 }
  0x9e   : > { %2803 = vmatprep.subr.bf16.mxu1 %v2995_v0  ;;  %1582 = vmatprep.subr.bf16.mxu0 %v2995_v0  ;;  %v3539_v2 = vsel %vm853_vm5, %v3143_v62, %v742_v10  ;;  %v744_v62 = vpop.permute.xlu1 %743  ;;  %v847_v10 = vrot.slane %v3421_v33, 1 }
  0x9f   : > { %v3566_v45 = vsel %vm853_vm5, %v3190_v40, %v744_v62 }
  0xa1   : > { %2815 = vmatpush1.bf16.msra.mxu1 %v3148_v63  ;;  %1583 = vmatpush1.bf16.msra.mxu0 %v2980_v53  ;;  %v2981_v63 = vld [vmem:[%s4341_s1 + $0x100] sm:$0xff]   ;;  %v746_v40 = vpop.permute.xlu0 %745 }
  0xa2   : > { %2804 = vmatprep.subr.bf16.mxu1 %v2995_v0  ;;  %1584 = vmatprep.subr.bf16.mxu0 %v2995_v0  ;;  %v748_v52 = vpop.permute.xlu1 %747 }
  0xa3   : > { %1123 = vmatmul.mubr.bf16.gmra.mrb[8].mxu1 %v3512_v25  ;;  %1367 = vmatmul.mubr.bf16.gmra.mrb[12].mxu0 %v3512_v25 }
  0xa4   : > { %2555 = vmatprep.mubr.msk.bf16.mxu1 %vm853_vm5, %v3515_v27  ;;  %2584 = vmatprep.mubr.msk.bf16.mxu0 %vm853_vm5, %v3515_v27 }
  0xa5   : > { %2816 = vmatpush1.bf16.msra.mxu1 %v3167_v21  ;;  %1585 = vmatpush1.bf16.msra.mxu0 %v2981_v63  ;;  %v820_v21 = vrot.slane %v3204_v49, 1  ;;  %v850_v63 = vrot.slane %v3435_v8, 1 }
  0xa6   : > { %2805 = vmatprep.subr.bf16.mxu1 %v2995_v0  ;;  %1586 = vmatprep.subr.bf16.mxu0 %v2995_v0 }
  0xa7   : > { %v3569_v47 = vsel %vm801_vm4, %v820_v21, %v821_v28  ;;  %v752_v7 = vpop.permute.xlu1 %751 }
  0xa9   : > { %2817 = vmatpush1.bf16.msra.mxu1 %v3185_v38  ;;  %1587 = vmatpush1.bf16.msra.mxu0 %v2982_v23  ;;  %v2983_v38 = vld [vmem:[%s4341_s1 + $0x110] sm:$0xff]  }
  0xaa   : > { %2806 = vmatprep.subr.bf16.mxu1 %v2995_v0  ;;  %1588 = vmatprep.subr.bf16.mxu0 %v2995_v0 }
  0xab   : > { %1131 = vmatmul.mubr.bf16.gmra.mrb[12].mxu1 %v3539_v2  ;;  %1375 = vmatmul.mubr.bf16.gmra.mrb[16].mxu0 %v3539_v2 }
  0xac   : > { %2556 = vmatprep.mubr.msk.bf16.mxu1 %vm853_vm5, %v3542_v29  ;;  %2585 = vmatprep.mubr.msk.bf16.mxu0 %vm853_vm5, %v3542_v29 }
  0xad   : > { %2818 = vmatpush1.bf16.msra.mxu1 %v3238_v11  ;;  %1589 = vmatpush1.bf16.msra.mxu0 %v2983_v38  ;;  %v823_v11 = vrot.slane %v3216_v60, 1 }
  0xae   : > { %2807 = vmatprep.subr.bf16.mxu1 %v2995_v0  ;;  %1590 = vmatprep.subr.bf16.mxu0 %v2995_v0 }
  0xaf   : > { %v3592_v55 = vsel %vm801_vm4, %v823_v11, %v824_v4 }
  0xb1   : > { %2819 = vmatpush1.bf16.msra.mxu1 %v3254_v41  ;;  %1591 = vmatpush1.bf16.msra.mxu0 %v2984_v46  ;;  %v3589_v41 = vsel %vm853_vm5, %v3204_v49, %v746_v40  ;;  %v826_v49 = vrot.slane %v3248_v34, 1 }
  0xb2   : > { %2808 = vmatprep.subr.bf16.mxu1 %v2995_v0 }
  0xb3   : > { %1139 = vmatmul.mubr.bf16.gmra.mrb[16].mxu1 %v3566_v45  ;;  %1383 = vmatmul.mubr.bf16.gmra.mrb[20].mxu0 %v3566_v45 }
  0xb4   : > { %2557 = vmatprep.mubr.msk.bf16.mxu1 %vm853_vm5, %v3569_v47  ;;  %2586 = vmatprep.mubr.msk.bf16.mxu0 %vm853_vm5, %v3569_v47 }
  0xb5   : > { %2820 = vmatpush1.bf16.msra.mxu1 %v3296_v24  ;;  %v827_v24 = vrot.slane %v3228_v15, 1  ;;  %v829_v15 = vrot.slane %v3268_v58, 1 }
  0xb6   : > { %2809 = vmatprep.subr.bf16.mxu1 %v2995_v0 }
  0xb7   : > { %v3611_v59 = vsel %vm801_vm4, %v826_v49, %v827_v24 }
  0xb9   : > { %2821 = vmatpush1.bf16.msra.mxu1 %v3308_v32  ;;  %v3608_v32 = vsel %vm853_vm5, %v3216_v60, %v748_v52  ;;  %v830_v60 = vrot.slane %v3263_v48, 1  ;;  %v832_v48 = vrot.slane %v3287_v19, 1 }
  0xba   : > { %2810 = vmatprep.subr.bf16.mxu1 %v2995_v0 }
  0xbb   : > { %1147 = vmatmul.mubr.bf16.gmra.mrb[20].mxu1 %v3589_v41  ;;  %1391 = vmatmul.mubr.bf16.gmra.mrb[24].mxu0 %v3589_v41  ;;  %v3642_v30 = vsel %vm801_vm4, %v832_v48, %v833_v35 }
  0xbc   : > { %2558 = vmatprep.mubr.msk.bf16.mxu1 %vm853_vm5, %v3592_v55  ;;  %2587 = vmatprep.mubr.msk.bf16.mxu0 %vm853_vm5, %v3592_v55 }
  0xbd   : > { %2822 = vmatpush1.bf16.msra.mxu1 %v3336_v14 }
  0xbe   : > { %2811 = vmatprep.subr.bf16.mxu1 %v2995_v0  ;;  %v750_v0 = vpop.permute.xlu0 %749 }
  0xbf   : > { %v3624_v14 = vsel %vm853_vm5, %v3248_v34, %v750_v0  ;;  %v3639_v34 = vsel %vm853_vm5, %v3268_v58, %v752_v7  ;;  %v1935_v0 = vld [vmem:[%s4342_s2 + $0x8] sm:$0xff] }
  0xc1   : > { %2823 = vmatpush1.bf16.msra.mxu1 %v3361_v42  ;;  %v3627_v42 = vsel %vm801_vm4, %v829_v15, %v830_v60  ;;  %v2997_v60 = vmov 0.0|0.0  }
  0xc2   : > { %v754_v12 = vpop.permute.xlu0 %753  ;;  %2776 = vmatprep.subr.bf16.mxu1 %v2997_v60 }
  0xc3   : > { %1155 = vmatmul.mubr.bf16.gmra.mrb[24].mxu1 %v3608_v32  ;;  %1399 = vmatmul.mubr.bf16.gmra.mrb[28].mxu0 %v3608_v32  ;;  %v885_v58 = vsel %vm853_vm5, %v3287_v19, %v754_v12 }
  0xc4   : > { %2559 = vmatprep.mubr.msk.bf16.mxu1 %vm853_vm5, %v3611_v59  ;;  %2588 = vmatprep.mubr.msk.bf16.mxu0 %vm853_vm5, %v3611_v59 }
  0xcb   : > { %1163 = vmatmul.mubr.bf16.gmra.mrb[28].mxu1 %v3624_v14  ;;  %1407 = vmatmul.mubr.bf16.gmra.mrb[32].mxu0 %v3624_v14 }
  0xcc   : > { %2560 = vmatprep.mubr.msk.bf16.mxu1 %vm853_vm5, %v3627_v42  ;;  %2589 = vmatprep.mubr.msk.bf16.mxu0 %vm853_vm5, %v3627_v42 }
  0xd3   : > { %1171 = vmatmul.mubr.bf16.gmra.mrb[32].mxu1 %v3639_v34  ;;  %1415 = vmatmul.mubr.bf16.gmra.mrb[36].mxu0 %v3639_v34 }
  0xd4   : > { %2561 = vmatprep.mubr.msk.bf16.mxu1 %vm853_vm5, %v3642_v30  ;;  %2632 = vmatprep.mubr.msk.bf16.mxu0 %vm853_vm5, %v3463_v9  ;;  %v756_v9 = vpop.permute.xlu1 %755 }
  0xd5   : > { %v888_v19 = vsel %vm853_vm5, %v3313_v36, %v756_v9 }
  0xd8   : > { %v760_v6 = vpop.permute.xlu1 %759 }
  0xd9   : > { %v894_v39 = vsel %vm853_vm5, %v3369_v54, %v760_v6 }
  0xdb   : > { %1179 = vmatmul.mubr.bf16.gmra.mrb[36].mxu1 %v885_v58  ;;  %1601 = vmatmul.mubr.bf16.vlgmr.msra.gmra.mrb[0].mxu0 %v3485_v37  ;;  %v758_v37 = vpop.permute.xlu0 %757 }
  0xdc   : > { %2562 = vmatprep.mubr.msk.bf16.mxu1 %vm853_vm5, %v3655_v51  ;;  %2633 = vmatprep.mubr.msk.bf16.mxu0 %vm853_vm5, %v3488_v1  ;;  %v841_v1 = vrot.slane %v3369_v54, 1  ;;  %v891_v57 = vsel %vm853_vm5, %v3341_v18, %v758_v37  ;;  %v849_v54 = vsel %vm801_vm4, %v847_v10, %v848_v56  ;;  %v764_v22 = vpop.permute.xlu1 %763 }
  0xdd   : > { %v900_v17 = vsel %vm853_vm5, %v3421_v33, %v764_v22  ;;  %v1941_v22 = vld [vmem:[%s4342_s2 + $0x38] sm:$0xff] }
  0xde   : > { %v843_v36 = vsel %vm801_vm4, %v841_v1, %v842_v16 }
  0xdf   : > { %v762_v53 = vpop.permute.xlu0 %761 }
  0xe3   : > { %1187 = vmatmul.mubr.bf16.gmra.mrb[40].mxu1 %v888_v19  ;;  %1609 = vmatmul.mubr.bf16.gmra.mrb[4].mxu0 %v3512_v25  ;;  %v844_v25 = vrot.slane %v3401_v43, 1 }
  0xe4   : > { %2563 = vmatprep.mubr.msk.bf16.mxu1 %vm853_vm5, %v840_v44  ;;  %2634 = vmatprep.mubr.msk.bf16.mxu0 %vm853_vm5, %v3515_v27  ;;  %v845_v27 = vrot.slane %v3390_v5, 1  ;;  %v897_v5 = vsel %vm853_vm5, %v3401_v43, %v762_v53 }
  0xe6   : > { %v846_v18 = vsel %vm801_vm4, %v844_v25, %v845_v27 }
  0xeb   : > { %1195 = vmatmul.mubr.bf16.gmra.mrb[44].mxu1 %v891_v57  ;;  %1617 = vmatmul.mubr.bf16.gmra.mrb[8].mxu0 %v3539_v2  ;;  %v851_v2 = vrot.slane %v3430_v50, 1 }
  0xec   : > { %2564 = vmatprep.mubr.msk.bf16.mxu1 %vm853_vm5, %v843_v36  ;;  %2635 = vmatprep.mubr.msk.bf16.mxu0 %vm853_vm5, %v3542_v29  ;;  %v766_v29 = vpop.permute.xlu0 %765 }
  0xed   : > { %v852_v43 = vsel %vm801_vm4, %v850_v63, %v851_v2  ;;  %v903_v23 = vsel %vm853_vm5, %v3435_v8, %v766_v29 }
  0xf3   : > { %1203 = vmatmul.mubr.bf16.gmra.mrb[48].mxu1 %v894_v39  ;;  %1625 = vmatmul.mubr.bf16.gmra.mrb[12].mxu0 %v3566_v45 }
  0xf4   : > { %2565 = vmatprep.mubr.msk.bf16.mxu1 %vm853_vm5, %v846_v18  ;;  %2636 = vmatprep.mubr.msk.bf16.mxu0 %vm853_vm5, %v3569_v47 }
  0xfb   : > { %1211 = vmatmul.mubr.bf16.gmra.mrb[52].mxu1 %v897_v5  ;;  %1633 = vmatmul.mubr.bf16.gmra.mrb[16].mxu0 %v3589_v41 }
  0xfc   : > { %2566 = vmatprep.mubr.msk.bf16.mxu1 %vm853_vm5, %v849_v54  ;;  %2637 = vmatprep.mubr.msk.bf16.mxu0 %vm853_vm5, %v3592_v55 }
 0x103   : > { %1219 = vmatmul.mubr.bf16.gmra.mrb[56].mxu1 %v900_v17  ;;  %1641 = vmatmul.mubr.bf16.gmra.mrb[20].mxu0 %v3608_v32 }
 0x104   : > { %2567 = vmatprep.mubr.msk.bf16.mxu1 %vm853_vm5, %v852_v43  ;;  %2638 = vmatprep.mubr.msk.bf16.mxu0 %vm853_vm5, %v3611_v59  ;;  %v1934_v59 = vld [vmem:[%s4342_s2] sm:$0xff] }
 0x10b   : > { %1227 = vmatmul.mubr.bf16.gmra.mrb[60].mxu1 %v903_v23  ;;  %1649 = vmatmul.mubr.bf16.gmra.mrb[24].mxu0 %v3624_v14  ;;  %v3758_v14 = vpack.c.bf16 %v1935_v0, %v1934_v59 }
 0x10c   : > { %2590 = vmatprep.mubr.msk.bf16.mxu1 %vm853_vm5, %v3642_v30  ;;  %2639 = vmatprep.mubr.msk.bf16.mxu0 %vm853_vm5, %v3627_v42 }
 0x113   : > { %1423 = vmatmul.mubr.bf16.vlgmr.msra.gmra.mrb[40].mxu1 %v885_v58  ;;  %1657 = vmatmul.mubr.bf16.gmra.mrb[28].mxu0 %v3639_v34 }
 0x114   : > { %2591 = vmatprep.mubr.msk.bf16.mxu1 %vm853_vm5, %v3655_v51  ;;  %2640 = vmatprep.mubr.msk.bf16.mxu0 %vm853_vm5, %v3642_v30 }
 0x115   : > { %2778 = vmatpush3.bf16.msra.mxu1 %v3758_v14 }
 0x116   : > { %2779 = vmatprep.subr.bf16.mxu1 %v2997_v60 }
 0x11b   : > { %1431 = vmatmul.mubr.bf16.gmra.mrb[44].mxu1 %v888_v19  ;;  %1665 = vmatmul.mubr.bf16.gmra.mrb[32].mxu0 %v885_v58 }
 0x11c   : > { %2592 = vmatprep.mubr.msk.bf16.mxu1 %vm853_vm5, %v840_v44  ;;  %2641 = vmatprep.mubr.msk.bf16.mxu0 %vm853_vm5, %v3655_v51  ;;  %v3776_v51 = vpack.c.bf16 %v1937_v13, %v1936_v61 }
 0x11e   : > { %2781 = vmatpush3.bf16.msra.mxu1 %v3776_v51 }
 0x11f   : > { %2782 = vmatprep.subr.bf16.mxu1 %v2997_v60 }
 0x123   : > { %1439 = vmatmul.mubr.bf16.gmra.mrb[48].mxu1 %v891_v57  ;;  %1673 = vmatmul.mubr.bf16.gmra.mrb[36].mxu0 %v888_v19  ;;  %v1938_v19 = vld [vmem:[%s4342_s2 + $0x20] sm:$0xff] }
 0x124   : > { %2593 = vmatprep.mubr.msk.bf16.mxu1 %vm853_vm5, %v843_v36  ;;  %2642 = vmatprep.mubr.msk.bf16.mxu0 %vm853_vm5, %v840_v44  ;;  %v1939_v44 = vld [vmem:[%s4342_s2 + $0x28] sm:$0xff] }
 0x125   : > { %v3790_v1 = vpack.c.bf16 %v1939_v44, %v1938_v19 }
 0x127   : > { %2784 = vmatpush3.bf16.msra.mxu1 %v3790_v1 }
 0x128   : > { %2785 = vmatprep.subr.bf16.mxu1 %v2997_v60 }
 0x12b   : > { %1447 = vmatmul.mubr.bf16.gmra.mrb[52].mxu1 %v894_v39  ;;  %1681 = vmatmul.mubr.bf16.gmra.mrb[40].mxu0 %v891_v57 }
 0x12c   : > { %2594 = vmatprep.mubr.msk.bf16.mxu1 %vm853_vm5, %v846_v18  ;;  %2643 = vmatprep.mubr.msk.bf16.mxu0 %vm853_vm5, %v843_v36 }
 0x133   : > { %1455 = vmatmul.mubr.bf16.gmra.mrb[56].mxu1 %v897_v5  ;;  %1689 = vmatmul.mubr.bf16.gmra.mrb[44].mxu0 %v894_v39 }
 0x134   : > { %2595 = vmatprep.mubr.msk.bf16.mxu1 %vm853_vm5, %v849_v54  ;;  %2644 = vmatprep.mubr.msk.bf16.mxu0 %vm853_vm5, %v846_v18 }
 0x13b   : > { %1463 = vmatmul.mubr.bf16.gmra.mrb[60].mxu1 %v900_v17  ;;  %1697 = vmatmul.mubr.bf16.gmra.mrb[48].mxu0 %v897_v5 }
 0x13c   : > { %2645 = vmatprep.mubr.msk.bf16.mxu0 %vm853_vm5, %v849_v54  ;;  %v1940_v54 = vld [vmem:[%s4342_s2 + $0x30] sm:$0xff] }
 0x13d   : > { %v3810_v2 = vpack.c.bf16 %v1941_v22, %v1940_v54 }
 0x13f   : > { %2787 = vmatpush3.bf16.msra.mxu1 %v3810_v2 }
 0x140   : > { %2788 = vmatprep.subr.bf16.mxu1 %v2997_v60 }
 0x143   : > { %1705 = vmatmul.mubr.bf16.gmra.mrb[52].mxu0 %v900_v17 }
 0x144   : > { %2646 = vmatprep.mubr.msk.bf16.mxu0 %vm853_vm5, %v852_v43 }
 0x14b   : > { %1713 = vmatmul.mubr.bf16.gmra.mrb[56].mxu0 %v903_v23 }
 0x14c   : > { %2647 = vmatprep.mubr.msk.bf16.mxu0 %vm853_vm5, %v3382_v26 }
 0x153   : > { %1721 = vmatmul.mubr.bf16.gmra.mrb[60].mxu0 %v3448_v31 }
 0x166   : > { %v1108_v33 = vpop.f32.mrb[0].mxu1 }
 0x167   : > { %v1110_v50 = vpop.f32.mrb[1].mxu1 }
 0x168   : > { %v1111_v8 = vpop.f32.mrb[2].mxu1  ;;  %v2999_v50 = vmov 0.0  }
 0x169   : > { %v1113_v62 = vpop.f32.mrb[3].mxu1  ;;  %2754 = vmatprep.mubr.msk.f32.mxu1 %vm2998_vm6, %v2999_v50 }
 0x16e   : > { %v3733_v21 = vpop.f32.mrb[4].mxu1 }
 0x16f   : > { %v1118_v28 = vpop.f32.mrb[5].mxu1 }
 0x170   : > { %v3735_v38 = vpop.f32.mrb[6].mxu1 }
 0x171   : > { %v1121_v45 = vpop.f32.mrb[7].mxu1 }
 0x176   : > { %v3737_v47 = vpop.f32.mrb[8].mxu1 }
 0x177   : > { %v1126_v46 = vpop.f32.mrb[9].mxu1 }
 0x178   : > { %v3739_v40 = vpop.f32.mrb[10].mxu1 }
 0x179   : > { %v1129_v11 = vpop.f32.mrb[11].mxu1 }
 0x17e   : > { %v3741_v4 = vpop.f32.mrb[12].mxu1 }
 0x17f   : > { %v1134_v26 = vpop.f32.mrb[13].mxu1 }
 0x180   : > { %v3743_v31 = vpop.f32.mrb[14].mxu1 }
 0x181   : > { %v1137_v41 = vpop.f32.mrb[15].mxu1 }
 0x186   : > { %v3745_v55 = vpop.f32.mrb[16].mxu1 }
 0x187   : > { %v1142_v52 = vpop.f32.mrb[17].mxu1 }
 0x188   : > { %v3747_v49 = vpop.f32.mrb[18].mxu1 }
 0x189   : > { %v1145_v24 = vpop.f32.mrb[19].mxu1 }
 0x18e   : > { %v3749_v32 = vpop.f32.mrb[20].mxu1 }
 0x18f   : > { %v1150_v15 = vpop.f32.mrb[21].mxu1 }
 0x190   : > { %v3760_v42 = vpop.f32.mrb[22].mxu1 }
 0x191   : > { %v1153_v7 = vpop.f32.mrb[23].mxu1 }
 0x196   : > { %v3764_v48 = vpop.f32.mrb[24].mxu1 }
 0x197   : > { %v1158_v35 = vpop.f32.mrb[25].mxu1 }
 0x198   : > { %v3766_v34 = vpop.f32.mrb[26].mxu1 }
 0x199   : > { %v1161_v30 = vpop.f32.mrb[27].mxu1 }
 0x19e   : > { %v3768_v12 = vpop.f32.mrb[28].mxu1 }
 0x19f   : > { %v1166_v58 = vpop.f32.mrb[29].mxu1 }
 0x1a0   : > { %v3778_v9 = vpop.f32.mrb[30].mxu1 }
 0x1a1   : > { %v1169_v3 = vpop.f32.mrb[31].mxu1 }
 0x1a6   : > { %v3782_v20 = vpop.f32.mrb[32].mxu1 }
 0x1a7   : > { %v1174_v37 = vpop.f32.mrb[33].mxu1 }
 0x1a8   : > { %v3792_v16 = vpop.f32.mrb[34].mxu1 }
 0x1a9   : > { %v1177_v57 = vpop.f32.mrb[35].mxu1 }
 0x1ae   : > { %v1602_v36 = vpop.f32.mrb[0].mxu0  ;;  %v3796_v6 = vpop.f32.mrb[36].mxu1 }
 0x1af   : > { %v3798_v25 = vadd.f32 %v1602_v36, %v1108_v33  ;;  %v1604_v27 = vpop.f32.mrb[1].mxu0  ;;  %v1182_v39 = vpop.f32.mrb[37].mxu1 }
 0x1b0   : > { %v1605_v18 = vpop.f32.mrb[2].mxu0  ;;  %v3800_v53 = vpop.f32.mrb[38].mxu1 }
 0x1b1   : > { %v3802_v10 = vadd.f32 %v1605_v18, %v1111_v8  ;;  %v1607_v56 = vpop.f32.mrb[3].mxu0  ;;  %v1185_v5 = vpop.f32.mrb[39].mxu1  ;;  %v1832_v7 = vmul.f32 %v3798_v25, %v3798_v25  ;;  %v1761_v61 = vsel %vm853_vm5, %v3798_v25, 0.0 }
 0x1b3   : > { %v1864_v3 = vsel %vm853_vm5, %v1832_v7, 0.0 }
 0x1b6   : > { %v1610_v63 = vpop.f32.mrb[4].mxu0 }
 0x1b7   : > { %v3813_v17 = vadd.f32 %v1610_v63, %v3733_v21  ;;  %v1612_v43 = vpop.f32.mrb[5].mxu0 }
 0x1b8   : > { %v1613_v29 = vpop.f32.mrb[6].mxu0 }
 0x1b9   : > { %v3817_v23 = vadd.f32 %v1613_v29, %v3735_v38  ;;  %v1615_v33 = vpop.f32.mrb[7].mxu0  ;;  %v1764_v13 = vsel %vm853_vm5, %v3813_v17, 0.0 }
 0x1bb   : > { %v1835_v44 = vmul.f32 %v3817_v23, %v3817_v23  ;;  %v1766_v36 = vsel %vm853_vm5, %v3817_v23, 0.0 }
 0x1bd   : > { %v1869_v54 = vsel %vm853_vm5, %v1835_v44, 0.0 }
 0x1be   : > { %v1618_v8 = vpop.f32.mrb[8].mxu0 }
 0x1bf   : > { %v3823_v62 = vadd.f32 %v1618_v8, %v3737_v47  ;;  %v1620_v21 = vpop.f32.mrb[9].mxu0  ;;  %v1833_v47 = vmul.f32 %v3802_v10, %v3802_v10 }
 0x1c0   : > { %v1621_v28 = vpop.f32.mrb[10].mxu0 }
 0x1c1   : > { %v3826_v45 = vadd.f32 %v1621_v28, %v3739_v40  ;;  %v1623_v46 = vpop.f32.mrb[11].mxu0  ;;  %v1836_v27 = vmul.f32 %v3823_v62, %v3823_v62  ;;  %v1768_v22 = vsel %vm853_vm5, %v3823_v62, 0.0 }
 0x1c3   : > { %v1871_v33 = vsel %vm853_vm5, %v1836_v27, 0.0  ;;  %v1837_v8 = vmul.f32 %v3826_v45, %v3826_v45  ;;  %v1770_v28 = vsel %vm853_vm5, %v3826_v45, 0.0 }
 0x1c6   : > { %v1626_v38 = vpop.f32.mrb[12].mxu0 }
 0x1c7   : > { %v3829_v11 = vadd.f32 %v1626_v38, %v3741_v4  ;;  %v1628_v26 = vpop.f32.mrb[13].mxu0  ;;  %v1762_v4 = vsel %vm853_vm5, %v3802_v10, 0.0 }
 0x1c8   : > { %v1629_v41 = vpop.f32.mrb[14].mxu0  ;;  %v1763_v58 = vadd.f32 %v1762_v4, %v1761_v61 }
 0x1c9   : > { %v3832_v52 = vadd.f32 %v1629_v41, %v3743_v31  ;;  %v1631_v24 = vpop.f32.mrb[15].mxu0  ;;  %v1834_v31 = vmul.f32 %v3813_v17, %v3813_v17  ;;  %v1838_v46 = vmul.f32 %v3829_v11, %v3829_v11  ;;  %v1772_v41 = vsel %vm853_vm5, %v3829_v11, 0.0 }
 0x1cb   : > { %v1867_v19 = vsel %vm853_vm5, %v1834_v31, 0.0  ;;  %v1839_v7 = vmul.f32 %v3832_v52, %v3832_v52 }
 0x1ce   : > { %v1634_v59 = vpop.f32.mrb[16].mxu0 }
 0x1cf   : > { %v3837_v0 = vadd.f32 %v1634_v59, %v3745_v55  ;;  %v1636_v40 = vpop.f32.mrb[17].mxu0  ;;  %v1865_v55 = vsel %vm853_vm5, %v1833_v47, 0.0 }
 0x1d0   : > { %v1637_v15 = vpop.f32.mrb[18].mxu0  ;;  %v1866_v37 = vadd.f32 %v1865_v55, %v1864_v3  ;;  %v1774_v55 = vsel %vm853_vm5, %v3832_v52, 0.0 }
 0x1d1   : > { %v3846_v35 = vadd.f32 %v1637_v15, %v3747_v49  ;;  %v1639_v30 = vpop.f32.mrb[19].mxu0  ;;  %v1765_v49 = vadd.f32 %v1764_v13, %v1763_v58  ;;  %v1875_v15 = vsel %vm853_vm5, %v1838_v46, 0.0  ;;  %v1877_v58 = vsel %vm853_vm5, %v1839_v7, 0.0 }
 0x1d2   : > { %v1868_v56 = vadd.f32 %v1867_v19, %v1866_v37  ;;  %v1776_v3 = vsel %vm853_vm5, %v3837_v0, 0.0 }
 0x1d3   : > { %v1767_v29 = vadd.f32 %v1766_v36, %v1765_v49  ;;  %v1841_v49 = vmul.f32 %v3846_v35, %v3846_v35 }
 0x1d5   : > { %v1769_v21 = vadd.f32 %v1768_v22, %v1767_v29  ;;  %v1778_v22 = vsel %vm853_vm5, %v3846_v35, 0.0 }
 0x1d6   : > { %v1642_v57 = vpop.f32.mrb[20].mxu0 }
 0x1d7   : > { %v3862_v39 = vadd.f32 %v1642_v57, %v3749_v32  ;;  %v1644_v18 = vpop.f32.mrb[21].mxu0  ;;  %v1870_v32 = vadd.f32 %v1869_v54, %v1868_v56  ;;  %v1771_v47 = vadd.f32 %v1770_v28, %v1769_v21 }
 0x1d8   : > { %v1645_v5 = vpop.f32.mrb[22].mxu0 }
 0x1d9   : > { %v3868_v63 = vadd.f32 %v1645_v5, %v3760_v42  ;;  %v1647_v43 = vpop.f32.mrb[23].mxu0  ;;  %v1872_v38 = vadd.f32 %v1871_v33, %v1870_v32  ;;  %v1873_v42 = vsel %vm853_vm5, %v1837_v8, 0.0  ;;  %v1773_v61 = vadd.f32 %v1772_v41, %v1771_v47 }
 0x1da   : > { %v1842_v43 = vmul.f32 %v3862_v39, %v3862_v39  ;;  %v1881_v32 = vsel %vm853_vm5, %v1841_v49, 0.0  ;;  %v1780_v21 = vsel %vm853_vm5, %v3862_v39, 0.0 }
 0x1db   : > { %v1874_v30 = vadd.f32 %v1873_v42, %v1872_v38  ;;  %v1775_v19 = vadd.f32 %v1774_v55, %v1773_v61  ;;  %v1843_v38 = vmul.f32 %v3868_v63, %v3868_v63 }
 0x1dc   : > { %v1883_v46 = vsel %vm853_vm5, %v1842_v43, 0.0 }
 0x1dd   : > { %v1876_v13 = vadd.f32 %v1875_v15, %v1874_v30  ;;  %v1777_v56 = vadd.f32 %v1776_v3, %v1775_v19  ;;  %v1885_v55 = vsel %vm853_vm5, %v1843_v38, 0.0 }
 0x1de   : > { %v1650_v26 = vpop.f32.mrb[24].mxu0 }
 0x1df   : > { %v3881_v24 = vadd.f32 %v1650_v26, %v3764_v48  ;;  %v1652_v59 = vpop.f32.mrb[25].mxu0  ;;  %v1840_v48 = vmul.f32 %v3837_v0, %v3837_v0  ;;  %v1878_v18 = vadd.f32 %v1877_v58, %v1876_v13  ;;  %v1779_v28 = vadd.f32 %v1778_v22, %v1777_v56 }
 0x1e0   : > { %v1653_v40 = vpop.f32.mrb[26].mxu0  ;;  %v1782_v59 = vsel %vm853_vm5, %v3868_v63, 0.0 }
 0x1e1   : > { %v3887_v4 = vadd.f32 %v1653_v40, %v3766_v34  ;;  %v1655_v31 = vpop.f32.mrb[27].mxu0  ;;  %v1879_v37 = vsel %vm853_vm5, %v1840_v48, 0.0  ;;  %v1781_v42 = vadd.f32 %v1780_v21, %v1779_v28  ;;  %v1844_v47 = vmul.f32 %v3881_v24, %v3881_v24 }
 0x1e2   : > { %v1784_v48 = vsel %vm853_vm5, %v3881_v24, 0.0 }
 0x1e3   : > { %v1783_v19 = vadd.f32 %v1782_v59, %v1781_v42 }
 0x1e5   : > { %v1785_v49 = vadd.f32 %v1784_v48, %v1783_v19 }
 0x1e6   : > { %v3896_v44 = vpop.f32.mrb[40].mxu1  ;;  %v1658_v34 = vpop.f32.mrb[28].mxu0 }
 0x1e7   : > { %v3902_v57 = vadd.f32 %v1658_v34, %v3768_v12  ;;  %v1426_v36 = vpop.f32.mrb[41].mxu1  ;;  %v1660_v27 = vpop.f32.mrb[29].mxu0  ;;  %v1880_v12 = vadd.f32 %v1879_v37, %v1878_v18  ;;  %v1845_v34 = vmul.f32 %v3887_v4, %v3887_v4 }
 0x1e8   : > { %v3904_v5 = vpop.f32.mrb[42].mxu1  ;;  %v1661_v54 = vpop.f32.mrb[30].mxu0  ;;  %v1786_v36 = vsel %vm853_vm5, %v3887_v4, 0.0 }
 0x1e9   : > { %v3911_v29 = vadd.f32 %v1661_v54, %v3778_v9  ;;  %v1429_v33 = vpop.f32.mrb[43].mxu1  ;;  %v1663_v8 = vpop.f32.mrb[31].mxu0  ;;  %v1882_v26 = vadd.f32 %v1881_v32, %v1880_v12  ;;  %v1846_v27 = vmul.f32 %v3902_v57, %v3902_v57  ;;  %v1889_v54 = vsel %vm853_vm5, %v1845_v34, 0.0 }
 0x1ea   : > { %v1788_v22 = vsel %vm853_vm5, %v3902_v57, 0.0  ;;  %v1787_v12 = vadd.f32 %v1786_v36, %v1785_v49 }
 0x1eb   : > { %v1884_v31 = vadd.f32 %v1883_v46, %v1882_v26  ;;  %v1891_v28 = vsel %vm853_vm5, %v1846_v27, 0.0  ;;  %v1847_v46 = vmul.f32 %v3911_v29, %v3911_v29 }
 0x1ec   : > { %v1789_v59 = vadd.f32 %v1788_v22, %v1787_v12 }
 0x1ed   : > { %v1886_v37 = vadd.f32 %v1885_v55, %v1884_v31 }
 0x1ee   : > { %v3919_v41 = vpop.f32.mrb[44].mxu1  ;;  %v1666_v9 = vpop.f32.mrb[32].mxu0 }
 0x1ef   : > { %v3926_v40 = vadd.f32 %v1666_v9, %v3782_v20  ;;  %v1434_v15 = vpop.f32.mrb[45].mxu1  ;;  %v1668_v7 = vpop.f32.mrb[33].mxu0  ;;  %v1887_v20 = vsel %vm853_vm5, %v1844_v47, 0.0 }
 0x1f0   : > { %v3928_v30 = vpop.f32.mrb[46].mxu1  ;;  %v1669_v61 = vpop.f32.mrb[34].mxu0  ;;  %v1888_v18 = vadd.f32 %v1887_v20, %v1886_v37  ;;  %v1893_v7 = vsel %vm853_vm5, %v1847_v46, 0.0 }
 0x1f1   : > { %v3934_v13 = vadd.f32 %v1669_v61, %v3792_v16  ;;  %v1437_v58 = vpop.f32.mrb[47].mxu1  ;;  %v1671_v3 = vpop.f32.mrb[35].mxu0  ;;  %v1848_v47 = vmul.f32 %v3926_v40, %v3926_v40  ;;  %v1792_v31 = vsel %vm853_vm5, %v3926_v40, 0.0 }
 0x1f2   : > { %v1890_v9 = vadd.f32 %v1889_v54, %v1888_v18 }
 0x1f3   : > { %v1895_v48 = vsel %vm853_vm5, %v1848_v47, 0.0  ;;  %v1849_v58 = vmul.f32 %v3934_v13, %v3934_v13  ;;  %v1794_v27 = vsel %vm853_vm5, %v3934_v13, 0.0 }
 0x1f4   : > { %v1892_v15 = vadd.f32 %v1891_v28, %v1890_v9 }
 0x1f6   : > { %v3943_v56 = vpop.f32.mrb[48].mxu1  ;;  %v1674_v16 = vpop.f32.mrb[36].mxu0  ;;  %v1894_v34 = vadd.f32 %v1893_v7, %v1892_v15 }
 0x1f7   : > { %v3949_v43 = vadd.f32 %v1674_v16, %v3796_v6  ;;  %v1442_v33 = vpop.f32.mrb[49].mxu1  ;;  %v1676_v8 = vpop.f32.mrb[37].mxu0  ;;  %v1790_v6 = vsel %vm853_vm5, %v3911_v29, 0.0 }
 0x1f8   : > { %v3951_v32 = vpop.f32.mrb[50].mxu1  ;;  %v1677_v21 = vpop.f32.mrb[38].mxu0  ;;  %v1791_v61 = vadd.f32 %v1790_v6, %v1789_v59  ;;  %v1897_v33 = vsel %vm853_vm5, %v1849_v58, 0.0 }
 0x1f9   : > { %v3957_v38 = vadd.f32 %v1677_v21, %v3800_v53  ;;  %v1445_v26 = vpop.f32.mrb[51].mxu1  ;;  %v1679_v42 = vpop.f32.mrb[39].mxu0  ;;  %v1850_v18 = vmul.f32 %v3949_v43, %v3949_v43  ;;  %v1796_v8 = vsel %vm853_vm5, %v3949_v43, 0.0 }
 0x1fa   : > { %v1793_v37 = vadd.f32 %v1792_v31, %v1791_v61 }
 0x1fb   : > { %v1899_v21 = vsel %vm853_vm5, %v1850_v18, 0.0  ;;  %v1851_v28 = vmul.f32 %v3957_v38, %v3957_v38  ;;  %v1798_v9 = vsel %vm853_vm5, %v3957_v38, 0.0 }
 0x1fc   : > { %v1795_v12 = vadd.f32 %v1794_v27, %v1793_v37 }
 0x1fe   : > { %v3966_v55 = vpop.f32.mrb[52].mxu1  ;;  %v1682_v53 = vpop.f32.mrb[40].mxu0  ;;  %v1797_v26 = vadd.f32 %v1796_v8, %v1795_v12 }
 0x1ff   : > { %v3972_v3 = vadd.f32 %v1682_v53, %v3896_v44  ;;  %v1450_v19 = vpop.f32.mrb[53].mxu1  ;;  %v1684_v20 = vpop.f32.mrb[41].mxu0  ;;  %v1896_v44 = vadd.f32 %v1895_v48, %v1894_v34  ;;  %v1901_v53 = vsel %vm853_vm5, %v1851_v28, 0.0 }
 0x200   : > { %v3974_v49 = vpop.f32.mrb[54].mxu1  ;;  %v1685_v36 = vpop.f32.mrb[42].mxu0  ;;  %v1799_v34 = vadd.f32 %v1798_v9, %v1797_v26 }
 0x201   : > { %v3981_v16 = vadd.f32 %v1685_v36, %v3904_v5  ;;  %v1453_v54 = vpop.f32.mrb[55].mxu1  ;;  %v1687_v22 = vpop.f32.mrb[43].mxu0  ;;  %v1898_v46 = vadd.f32 %v1897_v33, %v1896_v44  ;;  %v1852_v59 = vmul.f32 %v3972_v3, %v3972_v3  ;;  %v1800_v48 = vsel %vm853_vm5, %v3972_v3, 0.0 }
 0x202   : > { %v1801_v27 = vadd.f32 %v1800_v48, %v1799_v34 }
 0x203   : > { %v1900_v7 = vadd.f32 %v1899_v21, %v1898_v46  ;;  %v1853_v37 = vmul.f32 %v3981_v16, %v3981_v16  ;;  %v1802_v18 = vsel %vm853_vm5, %v3981_v16, 0.0 }
 0x204   : > { %v1803_v46 = vadd.f32 %v1802_v18, %v1801_v27 }
 0x205   : > { %v1902_v36 = vadd.f32 %v1901_v53, %v1900_v7  ;;  %v1905_v33 = vsel %vm853_vm5, %v1853_v37, 0.0 }
 0x206   : > { %v3989_v42 = vpop.f32.mrb[56].mxu1  ;;  %v1690_v5 = vpop.f32.mrb[44].mxu0 }
 0x207   : > { %v3996_v6 = vadd.f32 %v1690_v5, %v3919_v41  ;;  %v1458_v47 = vpop.f32.mrb[57].mxu1  ;;  %v1692_v15 = vpop.f32.mrb[45].mxu0  ;;  %v1903_v41 = vsel %vm853_vm5, %v1852_v59, 0.0 }
 0x208   : > { %v3998_v31 = vpop.f32.mrb[58].mxu1  ;;  %v1693_v61 = vpop.f32.mrb[46].mxu0  ;;  %v1904_v22 = vadd.f32 %v1903_v41, %v1902_v36 }
 0x209   : > { %v4004_v58 = vadd.f32 %v1693_v61, %v3928_v30  ;;  %v1461_v19 = vpop.f32.mrb[59].mxu1  ;;  %v1695_v20 = vpop.f32.mrb[47].mxu0  ;;  %v1854_v54 = vmul.f32 %v3996_v6, %v3996_v6  ;;  %v1804_v8 = vsel %vm853_vm5, %v3996_v6, 0.0 }
 0x20a   : > { %v1906_v61 = vadd.f32 %v1905_v33, %v1904_v22  ;;  %v1805_v53 = vadd.f32 %v1804_v8, %v1803_v46 }
 0x20b   : > { %v1907_v9 = vsel %vm853_vm5, %v1854_v54, 0.0  ;;  %v1855_v59 = vmul.f32 %v4004_v58, %v4004_v58 }
 0x20c   : > { %v1908_v19 = vadd.f32 %v1907_v9, %v1906_v61 }
 0x20d   : > { %v1909_v20 = vsel %vm853_vm5, %v1855_v59, 0.0 }
 0x20e   : > { %v4013_v44 = vpop.f32.mrb[60].mxu1  ;;  %v1698_v30 = vpop.f32.mrb[48].mxu0  ;;  %v1910_v54 = vadd.f32 %v1909_v20, %v1908_v19 }
 0x20f   : > { %v4019_v12 = vadd.f32 %v1698_v30, %v3943_v56  ;;  %v1466_v21 = vpop.f32.mrb[61].mxu1  ;;  %v1700_v28 = vpop.f32.mrb[49].mxu0  ;;  %v1806_v56 = vsel %vm853_vm5, %v4004_v58, 0.0 }
 0x210   : > { %v1467_v26 = vpop.f32.mrb[62].mxu1  ;;  %v1701_v5 = vpop.f32.mrb[50].mxu0  ;;  %v1807_v41 = vadd.f32 %v1806_v56, %v1805_v53 }
 0x211   : > { %v4025_v47 = vadd.f32 %v1701_v5, %v3951_v32  ;;  %v1469_v15 = vpop.f32.mrb[63].mxu1  ;;  %v1703_v7 = vpop.f32.mrb[51].mxu0  ;;  %v1856_v48 = vmul.f32 %v4019_v12, %v4019_v12  ;;  %v1808_v34 = vsel %vm853_vm5, %v4019_v12, 0.0 }
 0x212   : > { %v1809_v22 = vadd.f32 %v1808_v34, %v1807_v41 }
 0x213   : > { %v1911_v32 = vsel %vm853_vm5, %v1856_v48, 0.0  ;;  %v1857_v36 = vmul.f32 %v4025_v47, %v4025_v47  ;;  %v1810_v33 = vsel %vm853_vm5, %v4025_v47, 0.0 }
 0x214   : > { %v1912_v46 = vadd.f32 %v1911_v32, %v1910_v54  ;;  %v1811_v9 = vadd.f32 %v1810_v33, %v1809_v22 }
 0x215   : > { %v1913_v5 = vsel %vm853_vm5, %v1857_v36, 0.0 }
 0x216   : > { %v1706_v37 = vpop.f32.mrb[52].mxu0  ;;  %v1914_v7 = vadd.f32 %v1913_v5, %v1912_v46 }
 0x217   : > { %v4038_v27 = vadd.f32 %v1706_v37, %v3966_v55  ;;  %v1708_v18 = vpop.f32.mrb[53].mxu0 }
 0x218   : > { %v1709_v30 = vpop.f32.mrb[54].mxu0 }
 0x219   : > { %v1858_v8 = vmul.f32 %v4038_v27, %v4038_v27  ;;  %v4045_v21 = vadd.f32 %v1709_v30, %v3974_v49  ;;  %v1711_v28 = vpop.f32.mrb[55].mxu0  ;;  %v1812_v55 = vsel %vm853_vm5, %v4038_v27, 0.0 }
 0x21a   : > { %v1813_v61 = vadd.f32 %v1812_v55, %v1811_v9 }
 0x21b   : > { %v1915_v59 = vsel %vm853_vm5, %v1858_v8, 0.0  ;;  %v1859_v15 = vmul.f32 %v4045_v21, %v4045_v21  ;;  %v1814_v49 = vsel %vm853_vm5, %v4045_v21, 0.0 }
 0x21c   : > { %v1916_v19 = vadd.f32 %v1915_v59, %v1914_v7  ;;  %v1815_v18 = vadd.f32 %v1814_v49, %v1813_v61 }
 0x21d   : > { %v1917_v34 = vsel %vm853_vm5, %v1859_v15, 0.0 }
 0x21e   : > { %v1714_v53 = vpop.f32.mrb[56].mxu0  ;;  %v1918_v22 = vadd.f32 %v1917_v34, %v1916_v19 }
 0x21f   : > { %v4056_v56 = vadd.f32 %v1714_v53, %v3989_v42  ;;  %v1716_v48 = vpop.f32.mrb[57].mxu0 }
 0x220   : > { %v1717_v20 = vpop.f32.mrb[58].mxu0 }
 0x221   : > { %v1816_v41 = vsel %vm853_vm5, %v4056_v56, 0.0  ;;  %v1860_v37 = vmul.f32 %v4056_v56, %v4056_v56  ;;  %v4064_v32 = vadd.f32 %v1717_v20, %v3998_v31  ;;  %v1719_v36 = vpop.f32.mrb[59].mxu0 }
 0x222   : > { %v1817_v30 = vadd.f32 %v1816_v41, %v1815_v18 }
 0x223   : > { %v1919_v54 = vsel %vm853_vm5, %v1860_v37, 0.0  ;;  %v1861_v42 = vmul.f32 %v4064_v32, %v4064_v32  ;;  %v1818_v33 = vsel %vm853_vm5, %v4064_v32, 0.0 }
 0x224   : > { %v1920_v8 = vadd.f32 %v1919_v54, %v1918_v22  ;;  %v1819_v55 = vadd.f32 %v1818_v33, %v1817_v30 }
 0x225   : > { %v1921_v46 = vsel %vm853_vm5, %v1861_v42, 0.0 }
 0x226   : > { %v1722_v28 = vpop.f32.mrb[60].mxu0  ;;  %v1922_v53 = vadd.f32 %v1921_v46, %v1920_v8 }
 0x227   : > { %v4073_v5 = vadd.f32 %v1722_v28, %v4013_v44  ;;  %v1724_v31 = vpop.f32.mrb[61].mxu0 }
 0x228   : > { %v1725_v9 = vpop.f32.mrb[62].mxu0 }
 0x229   : > { %v1820_v59 = vsel %vm853_vm5, %v4073_v5, 0.0  ;;  %v1862_v15 = vmul.f32 %v4073_v5, %v4073_v5  ;;  %v4079_v7 = vadd.f32 %v1725_v9, %v1467_v26  ;;  %v1727_v61 = vpop.f32.mrb[63].mxu0 }
 0x22a   : > { %v1821_v49 = vadd.f32 %v1820_v59, %v1819_v55  ;;  %v2091_v59 = vlaneseq }
 0x22b   : > { %v1923_v48 = vsel %vm853_vm5, %v1862_v15, 0.0  ;;  %v1822_v44 = vsel %vm853_vm5, %v4079_v7, 0.0  ;;  %v1863_v19 = vmul.f32 %v4079_v7, %v4079_v7 }
 0x22c   : > { %v1924_v20 = vadd.f32 %v1923_v48, %v1922_v53  ;;  %v1823_v34 = vadd.f32 %v1822_v44, %v1821_v49  ;;  %v2092_v61 = vshrl.u32 %v2091_v59, 7 }
 0x22d   : > { %v1925_v41 = vsel %vm853_vm5, %v1863_v19, 0.0 }
 0x22e   : > { %v1824_v37 = vrot.slane %v1823_v34, 4  ;;  %v1926_v36 = vadd.f32 %v1925_v41, %v1924_v20  ;;  %v2093_v48 = vsub.s32 0, %v2092_v61 }
 0x230   : > { %v1825_v18 = vadd.f32 %v1824_v37, %v1823_v34  ;;  %v1927_v54 = vrot.slane %v1926_v36, 4 }
 0x232   : > { %v1826_v26 = vrot.slane %v1825_v18, 2  ;;  %v1928_v30 = vadd.f32 %v1927_v54, %v1926_v36 }
 0x234   : > { %v1827_v42 = vadd.f32 %v1826_v26, %v1825_v18  ;;  %v1929_v28 = vrot.slane %v1928_v30, 2 }
 0x236   : > { %v1828_v22 = vrot.slane %v1827_v42, 1  ;;  %v1930_v46 = vadd.f32 %v1929_v28, %v1928_v30 }
 0x238   : > { %v1829_v33 = vadd.f32 %v1828_v22, %v1827_v42  ;;  %v1931_v31 = vrot.slane %v1930_v46, 1 }
 0x23a   : > { %v1831_v8 = vmul.f32 0.00390625, %v1829_v33  ;;  %v1932_v55 = vadd.f32 %v1931_v31, %v1930_v46 }
 0x23c   : > { %2755 = vmatmul.mubr.msk.f32.vlgmr.msra.gmra.mrb[64].mxu1 %vm853_vm5, %v1831_v8  ;;  %v1933_v9 = vmul.f32 0.00390625, %v1932_v55 }
 0x23d   : > { %2790 = vmatpush3.bf16.msra.mxu1 %v3758_v14  ;;  %2773 = vmatprep.mubr.msk.f32.mxu1 %vm2998_vm6, %v2999_v50 }
 0x23e   : > { %2791 = vmatprep.subr.bf16.mxu1 %v2997_v60 }
 0x241   : > { %2793 = vmatpush3.bf16.msra.mxu1 %v3776_v51 }
 0x242   : > { %2794 = vmatprep.subr.bf16.mxu1 %v2997_v60 }
 0x245   : > { %2796 = vmatpush3.bf16.msra.mxu1 %v3790_v1 }
 0x246   : > { %2797 = vmatprep.subr.bf16.mxu1 %v2997_v60 }
 0x249   : > { %2799 = vmatpush3.bf16.msra.mxu1 %v3810_v2 }
 0x24c   : > { %2774 = vmatmul.mubr.msk.f32.vlgmr.msra.gmra.mrb[66].mxu1 %vm853_vm5, %v1933_v9 }
 0x30f   : > { %v2011_v14 = vpop.f32.mrb[64].mxu1 }
 0x310   : > { %v2756_v50 = vpop.f32.mrb[65].mxu1  ;;  %v2088_v15 = vmul.f32 %v2011_v14, %v2011_v14  ;;  %v4098_v1 = vrot.slane %v2011_v14, %v2093_v48 }
 0x312   : > { %v2095_v60 = vsub.f32 %v3798_v25, %v4098_v1  ;;  %v2096_v2 = vsub.f32 %v3802_v10, %v4098_v1  ;;  %v2097_v20 = vsub.f32 %v3813_v17, %v4098_v1  ;;  %v2098_v34 = vsub.f32 %v3817_v23, %v4098_v1 }
 0x313   : > { %v2099_v41 = vsub.f32 %v3823_v62, %v4098_v1  ;;  %v2100_v37 = vsub.f32 %v3826_v45, %v4098_v1  ;;  %v2101_v36 = vsub.f32 %v3829_v11, %v4098_v1  ;;  %v2102_v25 = vsub.f32 %v3832_v52, %v4098_v1 }
 0x314   : > { %v2103_v10 = vsub.f32 %v3837_v0, %v4098_v1  ;;  %v2104_v17 = vsub.f32 %v3846_v35, %v4098_v1  ;;  %v2105_v23 = vsub.f32 %v3862_v39, %v4098_v1  ;;  %v2106_v62 = vsub.f32 %v3868_v63, %v4098_v1 }
 0x315   : > { %v2107_v45 = vsub.f32 %v3881_v24, %v4098_v1  ;;  %v2108_v11 = vsub.f32 %v3887_v4, %v4098_v1  ;;  %v2109_v52 = vsub.f32 %v3902_v57, %v4098_v1  ;;  %v2110_v0 = vsub.f32 %v3911_v29, %v4098_v1 }
 0x316   : > { %v2111_v35 = vsub.f32 %v3926_v40, %v4098_v1  ;;  %v2112_v39 = vsub.f32 %v3934_v13, %v4098_v1  ;;  %v2113_v63 = vsub.f32 %v3949_v43, %v4098_v1  ;;  %v2114_v24 = vsub.f32 %v3957_v38, %v4098_v1 }
 0x317   : > { %v2115_v4 = vsub.f32 %v3972_v3, %v4098_v1  ;;  %v2116_v57 = vsub.f32 %v3981_v16, %v4098_v1  ;;  %v2117_v29 = vsub.f32 %v3996_v6, %v4098_v1  ;;  %v2118_v40 = vsub.f32 %v4004_v58, %v4098_v1 }
 0x318   : > { %v2119_v13 = vsub.f32 %v4019_v12, %v4098_v1  ;;  %v2120_v43 = vsub.f32 %v4025_v47, %v4098_v1  ;;  %v2121_v38 = vsub.f32 %v4038_v27, %v4098_v1  ;;  %v2122_v3 = vsub.f32 %v4045_v21, %v4098_v1 }
 0x319   : > { %v2123_v16 = vsub.f32 %v4056_v56, %v4098_v1  ;;  %v2124_v6 = vsub.f32 %v4064_v32, %v4098_v1  ;;  %v2125_v58 = vsub.f32 %v4073_v5, %v4098_v1  ;;  %v2126_v12 = vsub.f32 %v4079_v7, %v4098_v1 }
 0x31f   : > { %v2084_v53 = vpop.f32.mrb[66].mxu1 }
 0x320   : > { %v2089_v51 = vsub.f32 %v2084_v53, %v2088_v15  ;;  %v2775_v49 = vpop.f32.mrb[67].mxu1 }
 0x322   : > { %v2090_v44 = vmax.f32 %v2089_v51, 0.0  ;;  %v2650_v51 = vld [vmem:[%s4343_s3] ss:$0 sm:$0xff] }
 0x324   : > { %v2127_v19 = vadd.f32 1e-05, %v2090_v44 }
 0x326   : > { %2985 = vrsqrt.f32 %v2127_v19 }
 0x330   : > { %v2986_v18 = vpop.eup %2985 }
 0x331   : > { %v2132_v26 = vrot.slane %v2986_v18, %v2093_v48 }
 0x333   : > { %v2133_v47 = vmul.f32 %v2132_v26, %v2095_v60  ;;  %v2134_v54 = vmul.f32 %v2132_v26, %v2096_v2  ;;  %v2135_v42 = vmul.f32 %v2132_v26, %v2097_v20  ;;  %v2136_v27 = vmul.f32 %v2132_v26, %v2098_v34 }
 0x334   : > { %v2137_v22 = vmul.f32 %v2132_v26, %v2099_v41  ;;  %v2138_v30 = vmul.f32 %v2132_v26, %v2100_v37  ;;  %v2139_v21 = vmul.f32 %v2132_v26, %v2101_v36  ;;  %v2140_v33 = vmul.f32 %v2132_v26, %v2102_v25 }
 0x335   : > { %v2141_v8 = vmul.f32 %v2132_v26, %v2103_v10  ;;  %v2142_v28 = vmul.f32 %v2132_v26, %v2104_v17  ;;  %v2143_v56 = vmul.f32 %v2132_v26, %v2105_v23  ;;  %v2144_v46 = vmul.f32 %v2132_v26, %v2106_v62 }
 0x336   : > { %v2145_v31 = vmul.f32 %v2132_v26, %v2107_v45  ;;  %v2146_v32 = vmul.f32 %v2132_v26, %v2108_v11  ;;  %v2147_v55 = vmul.f32 %v2132_v26, %v2109_v52  ;;  %v2148_v9 = vmul.f32 %v2132_v26, %v2110_v0 }
 0x337   : > { %v2149_v5 = vmul.f32 %v2132_v26, %v2111_v35  ;;  %v2150_v14 = vmul.f32 %v2132_v26, %v2112_v39  ;;  %v2151_v50 = vmul.f32 %v2132_v26, %v2113_v63  ;;  %v2152_v7 = vmul.f32 %v2132_v26, %v2114_v24 }
 0x338   : > { %v2153_v59 = vmul.f32 %v2132_v26, %v2115_v4  ;;  %v2154_v15 = vmul.f32 %v2132_v26, %v2116_v57  ;;  %v2155_v61 = vmul.f32 %v2132_v26, %v2117_v29  ;;  %v2156_v53 = vmul.f32 %v2132_v26, %v2118_v40 }
 0x339   : > { %v2157_v49 = vmul.f32 %v2132_v26, %v2119_v13  ;;  %v2158_v48 = vmul.f32 %v2132_v26, %v2120_v43  ;;  %v2159_v44 = vmul.f32 %v2132_v26, %v2121_v38  ;;  %v2160_v19 = vmul.f32 %v2132_v26, %v2122_v3  ;;  %v2651_v38 = vld [vmem:[%s4344_s4] ss:$0 sm:$0xff] }
 0x33a   : > { %v2161_v1 = vmul.f32 %v2132_v26, %v2123_v16  ;;  %v2162_v60 = vmul.f32 %v2132_v26, %v2124_v6  ;;  %v2163_v2 = vmul.f32 %v2132_v26, %v2125_v58  ;;  %v2164_v20 = vmul.f32 %v2132_v26, %v2126_v12 }
 0x33b   : > { %v2172_v34 = vmul.f32 %v2650_v51, %v2133_v47  ;;  %v2173_v41 = vmul.f32 %v2650_v51, %v2134_v54  ;;  %v2174_v37 = vmul.f32 %v2650_v51, %v2135_v42  ;;  %v2175_v36 = vmul.f32 %v2650_v51, %v2136_v27 }
 0x33c   : > { %v2176_v25 = vmul.f32 %v2650_v51, %v2137_v22  ;;  %v2177_v10 = vmul.f32 %v2650_v51, %v2138_v30  ;;  %v2178_v17 = vmul.f32 %v2650_v51, %v2139_v21  ;;  %v2179_v23 = vmul.f32 %v2650_v51, %v2140_v33 }
 0x33d   : > { %v2180_v62 = vmul.f32 %v2650_v51, %v2141_v8  ;;  %v2181_v45 = vmul.f32 %v2650_v51, %v2142_v28  ;;  %v2182_v11 = vmul.f32 %v2650_v51, %v2143_v56  ;;  %v2183_v52 = vmul.f32 %v2650_v51, %v2144_v46 }
 0x33e   : > { %v2184_v0 = vmul.f32 %v2650_v51, %v2145_v31  ;;  %v2185_v35 = vmul.f32 %v2650_v51, %v2146_v32  ;;  %v2186_v39 = vmul.f32 %v2650_v51, %v2147_v55  ;;  %v2187_v63 = vmul.f32 %v2650_v51, %v2148_v9 }
 0x33f   : > { %v2188_v24 = vmul.f32 %v2650_v51, %v2149_v5  ;;  %v2189_v4 = vmul.f32 %v2650_v51, %v2150_v14  ;;  %v2190_v18 = vmul.f32 %v2650_v51, %v2151_v50  ;;  %v2191_v57 = vmul.f32 %v2650_v51, %v2152_v7 }
 0x340   : > { %v2192_v29 = vmul.f32 %v2650_v51, %v2153_v59  ;;  %v2193_v40 = vmul.f32 %v2650_v51, %v2154_v15  ;;  %v2194_v13 = vmul.f32 %v2650_v51, %v2155_v61  ;;  %v2195_v43 = vmul.f32 %v2650_v51, %v2156_v53 }
 0x341   : > { %v2196_v3 = vmul.f32 %v2650_v51, %v2157_v49  ;;  %v2197_v26 = vmul.f32 %v2650_v51, %v2158_v48  ;;  %v2198_v16 = vmul.f32 %v2650_v51, %v2159_v44  ;;  %v2199_v6 = vmul.f32 %v2650_v51, %v2160_v19 }
 0x342   : > { %v2200_v58 = vmul.f32 %v2650_v51, %v2161_v1  ;;  %v2201_v12 = vmul.f32 %v2650_v51, %v2162_v60  ;;  %v2202_v47 = vmul.f32 %v2650_v51, %v2163_v2  ;;  %v2203_v54 = vmul.f32 %v2650_v51, %v2164_v20 }
 0x343   : > { %v4170_v42 = vadd.f32 %v2651_v38, %v2172_v34  ;;  %v4172_v27 = vadd.f32 %v2651_v38, %v2173_v41  ;;  %v4174_v22 = vadd.f32 %v2651_v38, %v2174_v37  ;;  %v4176_v30 = vadd.f32 %v2651_v38, %v2175_v36 }
 0x344   : > { %v4178_v21 = vadd.f32 %v2651_v38, %v2176_v25  ;;  %v4180_v33 = vadd.f32 %v2651_v38, %v2177_v10  ;;  %v4182_v8 = vadd.f32 %v2651_v38, %v2178_v17  ;;  %v4184_v28 = vadd.f32 %v2651_v38, %v2179_v23 }
 0x345   : > { %v4186_v56 = vadd.f32 %v2651_v38, %v2180_v62  ;;  %v4188_v46 = vadd.f32 %v2651_v38, %v2181_v45  ;;  %v4190_v31 = vadd.f32 %v2651_v38, %v2182_v11  ;;  %v4192_v32 = vadd.f32 %v2651_v38, %v2183_v52 }
 0x346   : > { %v4194_v55 = vadd.f32 %v2651_v38, %v2184_v0  ;;  %v4196_v9 = vadd.f32 %v2651_v38, %v2185_v35  ;;  %v4198_v5 = vadd.f32 %v2651_v38, %v2186_v39  ;;  %v4200_v14 = vadd.f32 %v2651_v38, %v2187_v63 }
 0x347   : > { %v4202_v50 = vadd.f32 %v2651_v38, %v2188_v24  ;;  %v4204_v7 = vadd.f32 %v2651_v38, %v2189_v4  ;;  %v4206_v59 = vadd.f32 %v2651_v38, %v2190_v18  ;;  %v4208_v15 = vadd.f32 %v2651_v38, %v2191_v57 }
 0x348   : > { %v4210_v61 = vadd.f32 %v2651_v38, %v2192_v29  ;;  %v4212_v53 = vadd.f32 %v2651_v38, %v2193_v40  ;;  %v4214_v51 = vadd.f32 %v2651_v38, %v2194_v13  ;;  %v4216_v49 = vadd.f32 %v2651_v38, %v2195_v43 }
 0x349   : > { %v4218_v48 = vadd.f32 %v2651_v38, %v2196_v3  ;;  %v4220_v44 = vadd.f32 %v2651_v38, %v2197_v26  ;;  %v4222_v19 = vadd.f32 %v2651_v38, %v2198_v16  ;;  %v4224_v1 = vadd.f32 %v2651_v38, %v2199_v6 }
 0x34a   : > { %v4226_v60 = vadd.f32 %v2651_v38, %v2200_v58  ;;  %v4228_v2 = vadd.f32 %v2651_v38, %v2201_v12  ;;  %v4230_v20 = vadd.f32 %v2651_v38, %v2202_v47  ;;  %v4232_v34 = vadd.f32 %v2651_v38, %v2203_v54 }
 0x34b   : > { %v2243_v41 = vmax.f32 %v4170_v42, 0.0  ;;  %v2244_v37 = vmax.f32 %v4172_v27, 0.0  ;;  %v2245_v36 = vmax.f32 %v4174_v22, 0.0  ;;  %v2246_v25 = vmax.f32 %v4176_v30, 0.0 }
 0x34c   : > { %v2247_v10 = vmax.f32 %v4178_v21, 0.0  ;;  %v2248_v17 = vmax.f32 %v4180_v33, 0.0  ;;  %v2249_v23 = vmax.f32 %v4182_v8, 0.0  ;;  %v2250_v62 = vmax.f32 %v4184_v28, 0.0 }
 0x34d   : > { %v2251_v45 = vmax.f32 %v4186_v56, 0.0  ;;  %v2252_v11 = vmax.f32 %v4188_v46, 0.0  ;;  %v2253_v52 = vmax.f32 %v4190_v31, 0.0  ;;  %v2254_v0 = vmax.f32 %v4192_v32, 0.0 }
 0x34e   : > { %v2255_v35 = vmax.f32 %v4194_v55, 0.0  ;;  %v2256_v39 = vmax.f32 %v4196_v9, 0.0  ;;  %v2257_v63 = vmax.f32 %v4198_v5, 0.0  ;;  %v2258_v24 = vmax.f32 %v4200_v14, 0.0 }
 0x34f   : > { %v2259_v4 = vmax.f32 %v4202_v50, 0.0  ;;  %v2260_v18 = vmax.f32 %v4204_v7, 0.0  ;;  %v2261_v57 = vmax.f32 %v4206_v59, 0.0  ;;  %v2262_v29 = vmax.f32 %v4208_v15, 0.0 }
 0x350   : > { %v2263_v40 = vmax.f32 %v4210_v61, 0.0  ;;  %v2264_v13 = vmax.f32 %v4212_v53, 0.0  ;;  %v2265_v43 = vmax.f32 %v4214_v51, 0.0  ;;  %v2266_v38 = vmax.f32 %v4216_v49, 0.0 }
 0x351   : > { %v2267_v3 = vmax.f32 %v4218_v48, 0.0  ;;  %v2268_v26 = vmax.f32 %v4220_v44, 0.0  ;;  %v2269_v16 = vmax.f32 %v4222_v19, 0.0  ;;  %v2270_v6 = vmax.f32 %v4224_v1, 0.0 }
 0x352   : > { %v2271_v58 = vmax.f32 %v4226_v60, 0.0  ;;  %v2272_v12 = vmax.f32 %v4228_v2, 0.0  ;;  %v2273_v47 = vmax.f32 %v4230_v20, 0.0  ;;  %v2274_v54 = vmax.f32 %v4232_v34, 0.0 }
 0x353   : > { %v2688_v42 = vpack.c.bf16 %v2243_v41, %v2243_v41  ;;  %v2689_v27 = vpack.c.bf16 %v2244_v37, %v2244_v37  ;;  %v2690_v22 = vpack.c.bf16 %v2245_v36, %v2245_v36  ;;  %v2691_v30 = vpack.c.bf16 %v2246_v25, %v2246_v25 }
 0x354   : > { %v2692_v21 = vpack.c.bf16 %v2247_v10, %v2247_v10  ;;  %v2693_v33 = vpack.c.bf16 %v2248_v17, %v2248_v17  ;;  %v2694_v8 = vpack.c.bf16 %v2249_v23, %v2249_v23  ;;  %v2695_v28 = vpack.c.bf16 %v2250_v62, %v2250_v62 }
 0x355   : > { %v2696_v56 = vpack.c.bf16 %v2251_v45, %v2251_v45  ;;  %v2697_v46 = vpack.c.bf16 %v2252_v11, %v2252_v11  ;;  %v2698_v31 = vpack.c.bf16 %v2253_v52, %v2253_v52  ;;  %v2699_v32 = vpack.c.bf16 %v2254_v0, %v2254_v0  ;;  %2404 = vst.msk [vmem:[%s4267_s9] sm:$0xf] %vm2403_vm7, %v2688_v42 }
 0x356   : > { %2405 = vst.msk [vmem:[%s4267_s9 + $0x4] sm:$0xf] %vm2403_vm7, %v2689_v27  ;;  %2406 = vst.msk [vmem:[%s4267_s9 + $0x8] sm:$0xf] %vm2403_vm7, %v2690_v22  ;;  %v2700_v55 = vpack.c.bf16 %v2255_v35, %v2255_v35  ;;  %v2701_v9 = vpack.c.bf16 %v2256_v39, %v2256_v39  ;;  %v2702_v5 = vpack.c.bf16 %v2257_v63, %v2257_v63 }
 0x357   : > { %2407 = vst.msk [vmem:[%s4267_s9 + $0xc] sm:$0xf] %vm2403_vm7, %v2691_v30  ;;  %v2703_v14 = vpack.c.bf16 %v2258_v24, %v2258_v24  ;;  %2408 = vst.msk [vmem:[%s4267_s9 + $0x10] sm:$0xf] %vm2403_vm7, %v2692_v21  ;;  %v2704_v50 = vpack.c.bf16 %v2259_v4, %v2259_v4  ;;  %v2705_v7 = vpack.c.bf16 %v2260_v18, %v2260_v18 }
 0x358   : > { %2409 = vst.msk [vmem:[%s4267_s9 + $0x14] sm:$0xf] %vm2403_vm7, %v2693_v33  ;;  %2410 = vst.msk [vmem:[%s4267_s9 + $0x18] sm:$0xf] %vm2403_vm7, %v2694_v8  ;;  %v2706_v59 = vpack.c.bf16 %v2261_v57, %v2261_v57  ;;  %v2707_v15 = vpack.c.bf16 %v2262_v29, %v2262_v29  ;;  %v2708_v61 = vpack.c.bf16 %v2263_v40, %v2263_v40 }
 0x359   : > { %2411 = vst.msk [vmem:[%s4267_s9 + $0x1c] sm:$0xf] %vm2403_vm7, %v2695_v28  ;;  %2412 = vst.msk [vmem:[%s4267_s9 + $0x20] sm:$0xf] %vm2403_vm7, %v2696_v56  ;;  %v2709_v53 = vpack.c.bf16 %v2264_v13, %v2264_v13  ;;  %v2710_v51 = vpack.c.bf16 %v2265_v43, %v2265_v43  ;;  %v2711_v49 = vpack.c.bf16 %v2266_v38, %v2266_v38 }
 0x35a   : > { %2413 = vst.msk [vmem:[%s4267_s9 + $0x24] sm:$0xf] %vm2403_vm7, %v2697_v46  ;;  %2414 = vst.msk [vmem:[%s4267_s9 + $0x28] sm:$0xf] %vm2403_vm7, %v2698_v31  ;;  %v2712_v48 = vpack.c.bf16 %v2267_v3, %v2267_v3  ;;  %v2713_v44 = vpack.c.bf16 %v2268_v26, %v2268_v26  ;;  %v2714_v19 = vpack.c.bf16 %v2269_v16, %v2269_v16 }
 0x35b   : > { %2415 = vst.msk [vmem:[%s4267_s9 + $0x2c] sm:$0xf] %vm2403_vm7, %v2699_v32  ;;  %2416 = vst.msk [vmem:[%s4267_s9 + $0x30] sm:$0xf] %vm2403_vm7, %v2700_v55  ;;  %v2715_v1 = vpack.c.bf16 %v2270_v6, %v2270_v6  ;;  %v2716_v60 = vpack.c.bf16 %v2271_v58, %v2271_v58  ;;  %v2717_v2 = vpack.c.bf16 %v2272_v12, %v2272_v12 }
 0x35c   : > { %2417 = vst.msk [vmem:[%s4267_s9 + $0x34] sm:$0xf] %vm2403_vm7, %v2701_v9  ;;  %2418 = vst.msk [vmem:[%s4267_s9 + $0x38] sm:$0xf] %vm2403_vm7, %v2702_v5  ;;  %v2718_v20 = vpack.c.bf16 %v2273_v47, %v2273_v47  ;;  %v2719_v34 = vpack.c.bf16 %v2274_v54, %v2274_v54 }
 0x35d   : > { %2419 = vst.msk [vmem:[%s4267_s9 + $0x3c] sm:$0xf] %vm2403_vm7, %v2703_v14  ;;  %2420 = vst.msk [vmem:[%s4267_s9 + $0x40] sm:$0xf] %vm2403_vm7, %v2704_v50 }
 0x35e   : > { %2421 = vst.msk [vmem:[%s4267_s9 + $0x44] sm:$0xf] %vm2403_vm7, %v2705_v7  ;;  %2422 = vst.msk [vmem:[%s4267_s9 + $0x48] sm:$0xf] %vm2403_vm7, %v2706_v59 }
 0x35f   : > { %2423 = vst.msk [vmem:[%s4267_s9 + $0x4c] sm:$0xf] %vm2403_vm7, %v2707_v15  ;;  %2424 = vst.msk [vmem:[%s4267_s9 + $0x50] sm:$0xf] %vm2403_vm7, %v2708_v61 }
 0x360   : > { %2425 = vst.msk [vmem:[%s4267_s9 + $0x54] sm:$0xf] %vm2403_vm7, %v2709_v53  ;;  %2426 = vst.msk [vmem:[%s4267_s9 + $0x58] sm:$0xf] %vm2403_vm7, %v2710_v51 }
 0x361   : > { %2427 = vst.msk [vmem:[%s4267_s9 + $0x5c] sm:$0xf] %vm2403_vm7, %v2711_v49  ;;  %2428 = vst.msk [vmem:[%s4267_s9 + $0x60] sm:$0xf] %vm2403_vm7, %v2712_v48 }
 0x362   : > { %2429 = vst.msk [vmem:[%s4267_s9 + $0x64] sm:$0xf] %vm2403_vm7, %v2713_v44  ;;  %2430 = vst.msk [vmem:[%s4267_s9 + $0x68] sm:$0xf] %vm2403_vm7, %v2714_v19 }
 0x363   : > { %2431 = vst.msk [vmem:[%s4267_s9 + $0x6c] sm:$0xf] %vm2403_vm7, %v2715_v1  ;;  %2432 = vst.msk [vmem:[%s4267_s9 + $0x70] sm:$0xf] %vm2403_vm7, %v2716_v60 }
 0x364   : > { %2433 = vst.msk [vmem:[%s4267_s9 + $0x74] sm:$0xf] %vm2403_vm7, %v2717_v2  ;;  %2434 = vst.msk [vmem:[%s4267_s9 + $0x78] sm:$0xf] %vm2403_vm7, %v2718_v20 }
 0x365   : > { %2435 = vst.msk [vmem:[%s4267_s9 + $0x7c] sm:$0xf] %vm2403_vm7, %v2719_v34 }
 0x366 PF: > { %s15_s18 = sadd.s32 1, %s2993_s18  }
 0x367   : > { %p12_p4 = scmp.ge.s32.totalorder %s15_s18, 4  }
 0x369   :  { %14 = sbr.rel (!%p12_p4) target bundleno = 1 (0x1), region = 72 }

// kernel: mask_branch_forward.5
= control target key start
LH: loop header
LB: loop body
LE: loop exit
PB: predicated region body
PF: predicated region fallthrough
CT: control target
= control target key end

     0   :  { %s3488_s12 = smov 0   ;;  %s5296_s0 = inlined_call_operand.vmem [shape: bf16[2,16,16,64], index: 0, kind: input, shape index: {}]   ;;  %s5297_s1 = inlined_call_operand.vmem [shape: bf16[64,64], index: 1, kind: input, shape index: {}]   ;;  %s5298_s2 = inlined_call_operand.vmem [shape: f32[1,64], index: 2, kind: input, shape index: {}]   ;;  %s5299_s3 = inlined_call_operand.vmem [shape: f32[2,16,2,16,128], index: 3, kind: output, shape index: {}]  }
   0x1 LB: > { %s2639_s13 = sadd.s32 4294967295, %s3465_s12   ;;  %p2643_p0 = scmp.ge.s32.totalorder %s3465_s12, 1  ;;  %s3465_s12 = sphi %s3488_s12, %s13_s12  }
   0x2   : > { %p137_p1 = scmp.lt.s32.totalorder %s3465_s12, 3 }
   0x4   : > { %p138_p2 = pnand %p2643_p0, %p137_p1 }
   0x6   : > { %141 = sbr.rel (%p138_p2) target bundleno = 684 (0x2ac), region = 32 }
   0xd   : > { %v2926_v0 = vld [vmem:[%s5297_s1] sm:$0xff]   ;;  %p161_p3 = scmp.lt.s32.totalorder %s2639_s13, 1  ;;  %v2927_v1 = vld [vmem:[%s5297_s1 + $0x8] sm:$0xff]   ;;  %v2928_v2 = vld [vmem:[%s5297_s1 + $0x10] sm:$0xff]   ;;  %vm323_vm0 = vcmask 523264   ;;  %vm693_vm1 = vcmask 1040384  }
   0xe   : > { %2869 = vmatprep.subr.bf16.mxu0 %v2926_v0  ;;  %2909 = vmatprep.subr.bf16.mxu1 %v2926_v0  ;;  %v2929_v5 = vld [vmem:[%s5297_s1 + $0x18] sm:$0xff]   ;;  %v3551_v20 = vld [vmem:[%s5298_s2] ss:$0 sm:$0xff]  ;;  %vm790_vm2 = vcmask 1046528   ;;  %s3467_s30 = smov 64  }
   0xf   : > { %s5728_s13 = smov (!%p161_p3, %s2639_s13), 1  ;;  %2870 = vmatpush3.bf16.msra.mxu0 %v2926_v0  ;;  %2913 = vmatpush3.bf16.msra.mxu1 %v2926_v0 }
  0x10   : > { %2871 = vmatprep.subr.bf16.mxu0 %v2927_v1  ;;  %2910 = vmatprep.subr.bf16.mxu1 %v2927_v1  ;;  %s2847_s20 = sshll.u32 %s5728_s13, 7  ;;  %s2848_s4 = sshll.u32 %s5728_s13, 9 }
  0x11   : > { %s3511_s23 = scalar_lea.vmem %s5296_s0, %s2847_s20  ;;  %s5100_s7 = scalar_lea.vmem %s5299_s3, %s2848_s4 }
  0x12   : > { %v2930_v3 = vld [vmem:[%s3511_s23] sm:$0xff]   ;;  %v2932_v6 = vld [vmem:[%s3511_s23 + $0x8] sm:$0xff]   ;;  %v2934_v8 = vld [vmem:[%s3511_s23 + $0x10] sm:$0xff]  }
  0x13   : > { %2872 = vmatpush3.bf16.msra.mxu0 %v2927_v1  ;;  %2914 = vmatpush3.bf16.msra.mxu1 %v2927_v1  ;;  %v2931_v4 = vld [vmem:[%s3511_s23 + $0x40] sm:$0xff]   ;;  %v2933_v7 = vld [vmem:[%s3511_s23 + $0x48] sm:$0xff]   ;;  %v2935_v9 = vld [vmem:[%s3511_s23 + $0x50] sm:$0xff]  }
  0x14   : > { %2873 = vmatprep.subr.bf16.mxu0 %v2928_v2  ;;  %2911 = vmatprep.subr.bf16.mxu1 %v2928_v2  ;;  %v2936_v10 = vld [vmem:[%s3511_s23 + $0x18] sm:$0xff]   ;;  %v2938_v12 = vld [vmem:[%s3511_s23 + $0x20] sm:$0xff]   ;;  %v2939_v14 = vld [vmem:[%s3511_s23 + $0x28] sm:$0xff]  }
  0x15   : > { %2877 = vmatprep.mubr.msk.bf16.mxu0 %vm323_vm0, %v2930_v3  ;;  %2893 = vmatprep.mubr.msk.bf16.mxu1 %vm323_vm0, %v2931_v4  ;;  %v2937_v11 = vld [vmem:[%s3511_s23 + $0x58] sm:$0xff]   ;;  %v2940_v13 = vld [vmem:[%s3511_s23 + $0x60] sm:$0xff]   ;;  %v2941_v15 = vld [vmem:[%s3511_s23 + $0x68] sm:$0xff]  }
  0x16   : > { %v2942_v16 = vld [vmem:[%s3511_s23 + $0x30] sm:$0xff]   ;;  %v2943_v18 = vld [vmem:[%s3511_s23 + $0x38] sm:$0xff]  }
  0x17   : > { %2874 = vmatpush3.bf16.msra.mxu0 %v2928_v2  ;;  %2915 = vmatpush3.bf16.msra.mxu1 %v2928_v2  ;;  %v2944_v17 = vld [vmem:[%s3511_s23 + $0x70] sm:$0xff]   ;;  %v2945_v19 = vld [vmem:[%s3511_s23 + $0x78] sm:$0xff]  }
  0x18   : > { %2875 = vmatprep.subr.bf16.mxu0 %v2929_v5  ;;  %2912 = vmatprep.subr.bf16.mxu1 %v2929_v5 }
  0x1b   : > { %2876 = vmatpush3.bf16.msra.mxu0 %v2929_v5  ;;  %2916 = vmatpush3.bf16.msra.mxu1 %v2929_v5 }
  0x1e   : > { %2878 = vmatmul.mubr.msk.bf16.vlgmr.msra.gmra.mrb[0].mxu0 %vm323_vm0, %v2932_v6  ;;  %2894 = vmatmul.mubr.msk.bf16.vlgmr.msra.gmra.mrb[0].mxu1 %vm323_vm0, %v2933_v7 }
  0x1f   : > { %2881 = vmatprep.mubr.msk.bf16.mxu0 %vm323_vm0, %v2934_v8  ;;  %2897 = vmatprep.mubr.msk.bf16.mxu1 %vm323_vm0, %v2935_v9 }
  0x26   : > { %2882 = vmatmul.mubr.msk.bf16.gmra.mrb[4].mxu0 %vm323_vm0, %v2936_v10  ;;  %2898 = vmatmul.mubr.msk.bf16.gmra.mrb[4].mxu1 %vm323_vm0, %v2937_v11 }
  0x27   : > { %2885 = vmatprep.mubr.msk.bf16.mxu0 %vm323_vm0, %v2938_v12  ;;  %2901 = vmatprep.mubr.msk.bf16.mxu1 %vm323_vm0, %v2940_v13 }
  0x2e   : > { %2886 = vmatmul.mubr.msk.bf16.gmra.mrb[8].mxu0 %vm323_vm0, %v2939_v14  ;;  %2902 = vmatmul.mubr.msk.bf16.gmra.mrb[8].mxu1 %vm323_vm0, %v2941_v15 }
  0x2f   : > { %2889 = vmatprep.mubr.msk.bf16.mxu0 %vm323_vm0, %v2942_v16  ;;  %2905 = vmatprep.mubr.msk.bf16.mxu1 %vm323_vm0, %v2944_v17 }
  0x36   : > { %2890 = vmatmul.mubr.msk.bf16.gmra.mrb[12].mxu0 %vm323_vm0, %v2943_v18  ;;  %2906 = vmatmul.mubr.msk.bf16.gmra.mrb[12].mxu1 %vm323_vm0, %v2945_v19 }
  0xf1   : > { %v2879_v21 = vpop.f32.mrb[0].mxu0  ;;  %v2895_v22 = vpop.f32.mrb[0].mxu1 }
  0xf2   : > { %v415_v23 = vadd.f32 %v2879_v21, %v3551_v20  ;;  %v406_v24 = vpop.f32.mrb[1].mxu0  ;;  %v470_v25 = vpop.f32.mrb[1].mxu1  ;;  %v479_v47 = vadd.f32 %v2895_v22, %v3551_v20 }
  0xf3   : > { %v407_v26 = vadd.f32 %v3551_v20, %v406_v24  ;;  %v2880_v27 = vpop.f32.mrb[2].mxu0  ;;  %v3555_v28 = vpop.f32.mrb[2].mxu1  ;;  %v471_v48 = vadd.f32 %v3551_v20, %v470_v25 }
  0xf4   : > { %v3557_v29 = vmul.f32 0.25, %v415_v23  ;;  %v3559_v30 = vmul.f32 0.75, %v415_v23  ;;  %v418_v31 = vadd.f32 %v2880_v27, %v3551_v20  ;;  %v409_v32 = vpop.f32.mrb[3].mxu0  ;;  %v3562_v33 = vpop.f32.mrb[3].mxu1  ;;  %v3605_v0 = vmul.f32 0.75, %v479_v47 }
  0xf5   : > { %v533_v34 = vmul.f32 0.25, %v407_v26  ;;  %v563_v35 = vmul.f32 0.75, %v407_v26  ;;  %v410_v36 = vadd.f32 %v3551_v20, %v409_v32  ;;  %v3608_v2 = vmul.f32 0.25, %v471_v48 }
  0xf6   : > { %v3571_v41 = vmul.f32 0.75, %v418_v31  ;;  %v3573_v43 = vmul.f32 0.25, %v418_v31  ;;  %v3626_v11 = vmul.f32 0.25, %v479_v47  ;;  %v3629_v13 = vmul.f32 0.75, %v471_v48 }
  0xf7   : > { %v3566_v37 = vadd.f32 %v3559_v30, %v533_v34  ;;  %v629_v38 = vadd.f32 %v563_v35, %v3557_v29  ;;  %v534_v39 = vmul.f32 0.25, %v410_v36  ;;  %v3569_v40 = vadd.f32 %v563_v35, %v533_v34 }
  0xf8   : > { %v564_v42 = vmul.f32 0.75, %v410_v36  ;;  %v613_v14 = vadd.f32 %v3605_v0, %v3608_v2  ;;  %v645_v27 = vadd.f32 %v3629_v13, %v3626_v11  ;;  %v482_v48 = vadd.f32 %v3555_v28, %v3551_v20 }
  0xf9   : > { %v3575_v44 = vpop.f32.mrb[4].mxu0  ;;  %v3577_v45 = vpop.f32.mrb[4].mxu1  ;;  %v1655_v46 = vrot.slane %v629_v38, 7  ;;  %v5302_v54 = vrot.slane %v3569_v40, 7  ;;  %v3594_v56 = vadd.f32 %v3571_v41, %v534_v39  ;;  %v1879_v60 = vmul.f32 0.75, %v629_v38 }
  0xfa   : > { %v3581_v49 = vpop.f32.mrb[5].mxu0  ;;  %v3583_v50 = vpop.f32.mrb[5].mxu1  ;;  %v3585_v51 = vadd.f32 %v564_v42, %v534_v39  ;;  %v3601_v61 = vadd.f32 %v564_v42, %v3573_v43  ;;  %v5301_v63 = vrot.slane %v3566_v37, 7  ;;  %v1751_v16 = vrot.slane %v629_v38, 1 }
  0xfb   : > { %v3587_v52 = vpop.f32.mrb[6].mxu0  ;;  %v3589_v53 = vpop.f32.mrb[6].mxu1  ;;  %v1735_v55 = vsel %vm693_vm1, %v629_v38, %v1655_v46  ;;  %v698_v1 = vrot.slane %v3594_v56, 7  ;;  %v3622_v9 = vmul.f32 0.75, %v3594_v56  ;;  %v721_v32 = vrot.slane %v613_v14, 7 }
  0xfc   : > { %v3596_v57 = vpop.f32.mrb[7].mxu0  ;;  %v3598_v58 = vpop.f32.mrb[7].mxu1  ;;  %v1847_v59 = vmul.f32 0.25, %v1735_v55  ;;  %5408 = vst [vmem:[#allocation2_spill] sm:$0xff] %v3601_v61  ;;  %v695_v62 = vrot.slane %v3585_v51, 7  ;;  %v3619_v8 = vmul.f32 0.75, %v3585_v51 }
  0xfd   : > { %v699_v5 = vsel %vm693_vm1, %v5301_v63, %v698_v1  ;;  %5410 = vst [vmem:[#allocation4_spill] sm:$0xff] %v3622_v9  ;;  %v1656_v12 = vrot.slane %v3601_v61, 7  ;;  %v5300_v19 = vrot.slane %v3601_v61, 1  ;;  %v3651_v26 = vmul.f32 0.75, %v3601_v61 }
  0xfe   : > { %v3610_v3 = vadd.f32 %v1879_v60, %v1847_v59  ;;  %v696_v4 = vsel %vm693_vm1, %v5302_v54, %v695_v62  ;;  %v890_v7 = vmul.f32 0.25, %v699_v5  ;;  %5409 = vst [vmem:[#allocation3_spill] sm:$0xff] %v3619_v8  ;;  %v937_v35 = vmul.f32 0.75, %v613_v14 }
  0xff   : > { %v888_v6 = vmul.f32 0.25, %v696_v4  ;;  %v1657_v22 = vsel %vm693_vm1, %v1655_v46, %v1656_v12  ;;  %v1753_v24 = vsel %vm790_vm2, %v1751_v16, %v5300_v19  ;;  %5413 = vst [vmem:[#allocation7_spill] sm:$0xff] %v3651_v26  ;;  %v783_v39 = vsel %vm693_vm1, %v613_v14, %v721_v32 }
 0x100   : > { %v3639_v18 = vadd.f32 %v3622_v9, %v890_v7  ;;  %v1848_v25 = vmul.f32 0.25, %v1657_v22  ;;  %v2135_v31 = vmul.f32 0.25, %v1753_v24  ;;  %v905_v46 = vmul.f32 0.25, %v783_v39 }
 0x101   : > { %v3624_v10 = vpop.f32.mrb[8].mxu0  ;;  %v3636_v17 = vadd.f32 %v3619_v8, %v888_v6  ;;  %v3658_v36 = vpop.f32.mrb[8].mxu1  ;;  %v1679_v47 = vrot.slane %v645_v27, 7  ;;  %v1895_v55 = vmul.f32 0.75, %v645_v27  ;;  %v3670_v4 = vmul.f32 0.25, %v482_v48 }
 0x102   : > { %v3633_v15 = vpop.f32.mrb[9].mxu0  ;;  %5412 = vst [vmem:[#allocation6_spill] sm:$0xff] %v3639_v18  ;;  %v3656_v34 = vadd.f32 %v3651_v26, %v1848_v25  ;;  %v3660_v38 = vadd.f32 %v2135_v31, %v1879_v60  ;;  %v3663_v42 = vpop.f32.mrb[9].mxu1  ;;  %v3667_v59 = vadd.f32 %v937_v35, %v905_v46  ;;  %v3672_v5 = vmul.f32 0.75, %v482_v48 }
 0x103   : > { %5411 = vst [vmem:[#allocation5_spill] sm:$0xff] %v3636_v17  ;;  %v3642_v21 = vpop.f32.mrb[10].mxu0  ;;  %v1743_v62 = vsel %vm693_vm1, %v645_v27, %v1679_v47  ;;  %v474_v60 = vadd.f32 %v3551_v20, %v3562_v33  ;;  %v818_v28 = vrot.slane %v613_v14, 1  ;;  %v1775_v14 = vrot.slane %v645_v27, 1 }
 0x104   : > { %v3645_v23 = vpop.f32.mrb[11].mxu0  ;;  %5414 = vst [vmem:[#allocation8_spill] sm:$0xff] %v3656_v34  ;;  %5415 = vst [vmem:[#allocation9_spill] sm:$0xff] %v3660_v38  ;;  %v1863_v1 = vmul.f32 0.25, %v1743_v62  ;;  %v431_v27 = vadd.f32 %v3575_v44, %v3551_v20 }
 0x105   : > { %5416 = vst [vmem:[#allocation10_spill] sm:$0xff] %v3667_v59  ;;  %v3678_v7 = vmul.f32 0.25, %v474_v60  ;;  %v3680_v12 = vmul.f32 0.75, %v474_v60 }
 0x106   : > { %v3676_v6 = vadd.f32 %v1895_v55, %v1863_v1  ;;  %v3726_v44 = vmul.f32 0.25, %v431_v27 }
 0x107   : > { %5418 = vst [vmem:[#allocation12_spill] sm:$0xff] %v3678_v7  ;;  %5419 = vst [vmem:[#allocation13_spill] sm:$0xff] %v3680_v12  ;;  %v3684_v16 = vadd.f32 %v3672_v5, %v3678_v7  ;;  %v3688_v22 = vadd.f32 %v3680_v12, %v3670_v4 }
 0x108   : > { %5417 = vst [vmem:[#allocation11_spill] sm:$0xff] %v3676_v6 }
 0x109   : > { %5420 = vst [vmem:[#allocation14_spill] sm:$0xff] %v3684_v16  ;;  %5421 = vst [vmem:[#allocation15_spill] sm:$0xff] %v3688_v22  ;;  %v3690_v24 = vpop.f32.mrb[12].mxu0  ;;  %v722_v25 = vrot.slane %v3684_v16, 7  ;;  %v5304_v33 = vrot.slane %v3684_v16, 1  ;;  %v3695_v31 = vmul.f32 0.75, %v3684_v16 }
 0x10a   : > { %v1680_v39 = vrot.slane %v3688_v22, 7  ;;  %v5303_v19 = vrot.slane %v3688_v22, 1 }
 0x10b   : > { %5422 = vst [vmem:[#allocation16_spill] sm:$0xff] %v3695_v31  ;;  %v723_v46 = vsel %vm693_vm1, %v721_v32, %v722_v25  ;;  %v820_v48 = vsel %vm790_vm2, %v818_v28, %v5304_v33  ;;  %v3715_v28 = vmul.f32 0.75, %v3688_v22 }
 0x10c   : > { %v906_v62 = vmul.f32 0.25, %v723_v46  ;;  %v1193_v1 = vmul.f32 0.25, %v820_v48  ;;  %v1681_v60 = vsel %vm693_vm1, %v1679_v47, %v1680_v39  ;;  %v1777_v32 = vsel %vm790_vm2, %v1775_v14, %v5303_v19 }
 0x10d   : > { %v1864_v25 = vmul.f32 0.25, %v1681_v60  ;;  %5425 = vst [vmem:[#allocation19_spill] sm:$0xff] %v3715_v28  ;;  %v2151_v46 = vmul.f32 0.25, %v1777_v32  ;;  %v3717_v47 = vmul.f32 0.75, %v431_v27  ;;  %v423_v39 = vadd.f32 %v3551_v20, %v3581_v49  ;;  %v3730_v60 = vpop.f32.mrb[13].mxu0 }
 0x10e   : > { %v3705_v63 = vadd.f32 %v3695_v31, %v906_v62  ;;  %v3707_v54 = vadd.f32 %v1193_v1, %v937_v35  ;;  %v3728_v62 = vpop.f32.mrb[10].mxu1  ;;  %v495_v32 = vadd.f32 %v3577_v45, %v3551_v20  ;;  %v487_v49 = vadd.f32 %v3551_v20, %v3583_v50 }
 0x10f   : > { %v3722_v35 = vadd.f32 %v3715_v28, %v1864_v25  ;;  %v3724_v48 = vadd.f32 %v2151_v46, %v1895_v55  ;;  %v537_v14 = vmul.f32 0.25, %v423_v39  ;;  %v567_v1 = vmul.f32 0.75, %v423_v39  ;;  %v3732_v19 = vpop.f32.mrb[11].mxu1 }
 0x110   : > { %5423 = vst [vmem:[#allocation17_spill] sm:$0xff] %v3705_v63  ;;  %5424 = vst [vmem:[#allocation18_spill] sm:$0xff] %v3707_v54  ;;  %v3752_v45 = vmul.f32 0.75, %v495_v32  ;;  %v3767_v63 = vmul.f32 0.25, %v495_v32  ;;  %v553_v32 = vmul.f32 0.25, %v487_v49 }
 0x111   : > { %5426 = vst [vmem:[#allocation20_spill] sm:$0xff] %v3722_v35  ;;  %5427 = vst [vmem:[#allocation21_spill] sm:$0xff] %v3724_v48  ;;  %v3739_v25 = vadd.f32 %v567_v1, %v3557_v29  ;;  %v3742_v55 = vadd.f32 %v3717_v47, %v537_v14  ;;  %v3745_v27 = vadd.f32 %v3559_v30, %v537_v14  ;;  %v583_v29 = vmul.f32 0.75, %v487_v49 }
 0x112   : > { %v3748_v46 = vadd.f32 %v567_v1, %v3726_v44 }
 0x113   : > { %v5307_v39 = vrot.slane %v3739_v25, 7  ;;  %v5308_v33 = vrot.slane %v3742_v55, 7  ;;  %v3755_v50 = vmul.f32 0.75, %v3742_v55  ;;  %v5311_v14 = vrot.slane %v3745_v27, 7 }
 0x114   : > { %v5312_v1 = vrot.slane %v3748_v46, 7  ;;  %v3770_v48 = vmul.f32 0.75, %v3739_v25  ;;  %v3781_v28 = vmul.f32 0.75, %v3748_v46  ;;  %v3790_v31 = vmul.f32 0.75, %v3745_v27 }
 0x115   : > { %v776_v35 = vsel %vm693_vm1, %v3739_v25, %v5307_v39  ;;  %v777_v30 = vsel %vm693_vm1, %v3742_v55, %v5308_v33  ;;  %v1736_v39 = vsel %vm693_vm1, %v3745_v27, %v5311_v14  ;;  %v3793_v6 = vadd.f32 %v583_v29, %v3626_v11 }
 0x116   : > { %v891_v7 = vmul.f32 0.25, %v776_v35  ;;  %v893_v12 = vmul.f32 0.25, %v777_v30  ;;  %v1737_v33 = vsel %vm693_vm1, %v3748_v46, %v5312_v1  ;;  %v1849_v54 = vmul.f32 0.25, %v1736_v39 }
 0x117   : > { %v1851_v14 = vmul.f32 0.25, %v1737_v33  ;;  %v3796_v1 = vadd.f32 %v3752_v45, %v553_v32  ;;  %v3808_v49 = vadd.f32 %v583_v29, %v3767_v63  ;;  %v5313_v33 = vrot.slane %v3793_v6, 7 }
 0x118   : > { %v3784_v35 = vadd.f32 %v3770_v48, %v891_v7  ;;  %v3787_v30 = vadd.f32 %v3755_v50, %v893_v12  ;;  %v3799_v59 = vadd.f32 %v3790_v31, %v1849_v54  ;;  %v3805_v12 = vadd.f32 %v3605_v0, %v553_v32 }
 0x119   : > { %v3802_v7 = vadd.f32 %v3781_v28, %v1851_v14  ;;  %v5314_v11 = vrot.slane %v3796_v1, 7  ;;  %v784_v39 = vsel %vm693_vm1, %v3793_v6, %v5313_v33  ;;  %v3821_v32 = vmul.f32 0.75, %v3793_v6 }
 0x11a   : > { %5428 = vst [vmem:[#allocation22_spill] sm:$0xff] %v3784_v35  ;;  %5429 = vst [vmem:[#allocation23_spill] sm:$0xff] %v3787_v30  ;;  %v907_v14 = vmul.f32 0.25, %v784_v39  ;;  %v3824_v29 = vmul.f32 0.75, %v3796_v1  ;;  %v3843_v22 = vmul.f32 0.75, %v3805_v12  ;;  %v797_v26 = vrot.slane %v3739_v25, 1 }
 0x11b   : > { %5430 = vst [vmem:[#allocation24_spill] sm:$0xff] %v3799_v59  ;;  %5431 = vst [vmem:[#allocation25_spill] sm:$0xff] %v3802_v7  ;;  %v785_v54 = vsel %vm693_vm1, %v3796_v1, %v5314_v11  ;;  %v5317_v7 = vrot.slane %v3805_v12, 7  ;;  %v5318_v59 = vrot.slane %v3808_v49, 7  ;;  %v5438_v17 = vrot.slane %v3739_v25, 7 }
 0x11c   : > { %v909_v0 = vmul.f32 0.25, %v785_v54  ;;  %v3829_v30 = vadd.f32 %v3821_v32, %v907_v14  ;;  %v3846_v14 = vmul.f32 0.75, %v3808_v49 }
 0x11d   : > { %v1744_v39 = vsel %vm693_vm1, %v3805_v12, %v5317_v7  ;;  %v1745_v54 = vsel %vm693_vm1, %v3808_v49, %v5318_v59  ;;  %v426_v7 = vadd.f32 %v3551_v20, %v3596_v57  ;;  %v490_v59 = vadd.f32 %v3551_v20, %v3598_v58 }
 0x11e   : > { %5432 = vst [vmem:[#allocation26_spill] sm:$0xff] %v3829_v30  ;;  %v3832_v33 = vadd.f32 %v3824_v29, %v909_v0  ;;  %v1865_v11 = vmul.f32 0.25, %v1744_v39  ;;  %v1867_v35 = vmul.f32 0.25, %v1745_v54  ;;  %v434_v0 = vadd.f32 %v3587_v52, %v3551_v20 }
 0x11f   : > { %v538_v16 = vmul.f32 0.25, %v426_v7  ;;  %v568_v38 = vmul.f32 0.75, %v426_v7  ;;  %v584_v34 = vmul.f32 0.75, %v490_v59  ;;  %v800_v52 = vrot.slane %v3742_v55, 1 }
 0x120   : > { %5433 = vst [vmem:[#allocation27_spill] sm:$0xff] %v3832_v33  ;;  %v3851_v33 = vadd.f32 %v3843_v22, %v1865_v11  ;;  %v3858_v39 = vadd.f32 %v3846_v14, %v1867_v35  ;;  %v3860_v54 = vmul.f32 0.25, %v434_v0  ;;  %v3862_v30 = vmul.f32 0.75, %v434_v0 }
 0x121   : > { %v3869_v57 = vadd.f32 %v3571_v41, %v538_v16  ;;  %v498_v58 = vadd.f32 %v3589_v53, %v3551_v20  ;;  %v3874_v35 = vadd.f32 %v568_v38, %v3573_v43  ;;  %v3880_v7 = vadd.f32 %v584_v34, %v3670_v4 }
 0x122   : > { %5434 = vst [vmem:[#allocation28_spill] sm:$0xff] %v3851_v33  ;;  %5435 = vst [vmem:[#allocation29_spill] sm:$0xff] %v3858_v39  ;;  %v3866_v11 = vadd.f32 %v3862_v30, %v538_v16  ;;  %v3877_v0 = vadd.f32 %v568_v38, %v3860_v54  ;;  %v5437_v53 = vrot.slane %v3742_v55, 7 }
 0x123   : > { %v701_v41 = vrot.slane %v3874_v35, 7  ;;  %v5329_v16 = vrot.slane %v3874_v35, 1  ;;  %v3896_v18 = vmul.f32 0.75, %v498_v58 }
 0x124   : > { %5436 = vst [vmem:[#allocation30_spill] sm:$0xff] %v3866_v11  ;;  %v704_v39 = vrot.slane %v3866_v11, 7  ;;  %v5326_v33 = vrot.slane %v3866_v11, 1  ;;  %v3894_v4 = vmul.f32 0.75, %v3866_v11 }
 0x125   : > { %v702_v9 = vsel %vm693_vm1, %v5438_v17, %v701_v41  ;;  %v799_v61 = vsel %vm790_vm2, %v797_v26, %v5329_v16  ;;  %v554_v41 = vmul.f32 0.25, %v490_v59  ;;  %v5331_v59 = vrot.slane %v3869_v57, 1 }
 0x126   : > { %v705_v43 = vsel %vm693_vm1, %v5437_v53, %v704_v39  ;;  %v802_v38 = vsel %vm790_vm2, %v800_v52, %v5326_v33  ;;  %v892_v55 = vmul.f32 0.25, %v702_v9  ;;  %v3905_v39 = vmul.f32 0.75, %v3874_v35  ;;  %v3907_v52 = vpop.f32.mrb[14].mxu0 }
 0x127   : > { %v894_v8 = vmul.f32 0.25, %v705_v43  ;;  %v1179_v53 = vmul.f32 0.25, %v799_v61  ;;  %v1181_v33 = vmul.f32 0.25, %v802_v38  ;;  %v3922_v26 = vadd.f32 %v3896_v18, %v554_v41 }
 0x128   : > { %v3910_v11 = vadd.f32 %v3905_v39, %v892_v55  ;;  %v1757_v61 = vrot.slane %v3748_v46, 1  ;;  %v1659_v43 = vrot.slane %v3869_v57, 7  ;;  %v1662_v38 = vrot.slane %v3877_v0, 7 }
 0x129   : > { %v3913_v25 = vadd.f32 %v3894_v4, %v894_v8  ;;  %v3916_v17 = vadd.f32 %v1179_v53, %v3770_v48  ;;  %v3919_v9 = vadd.f32 %v1181_v33, %v3755_v50  ;;  %v1754_v55 = vrot.slane %v3745_v27, 1 }
 0x12a   : > { %5439 = vst [vmem:[#allocation31_spill] sm:$0xff] %v3910_v11  ;;  %v5442_v8 = vrot.slane %v3745_v27, 7  ;;  %v5330_v50 = vrot.slane %v3877_v0, 1  ;;  %v5443_v33 = vrot.slane %v3748_v46, 7  ;;  %v3943_v27 = vmul.f32 0.75, %v3869_v57 }
 0x12b   : > { %5440 = vst [vmem:[#allocation32_spill] sm:$0xff] %v3913_v25  ;;  %5441 = vst [vmem:[#allocation33_spill] sm:$0xff] %v3919_v9  ;;  %v1756_v25 = vsel %vm790_vm2, %v1754_v55, %v5331_v59  ;;  %v3948_v9 = vmul.f32 0.25, %v498_v58 }
 0x12c   : > { %v1660_v48 = vsel %vm693_vm1, %v5442_v8, %v1659_v43  ;;  %v1663_v53 = vsel %vm693_vm1, %v5443_v33, %v1662_v38  ;;  %v1759_v11 = vsel %vm790_vm2, %v1757_v61, %v5330_v50  ;;  %v3946_v8 = vmul.f32 0.75, %v3877_v0 }
 0x12d   : > { %v1850_v16 = vmul.f32 0.25, %v1660_v48  ;;  %v1852_v43 = vmul.f32 0.25, %v1663_v53  ;;  %v2137_v38 = vmul.f32 0.25, %v1756_v25  ;;  %v2139_v55 = vmul.f32 0.25, %v1759_v11 }
 0x12e   : > { %v3963_v53 = vadd.f32 %v3672_v5, %v554_v41  ;;  %v3966_v58 = vadd.f32 %v584_v34, %v3948_v9  ;;  %v725_v25 = vrot.slane %v3880_v7, 7  ;;  %v728_v11 = vrot.slane %v3922_v26, 7 }
 0x12f   : > { %v3951_v46 = vadd.f32 %v3943_v27, %v1850_v16  ;;  %v3954_v48 = vadd.f32 %v3946_v8, %v1852_v43  ;;  %v3957_v33 = vadd.f32 %v2137_v38, %v3790_v31  ;;  %v3960_v61 = vadd.f32 %v2139_v55, %v3781_v28 }
 0x130   : > { %5446 = vst [vmem:[#allocation36_spill] sm:$0xff] %v3963_v53  ;;  %5447 = vst [vmem:[#allocation37_spill] sm:$0xff] %v3966_v58  ;;  %v824_v16 = vrot.slane %v3796_v1, 1  ;;  %v821_v43 = vrot.slane %v3793_v6, 1  ;;  %v5333_v31 = vrot.slane %v3880_v7, 1  ;;  %v5448_v38 = vrot.slane %v3793_v6, 7 }
 0x131   : > { %5444 = vst [vmem:[#allocation34_spill] sm:$0xff] %v3951_v46  ;;  %5445 = vst [vmem:[#allocation35_spill] sm:$0xff] %v3954_v48  ;;  %v5332_v5 = vrot.slane %v3922_v26, 1  ;;  %v5449_v41 = vrot.slane %v3796_v1, 7  ;;  %v3987_v6 = vmul.f32 0.75, %v3880_v7 }
 0x132   : > { %v726_v28 = vsel %vm693_vm1, %v5448_v38, %v725_v25  ;;  %v823_v55 = vsel %vm790_vm2, %v821_v43, %v5333_v31  ;;  %v3990_v25 = vmul.f32 0.75, %v3922_v26 }
 0x133   : > { %v729_v34 = vsel %vm693_vm1, %v5449_v41, %v728_v11  ;;  %v826_v50 = vsel %vm790_vm2, %v824_v16, %v5332_v5  ;;  %v908_v59 = vmul.f32 0.25, %v726_v28  ;;  %5450 = vst [vmem:[#allocation38_spill] sm:$0xff] %v3987_v6  ;;  %v1195_v38 = vmul.f32 0.25, %v823_v55 }
 0x134   : > { %v910_v48 = vmul.f32 0.25, %v729_v34  ;;  %5451 = vst [vmem:[#allocation39_spill] sm:$0xff] %v3990_v25  ;;  %v1197_v43 = vmul.f32 0.25, %v826_v50  ;;  %v1781_v28 = vrot.slane %v3808_v49, 1  ;;  %v1683_v34 = vrot.slane %v3963_v53, 7 }
 0x135   : > { %v3993_v1 = vadd.f32 %v3987_v6, %v908_v59  ;;  %v3999_v41 = vadd.f32 %v1195_v38, %v3821_v32  ;;  %v1686_v5 = vrot.slane %v3966_v58, 7  ;;  %v5335_v55 = vrot.slane %v3963_v53, 1 }
 0x136   : > { %v3996_v11 = vadd.f32 %v3990_v25, %v910_v48  ;;  %v4002_v16 = vadd.f32 %v1197_v43, %v3824_v29  ;;  %v1778_v59 = vrot.slane %v3805_v12, 1  ;;  %v5334_v48 = vrot.slane %v3966_v58, 1 }
 0x137   : > { %5452 = vst [vmem:[#allocation40_spill] sm:$0xff] %v3993_v1  ;;  %5454 = vst [vmem:[#allocation42_spill] sm:$0xff] %v3999_v41  ;;  %v5456_v50 = vrot.slane %v3805_v12, 7  ;;  %v5457_v38 = vrot.slane %v3808_v49, 7  ;;  %v4023_v1 = vmul.f32 0.75, %v3963_v53  ;;  %v4026_v12 = vmul.f32 0.75, %v3966_v58 }
 0x138   : > { %5453 = vst [vmem:[#allocation41_spill] sm:$0xff] %v3996_v11  ;;  %5455 = vst [vmem:[#allocation43_spill] sm:$0xff] %v4002_v16  ;;  %v1780_v43 = vsel %vm790_vm2, %v1778_v59, %v5335_v55  ;;  %v1783_v31 = vsel %vm790_vm2, %v1781_v28, %v5334_v48  ;;  %v447_v28 = vadd.f32 %v3624_v10, %v3551_v20 }
 0x139   : > { %v1684_v32 = vsel %vm693_vm1, %v5456_v50, %v1683_v34  ;;  %v1687_v29 = vsel %vm693_vm1, %v5457_v38, %v1686_v5  ;;  %5458 = vst [vmem:[#allocation44_spill] sm:$0xff] %v4023_v1  ;;  %5459 = vst [vmem:[#allocation45_spill] sm:$0xff] %v4026_v12  ;;  %v2153_v34 = vmul.f32 0.25, %v1780_v43  ;;  %v2155_v5 = vmul.f32 0.25, %v1783_v31 }
 0x13a   : > { %v1866_v46 = vmul.f32 0.25, %v1684_v32  ;;  %v1868_v11 = vmul.f32 0.25, %v1687_v29  ;;  %v4042_v38 = vmul.f32 0.75, %v447_v28  ;;  %v439_v29 = vadd.f32 %v3551_v20, %v3633_v15 }
 0x13b   : > { %v4035_v59 = vadd.f32 %v2153_v34, %v3843_v22  ;;  %v4040_v32 = vadd.f32 %v2155_v5, %v3846_v14  ;;  %v450_v48 = vadd.f32 %v3642_v21, %v3551_v20  ;;  %v442_v15 = vadd.f32 %v3551_v20, %v3645_v23 }
 0x13c   : > { %v4029_v49 = vadd.f32 %v4023_v1, %v1866_v46  ;;  %v4032_v50 = vadd.f32 %v4026_v12, %v1868_v11  ;;  %v4046_v46 = vmul.f32 0.25, %v447_v28  ;;  %v541_v31 = vmul.f32 0.25, %v439_v29 }
 0x13d   : > { %5462 = vst [vmem:[#allocation48_spill] sm:$0xff] %v4035_v59  ;;  %5463 = vst [vmem:[#allocation49_spill] sm:$0xff] %v4040_v32  ;;  %v571_v43 = vmul.f32 0.75, %v439_v29  ;;  %v4066_v12 = vmul.f32 0.75, %v450_v48  ;;  %v572_v21 = vmul.f32 0.75, %v442_v15  ;;  %v4074_v58 = vmul.f32 0.25, %v450_v48 }
 0x13e   : > { %5460 = vst [vmem:[#allocation46_spill] sm:$0xff] %v4029_v49  ;;  %5461 = vst [vmem:[#allocation47_spill] sm:$0xff] %v4032_v50  ;;  %v605_v22 = vadd.f32 %v4042_v38, %v541_v31  ;;  %v4051_v34 = vadd.f32 %v3717_v47, %v541_v31 }
 0x13f   : > { %v603_v11 = vadd.f32 %v571_v43, %v3726_v44  ;;  %v4054_v10 = vadd.f32 %v571_v43, %v4046_v46 }
 0x140   : > { %v709_v5 = vrot.slane %v605_v22, 7  ;;  %v929_v47 = vmul.f32 0.75, %v605_v22  ;;  %v1664_v31 = vrot.slane %v4051_v34, 7  ;;  %v1885_v16 = vmul.f32 0.75, %v4051_v34 }
 0x141   : > { %v706_v14 = vrot.slane %v603_v11, 7  ;;  %v927_v50 = vmul.f32 0.75, %v603_v11  ;;  %v1667_v43 = vrot.slane %v4054_v10, 7  ;;  %v803_v53 = vrot.slane %v603_v11, 1 }
 0x142   : > { %v779_v44 = vsel %vm693_vm1, %v605_v22, %v709_v5  ;;  %v1738_v23 = vsel %vm693_vm1, %v4051_v34, %v1664_v31  ;;  %v806_v48 = vrot.slane %v605_v22, 1  ;;  %v4103_v22 = vpop.f32.mrb[15].mxu0 }
 0x143   : > { %v778_v28 = vsel %vm693_vm1, %v603_v11, %v706_v14  ;;  %v897_v55 = vmul.f32 0.25, %v779_v44  ;;  %v542_v44 = vmul.f32 0.25, %v442_v15  ;;  %v1853_v59 = vmul.f32 0.25, %v1738_v23 }
 0x144   : > { %v895_v29 = vmul.f32 0.25, %v778_v28  ;;  %v1739_v28 = vsel %vm693_vm1, %v4054_v10, %v1667_v43  ;;  %v4092_v23 = vadd.f32 %v572_v21, %v4074_v58 }
 0x145   : > { %v4068_v32 = vadd.f32 %v929_v47, %v897_v55  ;;  %v1855_v1 = vmul.f32 0.25, %v1739_v28  ;;  %v4082_v55 = vadd.f32 %v4066_v12, %v542_v44  ;;  %v4087_v41 = vadd.f32 %v1885_v16, %v1853_v59 }
 0x146   : > { %v4064_v49 = vadd.f32 %v927_v50, %v895_v29  ;;  %v1887_v29 = vmul.f32 0.75, %v4054_v10  ;;  %5471 = vst [vmem:[#allocation57_spill] sm:$0xff] %v4092_v23 }
 0x147   : > { %5465 = vst [vmem:[#allocation51_spill] sm:$0xff] %v4068_v32  ;;  %5467 = vst [vmem:[#allocation53_spill] sm:$0xff] %v4082_v55  ;;  %v4085_v32 = vadd.f32 %v3862_v30, %v542_v44  ;;  %v5345_v11 = vrot.slane %v4082_v55, 1 }
 0x148   : > { %5464 = vst [vmem:[#allocation50_spill] sm:$0xff] %v4064_v49  ;;  %v4079_v49 = vadd.f32 %v572_v21, %v3860_v54  ;;  %5469 = vst [vmem:[#allocation55_spill] sm:$0xff] %v4087_v41  ;;  %v4089_v15 = vadd.f32 %v1887_v29, %v1855_v1  ;;  %v710_v54 = vrot.slane %v4082_v55, 7 }
 0x149   : > { %5468 = vst [vmem:[#allocation54_spill] sm:$0xff] %v4085_v32  ;;  %v808_v21 = vsel %vm790_vm2, %v806_v48, %v5345_v11 }
 0x14a   : > { %5466 = vst [vmem:[#allocation52_spill] sm:$0xff] %v4079_v49  ;;  %5470 = vst [vmem:[#allocation56_spill] sm:$0xff] %v4089_v15  ;;  %v707_v28 = vrot.slane %v4079_v49, 7  ;;  %v5344_v25 = vrot.slane %v4079_v49, 1  ;;  %v711_v30 = vsel %vm693_vm1, %v709_v5, %v710_v54  ;;  %v4109_v15 = vmul.f32 0.75, %v4079_v49 }
 0x14b   : > { %v898_v44 = vmul.f32 0.25, %v711_v30  ;;  %v1665_v54 = vrot.slane %v4085_v32, 7  ;;  %v1760_v30 = vrot.slane %v4051_v34, 1 }
 0x14c   : > { %v708_v6 = vsel %vm693_vm1, %v706_v14, %v707_v28  ;;  %v805_v1 = vsel %vm790_vm2, %v803_v53, %v5344_v25  ;;  %5472 = vst [vmem:[#allocation58_spill] sm:$0xff] %v4109_v15  ;;  %v4112_v14 = vmul.f32 0.75, %v4082_v55  ;;  %v1185_v28 = vmul.f32 0.25, %v808_v21 }
 0x14d   : > { %v896_v59 = vmul.f32 0.25, %v708_v6  ;;  %v1183_v5 = vmul.f32 0.25, %v805_v1  ;;  %v1668_v53 = vrot.slane %v4092_v23, 7  ;;  %v1666_v41 = vsel %vm693_vm1, %v1664_v31, %v1665_v54 }
 0x14e   : > { %5473 = vst [vmem:[#allocation59_spill] sm:$0xff] %v4112_v14  ;;  %v4120_v25 = vadd.f32 %v4112_v14, %v898_v44  ;;  %v4125_v11 = vadd.f32 %v1185_v28, %v929_v47  ;;  %v1763_v21 = vrot.slane %v4054_v10, 1  ;;  %v5349_v55 = vrot.slane %v4085_v32, 1 }
 0x14f   : > { %v4117_v6 = vadd.f32 %v4109_v15, %v896_v59  ;;  %v4122_v48 = vadd.f32 %v1183_v5, %v927_v50  ;;  %v1669_v1 = vsel %vm693_vm1, %v1667_v43, %v1668_v53  ;;  %v5348_v59 = vrot.slane %v4092_v23, 1 }
 0x150   : > { %5475 = vst [vmem:[#allocation61_spill] sm:$0xff] %v4120_v25  ;;  %5477 = vst [vmem:[#allocation63_spill] sm:$0xff] %v4125_v11  ;;  %v1762_v50 = vsel %vm790_vm2, %v1760_v30, %v5349_v55  ;;  %v1854_v44 = vmul.f32 0.25, %v1666_v41  ;;  %v1856_v34 = vmul.f32 0.25, %v1669_v1  ;;  %v4145_v10 = vmul.f32 0.75, %v4085_v32 }
 0x151   : > { %5474 = vst [vmem:[#allocation60_spill] sm:$0xff] %v4117_v6  ;;  %5476 = vst [vmem:[#allocation62_spill] sm:$0xff] %v4122_v48  ;;  %v4132_v6 = vpop.f32.mrb[12].mxu1  ;;  %v1765_v31 = vsel %vm790_vm2, %v1763_v21, %v5348_v59  ;;  %v4148_v5 = vmul.f32 0.75, %v4092_v23  ;;  %v2141_v54 = vmul.f32 0.25, %v1762_v50  ;;  %v511_v1 = vadd.f32 %v3658_v36, %v3551_v20 }
 0x152   : > { %5478 = vst [vmem:[#allocation64_spill] sm:$0xff] %v4132_v6  ;;  %v4137_v47 = vpop.f32.mrb[13].mxu1  ;;  %5481 = vst [vmem:[#allocation67_spill] sm:$0xff] %v4145_v10  ;;  %v4153_v41 = vadd.f32 %v4145_v10, %v1854_v44  ;;  %v2143_v30 = vmul.f32 0.25, %v1765_v31  ;;  %v503_v59 = vadd.f32 %v3551_v20, %v3663_v42  ;;  %v463_v42 = vadd.f32 %v3690_v24, %v3551_v20 }
 0x153   : > { %5479 = vst [vmem:[#allocation65_spill] sm:$0xff] %v4137_v47  ;;  %v4142_v43 = vpop.f32.mrb[14].mxu1  ;;  %5482 = vst [vmem:[#allocation68_spill] sm:$0xff] %v4148_v5  ;;  %v4156_v53 = vadd.f32 %v4148_v5, %v1856_v34  ;;  %v4160_v21 = vadd.f32 %v2141_v54, %v1885_v16  ;;  %v4166_v25 = vmul.f32 0.25, %v511_v1  ;;  %v4168_v50 = vmul.f32 0.75, %v511_v1 }
 0x154   : > { %5480 = vst [vmem:[#allocation66_spill] sm:$0xff] %v4142_v43  ;;  %v4150_v28 = vpop.f32.mrb[15].mxu1  ;;  %5484 = vst [vmem:[#allocation70_spill] sm:$0xff] %v4153_v41  ;;  %v4164_v55 = vadd.f32 %v2143_v30, %v1887_v29  ;;  %v557_v44 = vmul.f32 0.25, %v503_v59  ;;  %v587_v41 = vmul.f32 0.75, %v503_v59  ;;  %v5490_v30 = vrot.slane %v3569_v40, 7 }
 0x155   : > { %5483 = vst [vmem:[#allocation69_spill] sm:$0xff] %v4150_v28  ;;  %5485 = vst [vmem:[#allocation71_spill] sm:$0xff] %v4156_v53  ;;  %v4231_v32 = vmul.f32 0.75, %v3566_v37  ;;  %v5496_v14 = vrot.slane %v3585_v51, 1  ;;  %v2749_v43 = vmul.f32 -1.442695, %v3610_v3 }
 0x156   : > { %5486 = vst [vmem:[#allocation72_spill] sm:$0xff] %v4160_v21  ;;  %5487 = vst [vmem:[#allocation73_spill] sm:$0xff] %v4164_v55  ;;  %v4171_v34 = vadd.f32 %v587_v41, %v3767_v63  ;;  %v4174_v31 = vadd.f32 %v4168_v50, %v557_v44  ;;  %v4177_v36 = vadd.f32 %v3752_v45, %v557_v44 }
 0x157   : > { %5488 = vst [vmem:[#allocation74_spill] sm:$0xff] %v4166_v25  ;;  %5489 = vst [vmem:[#allocation75_spill] sm:$0xff] %v4168_v50  ;;  %v4182_v16 = vadd.f32 %v587_v41, %v4166_v25  ;;  %v547_v41 = vmul.f32 0.25, %v463_v42  ;;  %v774_v1 = vsel %vm693_vm1, %v3569_v40, %v5490_v30  ;;  %v5502_v50 = vld [vmem:[#allocation2_spill] sm:$0xff] }
 0x158   : > { %v5350_v29 = vrot.slane %v4171_v34, 7  ;;  %v5351_v54 = vrot.slane %v4174_v31, 7  ;;  %v4187_v59 = vmul.f32 0.75, %v4171_v34  ;;  %v4198_v45 = vmul.f32 0.75, %v4174_v31 }
 0x159   : > { %v5358_v55 = vrot.slane %v4177_v36, 7  ;;  %v4225_v23 = vadd.f32 %v3629_v13, %v547_v41 }
 0x15a   : > { %v786_v63 = vsel %vm693_vm1, %v4171_v34, %v5350_v29  ;;  %v787_v24 = vsel %vm693_vm1, %v4174_v31, %v5351_v54  ;;  %v5491_v29 = vrot.slane %v3566_v37, 7  ;;  %v5359_v54 = vrot.slane %v4182_v16, 7 }
 0x15b   : > { %v911_v44 = vmul.f32 0.25, %v786_v63  ;;  %v913_v53 = vmul.f32 0.25, %v787_v24  ;;  %v1746_v63 = vsel %vm693_vm1, %v4177_v36, %v5358_v55  ;;  %v887_v24 = vmul.f32 0.25, %v774_v1 }
 0x15c   : > { %v775_v21 = vsel %vm693_vm1, %v3566_v37, %v5491_v29  ;;  %v1747_v30 = vsel %vm693_vm1, %v4182_v16, %v5359_v54  ;;  %v577_v29 = vmul.f32 0.75, %v463_v42  ;;  %v4235_v55 = vmul.f32 0.75, %v4177_v36 }
 0x15d   : > { %v4211_v5 = vadd.f32 %v4187_v59, %v911_v44  ;;  %v4214_v10 = vadd.f32 %v4198_v45, %v913_v53  ;;  %v889_v44 = vmul.f32 0.25, %v775_v21  ;;  %v1869_v53 = vmul.f32 0.25, %v1746_v63 }
 0x15e   : > { %v4238_v54 = vmul.f32 0.75, %v4182_v16  ;;  %v4242_v21 = vadd.f32 %v577_v29, %v3608_v2  ;;  %v5361_v42 = vrot.slane %v4225_v23, 7 }
 0x15f   : > { %5492 = vst [vmem:[#allocation76_spill] sm:$0xff] %v4211_v5  ;;  %5493 = vst [vmem:[#allocation77_spill] sm:$0xff] %v4214_v10  ;;  %v4228_v5 = vmul.f32 0.75, %v3569_v40  ;;  %v1871_v10 = vmul.f32 0.25, %v1747_v30  ;;  %v953_v63 = vadd.f32 %v4231_v32, %v889_v44  ;;  %v4248_v11 = vadd.f32 %v4235_v55, %v1869_v53 }
 0x160   : > { %v5363_v2 = vrot.slane %v4242_v21, 7  ;;  %v871_v44 = vsel %vm790_vm2, %v5496_v14, %v3585_v51  ;;  %v4263_v30 = vmul.f32 0.75, %v4225_v23  ;;  %v4277_v28 = vmul.f32 0.75, %v4242_v21 }
 0x161   : > { %v951_v13 = vadd.f32 %v4228_v5, %v887_v24  ;;  %5494 = vst [vmem:[#allocation78_spill] sm:$0xff] %v4248_v11  ;;  %v4251_v1 = vadd.f32 %v4238_v54, %v1871_v10  ;;  %v782_v24 = vsel %vm693_vm1, %v4225_v23, %v5361_v42  ;;  %v5497_v42 = vrot.slane %v3594_v56, 1 }
 0x162   : > { %v903_v48 = vmul.f32 0.25, %v782_v24  ;;  %v1742_v10 = vsel %vm693_vm1, %v4242_v21, %v5363_v2  ;;  %v1176_v24 = vmul.f32 0.25, %v871_v44  ;;  %v455_v2 = vadd.f32 %v3551_v20, %v3730_v60 }
 0x163   : > { %5495 = vst [vmem:[#allocation79_spill] sm:$0xff] %v4251_v1  ;;  %v2685_v53 = vmul.f32 -1.442695, %v951_v13  ;;  %v2687_v1 = vmul.f32 -1.442695, %v953_v63  ;;  %v872_v11 = vsel %vm790_vm2, %v5497_v42, %v3594_v56  ;;  %v1861_v14 = vmul.f32 0.25, %v1742_v10 }
 0x164   : > { %v4274_v15 = vadd.f32 %v4263_v30, %v903_v48  ;;  %v514_v13 = vadd.f32 %v3728_v62, %v3551_v20  ;;  %v506_v63 = vadd.f32 %v3551_v20, %v3732_v19  ;;  %v1178_v42 = vmul.f32 0.25, %v872_v11  ;;  %v5501_v62 = vld [vmem:[#allocation3_spill] sm:$0xff] }
 0x165   : > { %v4287_v48 = vadd.f32 %v4277_v28, %v1861_v14  ;;  %2946 = vpow2.f32 %v2685_v53  ;;  %v545_v44 = vmul.f32 0.25, %v455_v2  ;;  %v1208_v25 = vadd.f32 %v1176_v24, %v5501_v62 }
 0x166   : > { %5498 = vst [vmem:[#allocation80_spill] sm:$0xff] %v4274_v15  ;;  %v4289_v10 = vmul.f32 0.75, %v514_v13  ;;  %v575_v15 = vmul.f32 0.75, %v455_v2  ;;  %v558_v49 = vmul.f32 0.25, %v506_v63  ;;  %2948 = vpow2.f32 %v2687_v1  ;;  %v5506_v2 = vld [vmem:[#allocation4_spill] sm:$0xff] }
 0x167   : > { %5499 = vst [vmem:[#allocation81_spill] sm:$0xff] %v4287_v48  ;;  %v5503_v60 = vrot.slane %v5502_v50, 1  ;;  %v588_v19 = vmul.f32 0.75, %v506_v63  ;;  %v4299_v11 = vadd.f32 %v577_v29, %v545_v44  ;;  %v4302_v14 = vadd.f32 %v4042_v38, %v545_v44 }
 0x168   : > { %5500 = vst [vmem:[#allocation82_spill] sm:$0xff] %v4289_v10  ;;  %v4297_v3 = vadd.f32 %v575_v15, %v4046_v46  ;;  %v4304_v53 = vadd.f32 %v575_v15, %v547_v41  ;;  %v1210_v1 = vadd.f32 %v1178_v42, %v5506_v2  ;;  %v4311_v62 = vadd.f32 %v4289_v10, %v558_v49  ;;  %v5509_v46 = vld [vmem:[#allocation5_spill] sm:$0xff]  ;;  %v5510_v15 = vld [vmem:[#allocation6_spill] sm:$0xff]  ;;  %v5511_v10 = vld [vmem:[#allocation7_spill] sm:$0xff] }
 0x169   : > { %v1831_v20 = vsel %vm790_vm2, %v5503_v60, %v5502_v50  ;;  %5504 = vst [vmem:[#allocation3_spill] sm:$0xff] %v4302_v14  ;;  %v4308_v24 = vadd.f32 %v588_v19, %v3948_v9  ;;  %v4314_v50 = vadd.f32 %v3896_v18, %v558_v49  ;;  %v2686_v63 = vmul.f32 -1.442695, %v5509_v46 }
 0x16a   : > { %5505 = vst [vmem:[#allocation2_spill] sm:$0xff] %v4304_v53  ;;  %5508 = vst [vmem:[#allocation83_spill] sm:$0xff] %v4311_v62  ;;  %v2136_v29 = vmul.f32 0.25, %v1831_v20  ;;  %v5369_v60 = vrot.slane %v4297_v3, 7  ;;  %v5370_v38 = vrot.slane %v4299_v11, 7  ;;  %v4321_v42 = vmul.f32 0.75, %v4297_v3 }
 0x16b   : > { %5507 = vst [vmem:[#allocation4_spill] sm:$0xff] %v4308_v24  ;;  %v2688_v41 = vmul.f32 -1.442695, %v5510_v15  ;;  %v4324_v9 = vmul.f32 0.75, %v4299_v11  ;;  %2950 = vpow2.f32 %v2749_v43  ;;  %v2718_v18 = vmul.f32 -1.442695, %v1208_v25 }
 0x16c   : > { %v780_v49 = vsel %vm693_vm1, %v4297_v3, %v5369_v60  ;;  %v781_v20 = vsel %vm693_vm1, %v4299_v11, %v5370_v38  ;;  %v2720_v2 = vmul.f32 -1.442695, %v1210_v1  ;;  %v5371_v48 = vrot.slane %v4304_v53, 7 }
 0x16d   : > { %v899_v46 = vmul.f32 0.25, %v780_v49  ;;  %v901_v15 = vmul.f32 0.25, %v781_v20  ;;  %2952 = vpow2.f32 %v2686_v63  ;;  %v2168_v44 = vadd.f32 %v2136_v29, %v5511_v10 }
 0x16e   : > { %v4337_v43 = vmul.f32 0.25, %v514_v13  ;;  %v5513_v25 = vrot.slane %v4302_v14, 7  ;;  %2954 = vpow2.f32 %v2688_v41  ;;  %v1741_v63 = vsel %vm693_vm1, %v4304_v53, %v5371_v48  ;;  %v5516_v13 = vld [vmem:[#allocation8_spill] sm:$0xff] }
 0x16f   : > { %v4344_v47 = vadd.f32 %v4321_v42, %v899_v46  ;;  %v4347_v1 = vadd.f32 %v4324_v9, %v901_v15  ;;  %v2947_v10 = vpop.eup %2946  ;;  %v2750_v29 = vmul.f32 -1.442695, %v5516_v13  ;;  %v1859_v20 = vmul.f32 0.25, %v1741_v63  ;;  %v5518_v46 = vld [vmem:[#allocation9_spill] sm:$0xff] }
 0x170   : > { %5512 = vst [vmem:[#allocation5_spill] sm:$0xff] %v4337_v43  ;;  %v1740_v60 = vsel %vm693_vm1, %v4302_v14, %v5513_v25  ;;  %v4355_v38 = vmul.f32 0.75, %v4302_v14  ;;  %v2949_v41 = vpop.eup %2948  ;;  %2956 = vpow2.f32 %v2718_v18  ;;  %v2781_v25 = vmul.f32 -1.442695, %v5518_v46 }
 0x171   : > { %5514 = vst [vmem:[#allocation6_spill] sm:$0xff] %v4344_v47  ;;  %5515 = vst [vmem:[#allocation7_spill] sm:$0xff] %v4347_v1  ;;  %v1857_v49 = vmul.f32 0.25, %v1740_v60  ;;  %v827_v15 = vrot.slane %v4171_v34, 1  ;;  %v4360_v1 = vmul.f32 0.75, %v4304_v53  ;;  %v4366_v13 = vadd.f32 %v588_v19, %v4337_v43  ;;  %v5523_v19 = vld [vmem:[#allocation14_spill] sm:$0xff] }
 0x172   : > { %5517 = vst [vmem:[#allocation8_spill] sm:$0xff] %v4355_v38  ;;  %v2782_v47 = vmul.f32 -1.442695, %v2168_v44  ;;  %v731_v60 = vrot.slane %v4308_v24, 7  ;;  %2958 = vpow2.f32 %v2720_v2  ;;  %v734_v18 = vrot.slane %v4311_v62, 7 }
 0x173   : > { %5519 = vst [vmem:[#allocation9_spill] sm:$0xff] %v4360_v1  ;;  %v4363_v48 = vadd.f32 %v4355_v38, %v1857_v49  ;;  %v4370_v63 = vadd.f32 %v4360_v1, %v1859_v20  ;;  %v5375_v46 = vrot.slane %v4308_v24, 1  ;;  %v1079_v6 = vadd.f32 1.0, %v2947_v10 }
 0x174   : > { %2960 = vpow2.f32 %v2750_v29  ;;  %v830_v44 = vrot.slane %v4174_v31, 1  ;;  %v5522_v49 = vrot.slane %v4171_v34, 7  ;;  %v5524_v43 = vrot.slane %v5523_v19, 1 }
 0x175   : > { %5520 = vst [vmem:[#allocation84_spill] sm:$0xff] %v4363_v48  ;;  %5521 = vst [vmem:[#allocation85_spill] sm:$0xff] %v4370_v63  ;;  %2962 = vpow2.f32 %v2781_v25  ;;  %v5525_v20 = vrot.slane %v4174_v31, 7  ;;  %v829_v10 = vsel %vm790_vm2, %v827_v15, %v5375_v46  ;;  %v2951_v29 = vpop.eup %2950  ;;  %v1081_v1 = vadd.f32 1.0, %v2949_v41  ;;  %v5526_v25 = vld [vmem:[#allocation15_spill] sm:$0xff]  ;;  %v5528_v15 = vld [vmem:[#allocation10_spill] sm:$0xff] }
 0x176   : > { %v732_v48 = vsel %vm693_vm1, %v5522_v49, %v731_v60  ;;  %v880_v2 = vsel %vm790_vm2, %v5524_v43, %v5523_v19  ;;  %2964 = vpow2.f32 %v2782_v47  ;;  %v5384_v34 = vrot.slane %v4311_v62, 1 }
 0x177   : > { %v735_v63 = vsel %vm693_vm1, %v5525_v20, %v734_v18  ;;  %v912_v60 = vmul.f32 0.25, %v732_v48  ;;  %v5527_v49 = vrot.slane %v5526_v25, 1  ;;  %v4394_v31 = vmul.f32 0.75, %v4308_v24  ;;  %v2953_v19 = vpop.eup %2952 }
 0x178   : > { %v914_v43 = vmul.f32 0.25, %v735_v63  ;;  %v4397_v18 = vmul.f32 0.75, %v4311_v62  ;;  %v2703_v20 = vmul.f32 -1.442695, %v5528_v15  ;;  %v1194_v41 = vmul.f32 0.25, %v880_v2  ;;  %v2955_v46 = vpop.eup %2954 }
 0x179   : > { %v1839_v38 = vsel %vm790_vm2, %v5527_v49, %v5526_v25  ;;  %v832_v47 = vsel %vm790_vm2, %v830_v44, %v5384_v34  ;;  %v1199_v48 = vmul.f32 0.25, %v829_v10  ;;  %v2039_v53 = vadd.f32 1.0, %v2951_v29  ;;  %v5532_v44 = vld [vmem:[#allocation11_spill] sm:$0xff] }
 0x17a   : > { %v4404_v25 = vadd.f32 %v4394_v31, %v912_v60  ;;  %v4407_v63 = vadd.f32 %v4397_v18, %v914_v43  ;;  %v1201_v49 = vmul.f32 0.25, %v832_v47  ;;  %v2152_v24 = vmul.f32 0.25, %v1839_v38  ;;  %v2957_v62 = vpop.eup %2956  ;;  %v5534_v43 = vld [vmem:[#allocation16_spill] sm:$0xff] }
 0x17b   : > { %v4410_v14 = vadd.f32 %v1199_v48, %v4187_v59  ;;  %v1689_v2 = vrot.slane %v4314_v50, 7  ;;  %v1692_v15 = vrot.slane %v4366_v13, 7  ;;  %2966 = vrcp.f32 %v1079_v6 }
 0x17c   : > { %5529 = vst [vmem:[#allocation14_spill] sm:$0xff] %v4404_v25  ;;  %5530 = vst [vmem:[#allocation15_spill] sm:$0xff] %v4407_v63  ;;  %v2765_v10 = vmul.f32 -1.442695, %v5532_v44  ;;  %v1784_v29 = vrot.slane %v4177_v36, 1  ;;  %v4417_v60 = vadd.f32 %v1201_v49, %v4198_v45  ;;  %v1226_v34 = vadd.f32 %v1194_v41, %v5534_v43  ;;  %v2959_v6 = vpop.eup %2958  ;;  %v5537_v45 = vld [vmem:[#allocation18_spill] sm:$0xff] }
 0x17d   : > { %5531 = vst [vmem:[#allocation10_spill] sm:$0xff] %v4410_v14  ;;  %v1787_v38 = vrot.slane %v4182_v16, 1  ;;  %v5535_v59 = vrot.slane %v4177_v36, 7  ;;  %v5536_v48 = vrot.slane %v4182_v16, 7  ;;  %2968 = vrcp.f32 %v1081_v1  ;;  %v5538_v41 = vld [vmem:[#allocation19_spill] sm:$0xff] }
 0x17e   : > { %5533 = vst [vmem:[#allocation11_spill] sm:$0xff] %v4417_v60  ;;  %v1080_v44 = vadd.f32 1.0, %v2953_v19  ;;  %v5386_v25 = vrot.slane %v4314_v50, 1  ;;  %v2961_v14 = vpop.eup %2960  ;;  %2970 = vrcp.f32 %v2039_v53  ;;  %v2735_v49 = vmul.f32 -1.442695, %v5537_v45 }
 0x17f   : > { %v1690_v47 = vsel %vm693_vm1, %v5535_v59, %v1689_v2  ;;  %v1693_v63 = vsel %vm693_vm1, %v5536_v48, %v1692_v15  ;;  %v2184_v43 = vadd.f32 %v2152_v24, %v5538_v41  ;;  %v5385_v60 = vrot.slane %v4366_v13, 1  ;;  %v2963_v36 = vpop.eup %2962  ;;  %v4437_v1 = vld [vmem:[%s5298_s2] ss:$0 sm:$0xff]  ;;  %v5539_v48 = vld [vmem:[#allocation21_spill] sm:$0xff] }
 0x180   : > { %2972 = vpow2.f32 %v2703_v20  ;;  %v1786_v16 = vsel %vm790_vm2, %v1784_v29, %v5386_v25  ;;  %v1870_v2 = vmul.f32 0.25, %v1690_v47  ;;  %v466_v53 = vadd.f32 %v4437_v1, %v3907_v52  ;;  %v4441_v19 = vpop.eup %2964 }
 0x181   : > { %v1082_v24 = vadd.f32 1.0, %v2955_v46  ;;  %2974 = vpow2.f32 %v2765_v10  ;;  %v2736_v15 = vmul.f32 -1.442695, %v1226_v34  ;;  %v1789_v20 = vsel %vm790_vm2, %v1787_v38, %v5385_v60 }
 0x182   : > { %2976 = vrcp.f32 %v1080_v44  ;;  %v1872_v29 = vmul.f32 0.25, %v1693_v63  ;;  %v4447_v59 = vmul.f32 0.75, %v4314_v50  ;;  %v4450_v47 = vmul.f32 0.75, %v4366_v13 }
 0x183   : > { %2978 = vpow2.f32 %v2735_v49  ;;  %v2797_v52 = vmul.f32 -1.442695, %v5539_v48  ;;  %v2798_v45 = vmul.f32 -1.442695, %v2184_v43  ;;  %v2157_v41 = vmul.f32 0.25, %v1786_v16 }
 0x184   : > { %v4454_v46 = vadd.f32 %v4447_v59, %v1870_v2  ;;  %v4457_v34 = vadd.f32 %v4450_v47, %v1872_v29  ;;  %v4459_v10 = vmul.f32 0.25, %v466_v53  ;;  %v4461_v63 = vmul.f32 0.75, %v466_v53 }
 0x185   : > { %v1336_v38 = vadd.f32 1.0, %v2957_v62  ;;  %2980 = vpow2.f32 %v2736_v15  ;;  %v2159_v44 = vmul.f32 0.25, %v1789_v20  ;;  %v4464_v60 = vadd.f32 %v2157_v41, %v4235_v55  ;;  %v4466_v49 = vpop.eup %2966  ;;  %v5545_v62 = vld [vmem:[#allocation13_spill] sm:$0xff]  ;;  %v5546_v15 = vld [vmem:[#allocation12_spill] sm:$0xff]  ;;  %v5548_v20 = vld [vmem:[#allocation30_spill] sm:$0xff] }
 0x186   : > { %5540 = vst [vmem:[#allocation16_spill] sm:$0xff] %v4454_v46  ;;  %5541 = vst [vmem:[#allocation18_spill] sm:$0xff] %v4457_v34  ;;  %2982 = vrcp.f32 %v1082_v24  ;;  %v1338_v43 = vadd.f32 1.0, %v2959_v6  ;;  %v5543_v16 = vrot.slane %v3874_v35, 1  ;;  %v4479_v55 = vadd.f32 %v5545_v62, %v4459_v10 }
 0x187   : > { %5542 = vst [vmem:[#allocation19_spill] sm:$0xff] %v4466_v49  ;;  %2984 = vpow2.f32 %v2797_v52  ;;  %v4473_v29 = vadd.f32 %v2159_v44, %v4238_v54  ;;  %v4475_v53 = vpop.eup %2968  ;;  %v4483_v24 = vadd.f32 %v4461_v63, %v5546_v15  ;;  %v791_v62 = vrot.slane %v3569_v40, 1 }
 0x188   : > { %v873_v2 = vsel %vm790_vm2, %v5543_v16, %v3874_v35  ;;  %5544 = vst [vmem:[#allocation21_spill] sm:$0xff] %v4475_v53  ;;  %2986 = vpow2.f32 %v2798_v45  ;;  %v4485_v6 = vpop.eup %2970  ;;  %v5549_v35 = vrot.slane %v5548_v20, 1  ;;  %v815_v45 = vrot.slane %v4225_v23, 1 }
 0x189   : > { %5547 = vst [vmem:[#allocation13_spill] sm:$0xff] %v4485_v6  ;;  %2988 = vrcp.f32 %v1336_v38  ;;  %v1180_v52 = vmul.f32 0.25, %v873_v2  ;;  %v719_v41 = vrot.slane %v4479_v55, 7  ;;  %v5387_v44 = vrot.slane %v4479_v55, 1 }
 0x18a   : > { %v874_v54 = vsel %vm790_vm2, %v5549_v35, %v5548_v20  ;;  %v4491_v48 = vpop.eup %2972  ;;  %2990 = vrcp.f32 %v1338_v43  ;;  %v1677_v38 = vrot.slane %v4483_v24, 7  ;;  %v2040_v25 = vadd.f32 1.0, %v2961_v14 }
 0x18b   : > { %5550 = vst [vmem:[#allocation12_spill] sm:$0xff] %v4491_v48  ;;  %v4496_v16 = vpop.eup %2974  ;;  %v2295_v20 = vadd.f32 1.0, %v2963_v36  ;;  %v5553_v35 = vrot.slane %v4225_v23, 7  ;;  %v817_v34 = vsel %vm790_vm2, %v815_v45, %v5387_v44  ;;  %v1182_v6 = vmul.f32 0.25, %v874_v54 }
 0x18c   : > { %5551 = vst [vmem:[#allocation30_spill] sm:$0xff] %v4496_v16  ;;  %v4500_v15 = vpop.eup %2976  ;;  %v4509_v40 = vmul.f32 0.75, %v4479_v55  ;;  %v1191_v43 = vmul.f32 0.25, %v817_v34  ;;  %v1212_v53 = vadd.f32 %v1180_v52, %v3905_v39  ;;  %v1772_v14 = vrot.slane %v4242_v21, 1 }
 0x18d   : > { %5552 = vst [vmem:[#allocation86_spill] sm:$0xff] %v4500_v15  ;;  %v720_v2 = vsel %vm693_vm1, %v5553_v35, %v719_v41  ;;  %v2979_v46 = vpop.eup %2978  ;;  %v5554_v36 = vrot.slane %v4242_v21, 7  ;;  %v5388_v41 = vrot.slane %v4483_v24, 1  ;;  %v2721_v45 = vmul.f32 -1.442695, %v3916_v17 }
 0x18e   : > { %v904_v49 = vmul.f32 0.25, %v720_v2  ;;  %v5555_v54 = vrot.slane %v3869_v57, 1  ;;  %v4526_v39 = vadd.f32 %v1191_v43, %v4263_v30  ;;  %2992 = vrcp.f32 %v2040_v25 }
 0x18f   : > { %v1678_v23 = vsel %vm693_vm1, %v5554_v36, %v1677_v38  ;;  %v2981_v35 = vpop.eup %2980  ;;  %v2296_v21 = vadd.f32 1.0, %v4441_v19  ;;  %v5558_v38 = vrot.slane %v3877_v0, 1  ;;  %2994 = vrcp.f32 %v2295_v20 }
 0x190   : > { %v1832_v2 = vsel %vm790_vm2, %v5555_v54, %v3869_v57  ;;  %v4523_v34 = vadd.f32 %v4509_v40, %v904_v49  ;;  %v4528_v52 = vpop.eup %2982  ;;  %v1774_v57 = vsel %vm790_vm2, %v1772_v14, %v5388_v41  ;;  %v794_v49 = vrot.slane %v3566_v37, 1  ;;  %v5559_v41 = vld [vmem:[#allocation33_spill] sm:$0xff] }
 0x191   : > { %5557 = vst [vmem:[#allocation88_spill] sm:$0xff] %v4528_v52  ;;  %v1833_v17 = vsel %vm790_vm2, %v5558_v38, %v3877_v0  ;;  %v2985_v36 = vpop.eup %2984  ;;  %v1353_v30 = vadd.f32 1.0, %v2979_v46  ;;  %v1862_v43 = vmul.f32 0.25, %v1678_v23  ;;  %v1354_v44 = vadd.f32 1.0, %v2981_v35 }
 0x192   : > { %5556 = vst [vmem:[#allocation87_spill] sm:$0xff] %v4523_v34  ;;  %v2987_v54 = vpop.eup %2986  ;;  %v2722_v25 = vmul.f32 -1.442695, %v1212_v53  ;;  %v2138_v34 = vmul.f32 0.25, %v1832_v2  ;;  %v4540_v19 = vmul.f32 0.75, %v4483_v24  ;;  %v1214_v0 = vadd.f32 %v1182_v6, %v3894_v4 }
 0x193   : > { %v4542_v15 = vpop.eup %2988  ;;  %2996 = vpow2.f32 %v2721_v45  ;;  %v2140_v38 = vmul.f32 0.25, %v1833_v17  ;;  %v2149_v14 = vmul.f32 0.25, %v1774_v57  ;;  %v2723_v37 = vmul.f32 -1.442695, %v5559_v41 }
 0x194   : > { %2998 = vrcp.f32 %v2296_v21  ;;  %v4547_v46 = vadd.f32 %v4540_v19, %v1862_v43  ;;  %v5561_v20 = vrot.slane %v3594_v56, 1  ;;  %v4552_v23 = vpop.eup %2990  ;;  %v2311_v35 = vadd.f32 1.0, %v2985_v36 }
 0x195   : > { %3000 = vrcp.f32 %v1353_v30  ;;  %v2312_v2 = vadd.f32 1.0, %v2987_v54  ;;  %v4555_v4 = vadd.f32 %v2149_v14, %v4277_v28  ;;  %v2170_v6 = vadd.f32 %v2138_v34, %v3943_v27 }
 0x196   : > { %5560 = vst [vmem:[#allocation33_spill] sm:$0xff] %v4547_v46  ;;  %v796_v53 = vsel %vm790_vm2, %v794_v49, %v5561_v20  ;;  %3002 = vpow2.f32 %v2722_v25  ;;  %v5562_v41 = vrot.slane %v3585_v51, 1  ;;  %v2724_v56 = vmul.f32 -1.442695, %v1214_v0 }
 0x197   : > { %v1177_v45 = vmul.f32 0.25, %v796_v53  ;;  %3004 = vrcp.f32 %v1354_v44  ;;  %v2172_v17 = vadd.f32 %v2140_v38, %v3946_v8  ;;  %v2783_v36 = vmul.f32 -1.442695, %v3957_v33 }
 0x198   : > { %v793_v21 = vsel %vm790_vm2, %v791_v62, %v5562_v41  ;;  %3006 = vpow2.f32 %v2723_v37  ;;  %v458_v28 = vadd.f32 %v4437_v1, %v4103_v22  ;;  %v4566_v27 = vpop.eup %2992  ;;  %v2784_v51 = vmul.f32 -1.442695, %v2170_v6 }
 0x199   : > { %v1175_v57 = vmul.f32 0.25, %v793_v21  ;;  %3008 = vrcp.f32 %v2311_v35  ;;  %v1209_v49 = vadd.f32 %v1177_v45, %v4231_v32  ;;  %5563 = vst [vmem:[#allocation89_spill] sm:$0xff] %v4566_v27  ;;  %v4569_v34 = vpop.eup %2994  ;;  %v2785_v8 = vmul.f32 -1.442695, %v3960_v61 }
 0x19a   : > { %3010 = vrcp.f32 %v2312_v2  ;;  %v546_v44 = vmul.f32 0.25, %v458_v28  ;;  %v2786_v30 = vmul.f32 -1.442695, %v2172_v17  ;;  %v576_v33 = vmul.f32 0.75, %v458_v28 }
 0x19b   : > { %v1207_v62 = vadd.f32 %v1175_v57, %v4228_v5  ;;  %3012 = vpow2.f32 %v2724_v56  ;;  %v812_v22 = vrot.slane %v4299_v11, 1  ;;  %v809_v5 = vrot.slane %v4297_v3, 1 }
 0x19c   : > { %3014 = vpow2.f32 %v2783_v36  ;;  %v4574_v43 = vadd.f32 %v4461_v63, %v546_v44  ;;  %v4577_v32 = vadd.f32 %v4066_v12, %v546_v44  ;;  %v2719_v25 = vmul.f32 -1.442695, %v1209_v49 }
 0x19d   : > { %v2997_v54 = vpop.eup %2996  ;;  %v4581_v0 = vadd.f32 %v576_v33, %v4074_v58  ;;  %v4584_v61 = vadd.f32 %v576_v33, %v4459_v10  ;;  %v5566_v14 = vrot.slane %v3880_v7, 1  ;;  %v2717_v37 = vmul.f32 -1.442695, %v1207_v62 }
 0x19e   : > { %5564 = vst [vmem:[#allocation90_spill] sm:$0xff] %v4577_v32  ;;  %v4586_v38 = vpop.eup %2998  ;;  %v716_v12 = vrot.slane %v4574_v43, 7  ;;  %v5389_v20 = vrot.slane %v4574_v43, 1  ;;  %3016 = vpow2.f32 %v2784_v51  ;;  %v5567_v58 = vrot.slane %v3922_v26, 1 }
 0x19f   : > { %5565 = vst [vmem:[#allocation91_spill] sm:$0xff] %v4584_v61  ;;  %v881_v63 = vsel %vm790_vm2, %v5566_v14, %v3880_v7  ;;  %v4594_v53 = vpop.eup %3000  ;;  %v713_v35 = vrot.slane %v4581_v0, 7  ;;  %v5390_v2 = vrot.slane %v4581_v0, 1  ;;  %v1339_v45 = vadd.f32 1.0, %v2997_v54 }
 0x1a0   : > { %v882_v10 = vsel %vm790_vm2, %v5567_v58, %v3922_v26  ;;  %v3003_v6 = vpop.eup %3002  ;;  %v5568_v7 = vrot.slane %v4299_v11, 7  ;;  %v814_v21 = vsel %vm790_vm2, %v812_v22, %v5389_v20  ;;  %v4609_v56 = vmul.f32 0.75, %v4581_v0 }
 0x1a1   : > { %v4611_v17 = vpop.eup %3004  ;;  %v1196_v26 = vmul.f32 0.25, %v881_v63  ;;  %3018 = vpow2.f32 %v2719_v25  ;;  %v5569_v57 = vrot.slane %v4297_v3, 7  ;;  %v811_v11 = vsel %vm790_vm2, %v809_v5, %v5390_v2 }
 0x1a2   : > { %v717_v41 = vsel %vm693_vm1, %v5568_v7, %v716_v12  ;;  %v3007_v28 = vpop.eup %3006  ;;  %3020 = vpow2.f32 %v2717_v37  ;;  %v4620_v62 = vmul.f32 0.75, %v4574_v43  ;;  %v1340_v33 = vadd.f32 1.0, %v3003_v6  ;;  %v5573_v12 = vld [vmem:[#allocation38_spill] sm:$0xff]  ;;  %v5575_v6 = vld [vmem:[#allocation39_spill] sm:$0xff] }
 0x1a3   : > { %v714_v36 = vsel %vm693_vm1, %v5569_v57, %v713_v35  ;;  %v902_v51 = vmul.f32 0.25, %v717_v41  ;;  %v4622_v44 = vpop.eup %3008  ;;  %v1198_v22 = vmul.f32 0.25, %v882_v10  ;;  %v1187_v54 = vmul.f32 0.25, %v811_v11  ;;  %v5578_v57 = vld [vmem:[#allocation36_spill] sm:$0xff]  ;;  %v5580_v11 = vld [vmem:[#allocation3_spill] sm:$0xff] }
 0x1a4   : > { %v900_v49 = vmul.f32 0.25, %v714_v36  ;;  %5570 = vst [vmem:[#allocation92_spill] sm:$0xff] %v4620_v62  ;;  %v1189_v25 = vmul.f32 0.25, %v814_v21  ;;  %v4624_v3 = vpop.eup %3010  ;;  %3022 = vpow2.f32 %v2785_v8  ;;  %v1341_v37 = vadd.f32 1.0, %v3007_v28  ;;  %v5576_v8 = vld [vmem:[#allocation42_spill] sm:$0xff] }
 0x1a5   : > { %v4630_v5 = vadd.f32 %v4620_v62, %v902_v51  ;;  %v3013_v63 = vpop.eup %3012  ;;  %3024 = vpow2.f32 %v2786_v30  ;;  %v1228_v58 = vadd.f32 %v1196_v26, %v5573_v12  ;;  %v4634_v35 = vadd.f32 %v1187_v54, %v4321_v42  ;;  %v5582_v54 = vld [vmem:[#allocation43_spill] sm:$0xff] }
 0x1a6   : > { %v4627_v14 = vadd.f32 %v4609_v56, %v900_v49  ;;  %v3015_v10 = vpop.eup %3014  ;;  %3026 = vrcp.f32 %v1339_v45  ;;  %v1230_v7 = vadd.f32 %v1198_v22, %v5575_v6  ;;  %v2737_v41 = vmul.f32 -1.442695, %v5576_v8 }
 0x1a7   : > { %5572 = vst [vmem:[#allocation94_spill] sm:$0xff] %v4630_v5  ;;  %5574 = vst [vmem:[#allocation38_spill] sm:$0xff] %v4634_v35  ;;  %3028 = vrcp.f32 %v1340_v33  ;;  %v4639_v21 = vadd.f32 %v1189_v25, %v4324_v9  ;;  %v5579_v36 = vrot.slane %v5578_v57, 1  ;;  %v1766_v26 = vrot.slane %v5580_v11, 1  ;;  %v5581_v33 = vld [vmem:[#allocation2_spill] sm:$0xff] }
 0x1a8   : > { %5571 = vst [vmem:[#allocation93_spill] sm:$0xff] %v4627_v14  ;;  %v1671_v42 = vrot.slane %v4577_v32, 7  ;;  %v1674_v28 = vrot.slane %v4584_v61, 7  ;;  %v3017_v45 = vpop.eup %3016  ;;  %v1342_v49 = vadd.f32 1.0, %v3013_v63  ;;  %3030 = vrcp.f32 %v1341_v37 }
 0x1a9   : > { %5577 = vst [vmem:[#allocation39_spill] sm:$0xff] %v4639_v21  ;;  %v1840_v30 = vsel %vm790_vm2, %v5579_v36, %v5578_v57  ;;  %v2738_v51 = vmul.f32 -1.442695, %v1228_v58  ;;  %v1769_v22 = vrot.slane %v5581_v33, 1  ;;  %v2739_v9 = vmul.f32 -1.442695, %v5582_v54 }
 0x1aa   : > { %v5583_v25 = vrot.slane %v5580_v11, 7  ;;  %v5584_v6 = vrot.slane %v5581_v33, 7  ;;  %v5392_v57 = vrot.slane %v4577_v32, 1  ;;  %3032 = vpow2.f32 %v2737_v41 }
 0x1ab   : > { %v3019_v36 = vpop.eup %3018  ;;  %v2740_v20 = vmul.f32 -1.442695, %v1230_v7  ;;  %v2154_v63 = vmul.f32 0.25, %v1840_v30  ;;  %v5391_v37 = vrot.slane %v4584_v61, 1  ;;  %3034 = vpow2.f32 %v2738_v51  ;;  %v5588_v51 = vld [vmem:[#allocation37_spill] sm:$0xff] }
 0x1ac   : > { %v1672_v12 = vsel %vm693_vm1, %v5583_v25, %v1671_v42  ;;  %v1675_v8 = vsel %vm693_vm1, %v5584_v6, %v1674_v28  ;;  %v3021_v58 = vpop.eup %3020  ;;  %v1337_v2 = vadd.f32 1.0, %v3019_v36  ;;  %v1768_v11 = vsel %vm790_vm2, %v1766_v26, %v5392_v57  ;;  %v5585_v25 = vld [vmem:[#allocation64_spill] sm:$0xff] }
 0x1ad   : > { %v1858_v54 = vmul.f32 0.25, %v1672_v12  ;;  %v1860_v42 = vmul.f32 0.25, %v1675_v8  ;;  %v1335_v33 = vadd.f32 1.0, %v3021_v58  ;;  %v1771_v28 = vsel %vm790_vm2, %v1769_v22, %v5391_v37  ;;  %v5592_v57 = vld [vmem:[#allocation8_spill] sm:$0xff] }
 0x1ae   : > { %v527_v7 = vadd.f32 %v4437_v1, %v5585_v25  ;;  %v3023_v41 = vpop.eup %3022  ;;  %3036 = vrcp.f32 %v1337_v2  ;;  %v4667_v30 = vmul.f32 0.75, %v4577_v32  ;;  %v4670_v6 = vmul.f32 0.75, %v4584_v61 }
 0x1af   : > { %v2145_v26 = vmul.f32 0.25, %v1768_v11  ;;  %v3025_v12 = vpop.eup %3024  ;;  %v2297_v8 = vadd.f32 1.0, %v3015_v10  ;;  %v5589_v36 = vrot.slane %v5588_v51, 1  ;;  %3038 = vrcp.f32 %v1335_v33  ;;  %v5594_v11 = vld [vmem:[#allocation65_spill] sm:$0xff]  ;;  %v5595_v33 = vld [vmem:[#allocation44_spill] sm:$0xff] }
 0x1b0   : > { %5586 = vst [vmem:[#allocation42_spill] sm:$0xff] %v4667_v30  ;;  %5587 = vst [vmem:[#allocation36_spill] sm:$0xff] %v4670_v6  ;;  %v2147_v22 = vmul.f32 0.25, %v1771_v28  ;;  %v4676_v37 = vpop.eup %3026  ;;  %v4679_v2 = vadd.f32 %v4667_v30, %v1858_v54  ;;  %v4682_v25 = vadd.f32 %v4670_v6, %v1860_v42  ;;  %v519_v10 = vadd.f32 %v4437_v1, %v5594_v11  ;;  %v5598_v54 = vld [vmem:[#allocation48_spill] sm:$0xff]  ;;  %v5616_v30 = vld [vmem:[#allocation62_spill] sm:$0xff] }
 0x1b1   : > { %v1841_v58 = vsel %vm790_vm2, %v5589_v36, %v5588_v51  ;;  %v4685_v5 = vadd.f32 %v2145_v26, %v5592_v57  ;;  %v4689_v14 = vpop.eup %3028  ;;  %v2298_v46 = vadd.f32 1.0, %v3017_v45  ;;  %3040 = vpow2.f32 %v2739_v9  ;;  %v5596_v51 = vld [vmem:[#allocation9_spill] sm:$0xff] }
 0x1b2   : > { %5590 = vst [vmem:[#allocation3_spill] sm:$0xff] %v4679_v2  ;;  %5591 = vst [vmem:[#allocation2_spill] sm:$0xff] %v4682_v25  ;;  %v2186_v28 = vadd.f32 %v2154_v63, %v5595_v33  ;;  %v4693_v36 = vadd.f32 %v2147_v22, %v5596_v51  ;;  %3042 = vpow2.f32 %v2740_v20  ;;  %v2799_v2 = vmul.f32 -1.442695, %v5598_v54  ;;  %v4696_v25 = vpop.eup %3030  ;;  %v5599_v9 = vld [vmem:[#allocation49_spill] sm:$0xff]  ;;  %v5600_v51 = vld [vmem:[#allocation75_spill] sm:$0xff] }
 0x1b3   : > { %5593 = vst [vmem:[#allocation43_spill] sm:$0xff] %v4685_v5  ;;  %v593_v42 = vmul.f32 0.75, %v527_v7  ;;  %3044 = vrcp.f32 %v1342_v49  ;;  %v2156_v57 = vmul.f32 0.25, %v1841_v58  ;;  %v2299_v26 = vadd.f32 1.0, %v3023_v41  ;;  %v5601_v41 = vld [vmem:[#allocation45_spill] sm:$0xff] }
 0x1b4   : > { %5597 = vst [vmem:[#allocation64_spill] sm:$0xff] %v4693_v36  ;;  %3046 = vrcp.f32 %v2297_v8  ;;  %v627_v11 = vmul.f32 0.25, %v527_v7  ;;  %v561_v27 = vmul.f32 0.25, %v519_v10  ;;  %v3033_v52 = vpop.eup %3032  ;;  %v2800_v45 = vmul.f32 -1.442695, %v2186_v28  ;;  %v5602_v7 = vld [vmem:[#allocation74_spill] sm:$0xff] }
 0x1b5   : > { %3048 = vrcp.f32 %v2298_v46  ;;  %v2801_v63 = vmul.f32 -1.442695, %v5599_v9  ;;  %v591_v33 = vmul.f32 0.75, %v519_v10  ;;  %v3035_v49 = vpop.eup %3034  ;;  %v2300_v58 = vadd.f32 1.0, %v3025_v12 }
 0x1b6   : > { %3050 = vpow2.f32 %v2799_v2  ;;  %v4699_v22 = vadd.f32 %v627_v11, %v593_v42  ;;  %v4701_v20 = vadd.f32 %v593_v42, %v561_v27  ;;  %v4704_v54 = vadd.f32 %v5600_v51, %v561_v27 }
 0x1b7   : > { %v2188_v8 = vadd.f32 %v2156_v57, %v5601_v41  ;;  %v4708_v16 = vadd.f32 %v591_v33, %v5602_v7  ;;  %v4710_v46 = vadd.f32 %v627_v11, %v591_v33  ;;  %3052 = vrcp.f32 %v2299_v26 }
 0x1b8   : > { %v3037_v28 = vpop.eup %3036  ;;  %v5395_v2 = vrot.slane %v4699_v22, 7  ;;  %3054 = vpow2.f32 %v2800_v45  ;;  %v4715_v27 = vmul.f32 0.75, %v4699_v22  ;;  %v5394_v42 = vrot.slane %v4701_v20, 7 }
 0x1b9   : > { %v3039_v10 = vpop.eup %3038  ;;  %1467 = vrot.lane.b32.xlu1 %v3037_v28, %s3467_s30  ;;  %v5393_v12 = vrot.slane %v4708_v16, 7  ;;  %3056 = vpow2.f32 %v2801_v63  ;;  %v2802_v11 = vmul.f32 -1.442695, %v2188_v8  ;;  %v1355_v51 = vadd.f32 1.0, %v3033_v52 }
 0x1ba   : > { %1463 = vrot.lane.b32.xlu0 %v3039_v10, %s3467_s30  ;;  %v1750_v57 = vsel %vm693_vm1, %v4699_v22, %v5395_v2  ;;  %3058 = vrcp.f32 %v2300_v58  ;;  %v1356_v41 = vadd.f32 1.0, %v3035_v49  ;;  %v789_v63 = vsel %vm693_vm1, %v4701_v20, %v5394_v42  ;;  %v5603_v10 = vld [vmem:[#allocation52_spill] sm:$0xff] }
 0x1bb   : > { %v3041_v26 = vpop.eup %3040  ;;  %v1877_v45 = vmul.f32 0.25, %v1750_v57  ;;  %v788_v9 = vsel %vm693_vm1, %v4708_v16, %v5393_v12  ;;  %v5604_v58 = vrot.slane %v5603_v10, 1  ;;  %v917_v52 = vmul.f32 0.25, %v789_v63 }
 0x1bc   : > { %v3043_v33 = vpop.eup %3042  ;;  %v915_v7 = vmul.f32 0.25, %v788_v9  ;;  %v4744_v49 = vmul.f32 0.75, %v4708_v16  ;;  %v4751_v9 = vmul.f32 0.75, %v4701_v20  ;;  %v1357_v63 = vadd.f32 1.0, %v3041_v26  ;;  %v5610_v26 = vld [vmem:[#allocation69_spill] sm:$0xff] }
 0x1bd   : > { %v4732_v28 = vpop.eup %3044  ;;  %v875_v8 = vsel %vm790_vm2, %v5604_v58, %v5603_v10  ;;  %1469 = vrot.lane.b32.xlu1 %v4552_v23, %s3467_s30  ;;  %v4741_v57 = vadd.f32 %v4715_v27, %v1877_v45  ;;  %v5396_v10 = vrot.slane %v4704_v54, 7  ;;  %v5606_v23 = vld [vmem:[#allocation66_spill] sm:$0xff]  ;;  %v1358_v2 = vadd.f32 1.0, %v3043_v33  ;;  %v5611_v33 = vld [vmem:[#allocation53_spill] sm:$0xff] }
 0x1be   : > { %v4746_v12 = vpop.eup %3046  ;;  %1465 = vrot.lane.b32.xlu0 %v4542_v15, %s3467_s30  ;;  %v530_v45 = vadd.f32 %v4437_v1, %v5606_v23  ;;  %3060 = vpow2.f32 %v2802_v11  ;;  %v4763_v15 = vadd.f32 %v4751_v9, %v917_v52  ;;  %v5609_v5 = vrot.slane %v4710_v46, 7 }
 0x1bf   : > { %5605 = vst [vmem:[#allocation37_spill] sm:$0xff] %v4741_v57  ;;  %v4757_v42 = vpop.eup %3048  ;;  %v4760_v57 = vadd.f32 %v4744_v49, %v915_v7  ;;  %v1748_v58 = vsel %vm693_vm1, %v4704_v54, %v5396_v10  ;;  %v522_v11 = vadd.f32 %v4437_v1, %v5610_v26  ;;  %3062 = vrcp.f32 %v1355_v51 }
 0x1c0   : > { %v3051_v36 = vpop.eup %3050  ;;  %5608 = vst [vmem:[#allocation65_spill] sm:$0xff] %v4763_v15  ;;  %v1749_v23 = vsel %vm693_vm1, %v4710_v46, %v5609_v5  ;;  %v5612_v7 = vrot.slane %v5611_v33, 1  ;;  %v1184_v15 = vmul.f32 0.25, %v875_v8  ;;  %3064 = vrcp.f32 %v1356_v41 }
 0x1c1   : > { %5607 = vst [vmem:[#allocation8_spill] sm:$0xff] %v4760_v57  ;;  %1501 = vrot.lane.b32.xlu1 %v4611_v17, %s3467_s30  ;;  %v4781_v57 = vpop.eup %3052  ;;  %v1873_v5 = vmul.f32 0.25, %v1748_v58  ;;  %v1875_v10 = vmul.f32 0.25, %v1749_v23  ;;  %v594_v6 = vmul.f32 0.75, %v530_v45  ;;  %3066 = vrcp.f32 %v1357_v63 }
 0x1c2   : > { %v876_v52 = vsel %vm790_vm2, %v5612_v7, %v5611_v33  ;;  %1499 = vrot.lane.b32.xlu0 %v4594_v53, %s3467_s30  ;;  %v3055_v1 = vpop.eup %3054  ;;  %v2313_v51 = vadd.f32 1.0, %v3051_v36  ;;  %v4786_v26 = vmul.f32 0.75, %v4704_v54  ;;  %v4789_v8 = vmul.f32 0.75, %v4710_v46  ;;  %v5613_v53 = vld [vmem:[#allocation58_spill] sm:$0xff] }
 0x1c3   : > { %v3057_v33 = vpop.eup %3056  ;;  %3068 = vrcp.f32 %v1358_v2  ;;  %v1186_v17 = vmul.f32 0.25, %v876_v52  ;;  %v628_v7 = vmul.f32 0.25, %v530_v45  ;;  %v592_v41 = vmul.f32 0.75, %v522_v11 }
 0x1c4   : > { %v4791_v48 = vpop.eup %3058  ;;  %v1216_v58 = vadd.f32 %v1184_v15, %v5613_v53  ;;  %v4795_v23 = vadd.f32 %v4786_v26, %v1873_v5  ;;  %v4798_v36 = vadd.f32 %v4789_v8, %v1875_v10  ;;  %v562_v63 = vmul.f32 0.25, %v522_v11  ;;  %v5618_v15 = vld [vmem:[#allocation5_spill] sm:$0xff] }
 0x1c5   : > { %2425 = vrot.lane.b32.xlu1 %v4586_v38, %s3467_s30  ;;  %v2725_v61 = vmul.f32 -1.442695, %v5616_v30  ;;  %v1796_v2 = vrot.slane %v4699_v22, 1  ;;  %v4806_v45 = vadd.f32 %v628_v7, %v594_v6  ;;  %v4809_v52 = vadd.f32 %v592_v41, %v5618_v15  ;;  %v5619_v38 = vld [vmem:[#allocation59_spill] sm:$0xff] }
 0x1c6   : > { %5614 = vst [vmem:[#allocation44_spill] sm:$0xff] %v4795_v23  ;;  %5615 = vst [vmem:[#allocation9_spill] sm:$0xff] %v4798_v36  ;;  %2423 = vrot.lane.b32.xlu0 %v4569_v34, %s3467_s30  ;;  %v2314_v5 = vadd.f32 1.0, %v3055_v1  ;;  %v4811_v53 = vadd.f32 1.0, %v3057_v33  ;;  %3070 = vrcp.f32 %v2313_v51  ;;  %v4813_v10 = vadd.f32 %v594_v6, %v562_v63  ;;  %v5620_v36 = vld [vmem:[#allocation4_spill] sm:$0xff]  ;;  %v5623_v1 = vld [vmem:[#allocation82_spill] sm:$0xff] }
 0x1c7   : > { %5617 = vst [vmem:[#allocation48_spill] sm:$0xff] %v4806_v45  ;;  %v1218_v11 = vadd.f32 %v1186_v17, %v5619_v38  ;;  %v5621_v30 = vrot.slane %v5620_v36, 1  ;;  %v1701_v34 = vrot.slane %v4806_v45, 7  ;;  %v5403_v21 = vrot.slane %v4806_v45, 1 }
 0x1c8   : > { %v3061_v32 = vpop.eup %3060  ;;  %v4823_v15 = vmul.f32 0.75, %v4806_v45  ;;  %v4826_v33 = vadd.f32 %v5623_v1, %v562_v63  ;;  %v4828_v6 = vadd.f32 %v628_v7, %v592_v41  ;;  %v737_v51 = vrot.slane %v4809_v52, 7  ;;  %v5625_v41 = vld [vmem:[#allocation83_spill] sm:$0xff] }
 0x1c9   : > { %v883_v23 = vsel %vm790_vm2, %v5621_v30, %v5620_v36  ;;  %2457 = vrot.lane.b32.xlu1 %v4624_v3, %s3467_s30  ;;  %3072 = vpow2.f32 %v2725_v61  ;;  %v2726_v17 = vmul.f32 -1.442695, %v1216_v58  ;;  %v5624_v36 = vrot.slane %v4699_v22, 7  ;;  %v3063_v7 = vpop.eup %3062 }
 0x1ca   : > { %5622 = vst [vmem:[#allocation49_spill] sm:$0xff] %v4823_v15  ;;  %v1798_v30 = vsel %vm790_vm2, %v1796_v2, %v5403_v21  ;;  %2455 = vrot.lane.b32.xlu0 %v4622_v44, %s3467_s30  ;;  %v5626_v63 = vrot.slane %v5625_v41, 1  ;;  %v833_v61 = vrot.slane %v4708_v16, 1  ;;  %v3065_v22 = vpop.eup %3064  ;;  %v1200_v35 = vmul.f32 0.25, %v883_v23 }
 0x1cb   : > { %v1702_v38 = vsel %vm693_vm1, %v5624_v36, %v1701_v34  ;;  %v2165_v58 = vmul.f32 0.25, %v1798_v30  ;;  %v836_v34 = vrot.slane %v4701_v20, 1  ;;  %v5627_v36 = vrot.slane %v4708_v16, 7  ;;  %v4851_v21 = vpop.eup %3066  ;;  %v5630_v30 = vld [vmem:[#allocation63_spill] sm:$0xff] }
 0x1cc   : > { %v884_v1 = vsel %vm790_vm2, %v5626_v63, %v5625_v41  ;;  %v1878_v3 = vmul.f32 0.25, %v1702_v38  ;;  %v740_v44 = vrot.slane %v4813_v10, 7  ;;  %v834_v38 = vrot.slane %v4809_v52, 1  ;;  %v5631_v63 = vld [vmem:[#allocation54_spill] sm:$0xff] }
 0x1cd   : > { %v738_v2 = vsel %vm693_vm1, %v5627_v36, %v737_v51  ;;  %v4857_v41 = vadd.f32 %v2165_v58, %v4715_v27  ;;  %1473 = vrot.lane.b32.xlu1 %v4689_v14, %s3467_s30  ;;  %v3069_v16 = vpop.eup %3068  ;;  %v2727_v51 = vmul.f32 -1.442695, %v5630_v30  ;;  %v5632_v36 = vrot.slane %v5631_v63, 1 }
 0x1ce   : > { %v4854_v45 = vadd.f32 %v4823_v15, %v1878_v3  ;;  %v5633_v3 = vld [vmem:[#allocation57_spill] sm:$0xff]  ;;  %v5635_v58 = vrot.slane %v4701_v20, 7  ;;  %1471 = vrot.lane.b32.xlu0 %v4676_v37, %s3467_s30  ;;  %3074 = vrcp.f32 %v2314_v5  ;;  %v2728_v14 = vmul.f32 -1.442695, %v1218_v11 }
 0x1cf   : > { %5629 = vst [vmem:[#allocation45_spill] sm:$0xff] %v4857_v41  ;;  %v1834_v62 = vsel %vm790_vm2, %v5632_v36, %v5631_v63  ;;  %v1202_v30 = vmul.f32 0.25, %v884_v1  ;;  %v835_v41 = vsel %vm790_vm2, %v833_v61, %v834_v38  ;;  %v2316_v63 = vadd.f32 1.0, %v3061_v32 }
 0x1d0   : > { %5628 = vst [vmem:[#allocation75_spill] sm:$0xff] %v4854_v45  ;;  %v5634_v45 = vrot.slane %v5633_v3, 1  ;;  %v741_v23 = vsel %vm693_vm1, %v5635_v58, %v740_v44  ;;  %v1232_v36 = vadd.f32 %v1200_v35, %v4394_v31  ;;  %v5636_v15 = vrot.slane %v4813_v10, 1 }
 0x1d1   : > { %v916_v20 = vmul.f32 0.25, %v738_v2  ;;  %3076 = vpow2.f32 %v2726_v17  ;;  %v2142_v44 = vmul.f32 0.25, %v1834_v62  ;;  %v918_v5 = vmul.f32 0.25, %v741_v23  ;;  %1477 = vrot.lane.b32.xlu1 %v4732_v28, %s3467_s30  ;;  %v5637_v62 = vld [vmem:[#allocation10_spill] sm:$0xff]  ;;  %v5639_v23 = vld [vmem:[#allocation68_spill] sm:$0xff] }
 0x1d2   : > { %v1835_v27 = vsel %vm790_vm2, %v5634_v45, %v5633_v3  ;;  %v838_v45 = vsel %vm790_vm2, %v836_v34, %v5636_v15  ;;  %v4884_v3 = vpop.eup %3070  ;;  %3078 = vpow2.f32 %v2727_v51  ;;  %v4889_v11 = vmul.f32 0.75, %v4809_v52  ;;  %1475 = vrot.lane.b32.xlu0 %v4696_v25, %s3467_s30  ;;  %v5638_v25 = vld [vmem:[#allocation67_spill] sm:$0xff] }
 0x1d3   : > { %v2144_v37 = vmul.f32 0.25, %v1835_v27  ;;  %v4892_v31 = vmul.f32 0.75, %v4813_v10  ;;  %v1203_v32 = vmul.f32 0.25, %v835_v41  ;;  %3080 = vpow2.f32 %v2728_v14  ;;  %v3073_v1 = vpop.eup %3072  ;;  %v5640_v27 = vld [vmem:[#allocation72_spill] sm:$0xff]  ;;  %v5641_v14 = vld [vmem:[#allocation11_spill] sm:$0xff] }
 0x1d4   : > { %v1234_v35 = vadd.f32 %v1202_v30, %v4397_v18  ;;  %v2741_v15 = vmul.f32 -1.442695, %v5637_v62  ;;  %v1205_v17 = vmul.f32 0.25, %v838_v45  ;;  %v2742_v61 = vmul.f32 -1.442695, %v1232_v36 }
 0x1d5   : > { %v4899_v28 = vadd.f32 %v4889_v11, %v916_v20  ;;  %v4902_v34 = vadd.f32 %v4892_v31, %v918_v5  ;;  %v4905_v2 = vadd.f32 %v1203_v32, %v4744_v49  ;;  %3082 = vrcp.f32 %v4811_v53  ;;  %1505 = vrot.lane.b32.xlu1 %v3065_v22, %s3467_s30 }
 0x1d6   : > { %v2174_v41 = vadd.f32 %v2142_v44, %v5638_v25  ;;  %v4910_v18 = vadd.f32 %v1205_v17, %v4751_v9  ;;  %3084 = vrcp.f32 %v2316_v63  ;;  %v2176_v51 = vadd.f32 %v2144_v37, %v5639_v23  ;;  %1503 = vrot.lane.b32.xlu0 %v3063_v7, %s3467_s30 }
 0x1d7   : > { %v2787_v58 = vmul.f32 -1.442695, %v5640_v27  ;;  %v2743_v30 = vmul.f32 -1.442695, %v5641_v14  ;;  %3086 = vpow2.f32 %v2741_v15  ;;  %v2744_v49 = vmul.f32 -1.442695, %v1234_v35 }
 0x1d8   : > { %v1790_v53 = vrot.slane %v4704_v54, 1  ;;  %v1793_v36 = vrot.slane %v4710_v46, 1  ;;  %3088 = vpow2.f32 %v2742_v61  ;;  %v5642_v9 = vrot.slane %v4314_v50, 1  ;;  %v3075_v20 = vpop.eup %3074  ;;  %v5646_v14 = vld [vmem:[#allocation73_spill] sm:$0xff] }
 0x1d9   : > { %v1695_v63 = vrot.slane %v4826_v33, 7  ;;  %v1698_v45 = vrot.slane %v4828_v6, 7  ;;  %v1343_v44 = vadd.f32 1.0, %v3073_v1  ;;  %v2788_v37 = vmul.f32 -1.442695, %v2174_v41  ;;  %1509 = vrot.lane.b32.xlu1 %v3069_v16, %s3467_s30 }
 0x1da   : > { %v1842_v22 = vsel %vm790_vm2, %v5642_v9, %v4314_v50  ;;  %v1791_v7 = vrot.slane %v4826_v33, 1  ;;  %v1794_v5 = vrot.slane %v4828_v6, 1  ;;  %v5643_v32 = vrot.slane %v4704_v54, 7  ;;  %1507 = vrot.lane.b32.xlu0 %v4851_v21, %s3467_s30 }
 0x1db   : > { %v5644_v62 = vrot.slane %v4710_v46, 7  ;;  %v4935_v15 = vmul.f32 0.75, %v4826_v33  ;;  %v4938_v17 = vmul.f32 0.75, %v4828_v6  ;;  %v3077_v1 = vpop.eup %3076  ;;  %3090 = vpow2.f32 %v2743_v30 }
 0x1dc   : > { %v1696_v35 = vsel %vm693_vm1, %v5643_v32, %v1695_v63  ;;  %v2158_v16 = vmul.f32 0.25, %v1842_v22  ;;  %v1792_v54 = vsel %vm790_vm2, %v1790_v53, %v1791_v7  ;;  %v1795_v46 = vsel %vm790_vm2, %v1793_v36, %v1794_v5  ;;  %v3079_v61 = vpop.eup %3078 }
 0x1dd   : > { %v1699_v50 = vsel %vm693_vm1, %v5644_v62, %v1698_v45  ;;  %3092 = vpow2.f32 %v2744_v49  ;;  %v5645_v25 = vrot.slane %v4366_v13, 1  ;;  %v1874_v23 = vmul.f32 0.25, %v1696_v35  ;;  %v3081_v27 = vpop.eup %3080  ;;  %2429 = vrot.lane.b32.xlu1 %v4757_v42, %s3467_s30 }
 0x1de   : > { %v1876_v21 = vmul.f32 0.25, %v1699_v50  ;;  %3094 = vpow2.f32 %v2787_v58  ;;  %v2789_v30 = vmul.f32 -1.442695, %v5646_v14  ;;  %v2790_v9 = vmul.f32 -1.442695, %v2176_v51  ;;  %2427 = vrot.lane.b32.xlu0 %v4746_v12, %s3467_s30 }
 0x1df   : > { %v1843_v41 = vsel %vm790_vm2, %v5645_v25, %v4366_v13  ;;  %v2161_v22 = vmul.f32 0.25, %v1792_v54  ;;  %v1344_v53 = vadd.f32 1.0, %v3077_v1  ;;  %v4956_v36 = vadd.f32 %v4935_v15, %v1874_v23  ;;  %v3083_v13 = vpop.eup %3082 }
 0x1e0   : > { %v4959_v49 = vadd.f32 %v4938_v17, %v1876_v21  ;;  %v2163_v63 = vmul.f32 0.25, %v1795_v46  ;;  %3096 = vpow2.f32 %v2788_v37  ;;  %v2160_v58 = vmul.f32 0.25, %v1843_v41  ;;  %v3085_v42 = vpop.eup %3084 }
 0x1e1   : > { %v2190_v51 = vadd.f32 %v2158_v16, %v4447_v59  ;;  %v4965_v45 = vadd.f32 %v2161_v22, %v4786_v26  ;;  %v1345_v32 = vadd.f32 1.0, %v3079_v61  ;;  %3098 = vrcp.f32 %v1343_v44  ;;  %v3087_v50 = vpop.eup %3086  ;;  %2433 = vrot.lane.b32.xlu1 %v4791_v48, %s3467_s30 }
 0x1e2   : > { %v5647_v35 = vrot.slane %v4479_v55, 1  ;;  %v1346_v1 = vadd.f32 1.0, %v3081_v27  ;;  %3100 = vpow2.f32 %v2789_v30  ;;  %v4972_v12 = vadd.f32 %v2163_v63, %v4789_v8  ;;  %v3089_v59 = vpop.eup %3088  ;;  %2431 = vrot.lane.b32.xlu0 %v4781_v57, %s3467_s30 }
 0x1e3   : > { %3102 = vrcp.f32 %v1344_v53  ;;  %v2803_v26 = vmul.f32 -1.442695, %v4464_v60  ;;  %v2192_v44 = vadd.f32 %v2160_v58, %v4450_v47  ;;  %v1359_v16 = vadd.f32 1.0, %v3087_v50 }
 0x1e4   : > { %v879_v62 = vsel %vm790_vm2, %v5647_v35, %v4479_v55  ;;  %3104 = vpow2.f32 %v2790_v9  ;;  %v2804_v55 = vmul.f32 -1.442695, %v2190_v51  ;;  %v1360_v8 = vadd.f32 1.0, %v3089_v59  ;;  %v5650_v9 = vld [vmem:[#allocation17_spill] sm:$0xff] }
 0x1e5   : > { %v1192_v37 = vmul.f32 0.25, %v879_v62  ;;  %3106 = vrcp.f32 %v1345_v32  ;;  %v3091_v54 = vpop.eup %3090  ;;  %v5648_v48 = vrot.slane %v4483_v24, 1  ;;  %2461 = vrot.lane.b32.xlu1 %v3075_v20, %s3467_s30  ;;  %v2805_v57 = vmul.f32 -1.442695, %v4473_v29 }
 0x1e6   : > { %3108 = vrcp.f32 %v1346_v1  ;;  %2459 = vrot.lane.b32.xlu0 %v4884_v3, %s3467_s30  ;;  %v2806_v61 = vmul.f32 -1.442695, %v2192_v44  ;;  %v1361_v41 = vadd.f32 1.0, %v3091_v54  ;;  %v2733_v29 = vmul.f32 -1.442695, %v4526_v39 }
 0x1e7   : > { %v1838_v46 = vsel %vm790_vm2, %v5648_v48, %v4483_v24  ;;  %v3093_v60 = vpop.eup %3092  ;;  %3110 = vpow2.f32 %v2803_v26  ;;  %v1224_v25 = vadd.f32 %v1192_v37, %v4509_v40  ;;  %v5649_v3 = vrot.slane %v4581_v0, 1 }
 0x1e8   : > { %v3095_v47 = vpop.eup %3094  ;;  %3112 = vpow2.f32 %v2804_v55  ;;  %v2150_v23 = vmul.f32 0.25, %v1838_v46  ;;  %v1362_v27 = vadd.f32 1.0, %v3093_v60  ;;  %v2704_v22 = vmul.f32 -1.442695, %v5650_v9  ;;  %v5653_v46 = vld [vmem:[#allocation92_spill] sm:$0xff] }
 0x1e9   : > { %3114 = vrcp.f32 %v1359_v16  ;;  %2465 = vrot.lane.b32.xlu1 %v3085_v42, %s3467_s30  ;;  %v877_v20 = vsel %vm790_vm2, %v5649_v3, %v4581_v0  ;;  %v2734_v14 = vmul.f32 -1.442695, %v1224_v25  ;;  %v2301_v58 = vadd.f32 1.0, %v3095_v47 }
 0x1ea   : > { %v3097_v21 = vpop.eup %3096  ;;  %3116 = vrcp.f32 %v1360_v8  ;;  %2463 = vrot.lane.b32.xlu0 %v3083_v13, %s3467_s30  ;;  %v2182_v53 = vadd.f32 %v2150_v23, %v4540_v19  ;;  %v1188_v39 = vmul.f32 0.25, %v877_v20  ;;  %v5651_v0 = vrot.slane %v4574_v43, 1 }
 0x1eb   : > { %v3099_v24 = vpop.eup %3098  ;;  %3118 = vpow2.f32 %v2805_v57  ;;  %v2302_v42 = vadd.f32 1.0, %v3097_v21  ;;  %v2795_v19 = vmul.f32 -1.442695, %v4555_v4 }
 0x1ec   : > { %v3101_v40 = vpop.eup %3100  ;;  %3120 = vpow2.f32 %v2806_v61  ;;  %v878_v13 = vsel %vm790_vm2, %v5651_v0, %v4574_v43  ;;  %v2796_v62 = vmul.f32 -1.442695, %v2182_v53  ;;  %v1220_v26 = vadd.f32 %v1188_v39, %v4609_v56 }
 0x1ed   : > { %v3103_v30 = vpop.eup %3102  ;;  %3122 = vrcp.f32 %v1361_v41  ;;  %v2303_v1 = vadd.f32 1.0, %v3101_v40  ;;  %v1190_v59 = vmul.f32 0.25, %v878_v13  ;;  %v885_v43 = vsel %vm790_vm2, %v834_v38, %v4809_v52  ;;  %v5654_v38 = vld [vmem:[#allocation38_spill] sm:$0xff]  ;;  %v5658_v13 = vld [vmem:[#allocation91_spill] sm:$0xff] }
 0x1ee   : > { %v3105_v63 = vpop.eup %3104  ;;  %3124 = vrcp.f32 %v1362_v27  ;;  %1481 = vrot.lane.b32.xlu1 %v3103_v30, %s3467_s30  ;;  %1479 = vrot.lane.b32.xlu0 %v3099_v24, %s3467_s30  ;;  %v5652_v56 = vrot.slane %v4813_v10, 1  ;;  %v2730_v57 = vmul.f32 -1.442695, %v1220_v26  ;;  %v1204_v47 = vmul.f32 0.25, %v885_v43  ;;  %v5655_v27 = vld [vmem:[#allocation90_spill] sm:$0xff]  ;;  %v5657_v30 = vld [vmem:[#allocation39_spill] sm:$0xff] }
 0x1ef   : > { %v3107_v51 = vpop.eup %3106  ;;  %3126 = vpow2.f32 %v2733_v29  ;;  %v2304_v55 = vadd.f32 1.0, %v3105_v63  ;;  %v1222_v60 = vadd.f32 %v1190_v59, %v5653_v46  ;;  %v2729_v61 = vmul.f32 -1.442695, %v5654_v38 }
 0x1f0   : > { %v3109_v32 = vpop.eup %3108  ;;  %3128 = vpow2.f32 %v2734_v14  ;;  %v886_v8 = vsel %vm790_vm2, %v5652_v56, %v4813_v10  ;;  %v5656_v24 = vrot.slane %v5655_v27, 1  ;;  %v1236_v40 = vadd.f32 %v1204_v47, %v4889_v11  ;;  %v5663_v47 = vld [vmem:[#allocation43_spill] sm:$0xff] }
 0x1f1   : > { %v3111_v35 = vpop.eup %3110  ;;  %3130 = vpow2.f32 %v2704_v22  ;;  %v1206_v23 = vmul.f32 0.25, %v886_v8  ;;  %v2732_v20 = vmul.f32 -1.442695, %v1222_v60  ;;  %v2731_v9 = vmul.f32 -1.442695, %v5657_v30  ;;  %v5661_v8 = vld [vmem:[#allocation12_spill] sm:$0xff] }
 0x1f2   : > { %v3113_v50 = vpop.eup %3112  ;;  %3132 = vrcp.f32 %v2301_v58  ;;  %1485 = vrot.lane.b32.xlu1 %v3109_v32, %s3467_s30  ;;  %1483 = vrot.lane.b32.xlu0 %v3107_v51, %s3467_s30  ;;  %v2317_v37 = vadd.f32 1.0, %v3111_v35  ;;  %v1836_v29 = vsel %vm790_vm2, %v5656_v24, %v5655_v27  ;;  %v2746_v11 = vmul.f32 -1.442695, %v1236_v40  ;;  %v5662_v60 = vld [vmem:[#allocation36_spill] sm:$0xff] }
 0x1f3   : > { %v3115_v44 = vpop.eup %3114  ;;  %3134 = vrcp.f32 %v2302_v42  ;;  %v2318_v54 = vadd.f32 1.0, %v3113_v50  ;;  %v2146_v63 = vmul.f32 0.25, %v1836_v29  ;;  %v1238_v58 = vadd.f32 %v1206_v23, %v4892_v31  ;;  %v5664_v23 = vld [vmem:[#allocation64_spill] sm:$0xff] }
 0x1f4   : > { %v3117_v4 = vpop.eup %3116  ;;  %3136 = vpow2.f32 %v2795_v19  ;;  %v5659_v32 = vrot.slane %v5658_v13, 1  ;;  %v2745_v35 = vmul.f32 -1.442695, %v4905_v2  ;;  %v2747_v2 = vmul.f32 -1.442695, %v4910_v18 }
 0x1f5   : > { %v3119_v16 = vpop.eup %3118  ;;  %3138 = vpow2.f32 %v2796_v62  ;;  %v5660_v62 = vld [vmem:[#allocation42_spill] sm:$0xff]  ;;  %v2791_v18 = vmul.f32 -1.442695, %v5663_v47 }
 0x1f6   : > { %v3121_v48 = vpop.eup %3120  ;;  %3140 = vrcp.f32 %v2303_v1  ;;  %1513 = vrot.lane.b32.xlu1 %v3117_v4, %s3467_s30  ;;  %1511 = vrot.lane.b32.xlu0 %v3115_v44, %s3467_s30  ;;  %v2319_v41 = vadd.f32 1.0, %v3119_v16  ;;  %v1837_v19 = vsel %vm790_vm2, %v5659_v32, %v5658_v13  ;;  %v2178_v50 = vadd.f32 %v2146_v63, %v5660_v62 }
 0x1f7   : > { %v3123_v52 = vpop.eup %3122  ;;  %3142 = vrcp.f32 %v2304_v55  ;;  %v2320_v10 = vadd.f32 1.0, %v3121_v48  ;;  %v2748_v1 = vmul.f32 -1.442695, %v1238_v58  ;;  %v2148_v43 = vmul.f32 0.25, %v1837_v19  ;;  %v5667_v19 = vld [vmem:[#allocation49_spill] sm:$0xff] }
 0x1f8   : > { %v3125_v25 = vpop.eup %3124  ;;  %3144 = vrcp.f32 %v2317_v37  ;;  %v1844_v37 = vsel %vm790_vm2, %v1791_v7, %v4826_v33  ;;  %v1097_v48 = vadd.f32 1.0, %v5661_v8  ;;  %v1845_v7 = vsel %vm790_vm2, %v1794_v5, %v4828_v6  ;;  %v5665_v6 = vld [vmem:[#allocation48_spill] sm:$0xff] }
 0x1f9   : > { %v3127_v21 = vpop.eup %3126  ;;  %3146 = vrcp.f32 %v2318_v54  ;;  %v2792_v54 = vmul.f32 -1.442695, %v2178_v50  ;;  %v2164_v24 = vmul.f32 0.25, %v1845_v7  ;;  %v5666_v5 = vrot.slane %v5665_v6, 1 }
 0x1fa   : > { %v3129_v3 = vpop.eup %3128  ;;  %3148 = vpow2.f32 %v2730_v57  ;;  %1517 = vrot.lane.b32.xlu1 %v3125_v25, %s3467_s30  ;;  %1515 = vrot.lane.b32.xlu0 %v3123_v52, %s3467_s30  ;;  %v1351_v53 = vadd.f32 1.0, %v3127_v21  ;;  %v2180_v57 = vadd.f32 %v2148_v43, %v5662_v60  ;;  %v2162_v52 = vmul.f32 0.25, %v1844_v37 }
 0x1fb   : > { %v5026_v14 = vpop.eup %3130  ;;  %3150 = vpow2.f32 %v2729_v61  ;;  %v1352_v51 = vadd.f32 1.0, %v3129_v3  ;;  %v2793_v21 = vmul.f32 -1.442695, %v5664_v23  ;;  %v1846_v40 = vsel %vm790_vm2, %v5666_v5, %v5665_v6 }
 0x1fc   : > { %v3133_v22 = vpop.eup %3132  ;;  %3152 = vrcp.f32 %v2319_v41  ;;  %v2794_v27 = vmul.f32 -1.442695, %v2180_v57  ;;  %v2194_v29 = vadd.f32 %v2162_v52, %v4935_v15  ;;  %v2166_v63 = vmul.f32 0.25, %v1846_v40 }
 0x1fd   : > { %v3135_v39 = vpop.eup %3134  ;;  %3154 = vrcp.f32 %v2320_v10  ;;  %v2196_v58 = vadd.f32 %v2164_v24, %v4938_v17  ;;  %v2809_v62 = vmul.f32 -1.442695, %v4972_v12  ;;  %v5673_v24 = vld [vmem:[#allocation31_spill] sm:$0xff] }
 0x1fe   : > { %v3137_v42 = vpop.eup %3136  ;;  %3156 = vpow2.f32 %v2732_v20  ;;  %2437 = vrot.lane.b32.xlu1 %v3135_v39, %s3467_s30  ;;  %2435 = vrot.lane.b32.xlu0 %v3133_v22, %s3467_s30  ;;  %v2808_v39 = vmul.f32 -1.442695, %v2194_v29  ;;  %v2690_v29 = vmul.f32 -1.442695, %v5673_v24 }
 0x1ff   : > { %v3139_v0 = vpop.eup %3138  ;;  %3158 = vpow2.f32 %v2731_v9  ;;  %v2309_v26 = vadd.f32 1.0, %v3137_v42 }
 0x200   : > { %v3141_v31 = vpop.eup %3140  ;;  %3160 = vrcp.f32 %v1351_v53  ;;  %v2310_v55 = vadd.f32 1.0, %v3139_v0  ;;  %v2807_v53 = vmul.f32 -1.442695, %v4965_v45 }
 0x201   : > { %v3143_v59 = vpop.eup %3142  ;;  %3162 = vrcp.f32 %v1352_v51 }
 0x202   : > { %v3145_v44 = vpop.eup %3144  ;;  %3164 = vpow2.f32 %v2746_v11  ;;  %2441 = vrot.lane.b32.xlu1 %v3143_v59, %s3467_s30  ;;  %2439 = vrot.lane.b32.xlu0 %v3141_v31, %s3467_s30  ;;  %v2810_v31 = vmul.f32 -1.442695, %v2196_v58 }
 0x203   : > { %v3147_v4 = vpop.eup %3146  ;;  %3166 = vpow2.f32 %v2745_v35  ;;  %v2198_v35 = vadd.f32 %v2166_v63, %v5667_v19  ;;  %v5675_v63 = vld [vmem:[#allocation26_spill] sm:$0xff] }
 0x204   : > { %v3149_v16 = vpop.eup %3148  ;;  %3168 = vpow2.f32 %v2748_v1 }
 0x205   : > { %v3151_v56 = vpop.eup %3150  ;;  %3170 = vrcp.f32 %v2309_v26  ;;  %v1348_v33 = vadd.f32 1.0, %v3149_v16 }
 0x206   : > { %v3153_v46 = vpop.eup %3152  ;;  %3172 = vrcp.f32 %v2310_v55  ;;  %2469 = vrot.lane.b32.xlu1 %v3147_v4, %s3467_s30  ;;  %2467 = vrot.lane.b32.xlu0 %v3145_v44, %s3467_s30  ;;  %v1347_v25 = vadd.f32 1.0, %v3151_v56  ;;  %v2812_v55 = vmul.f32 -1.442695, %v2198_v35  ;;  %v5668_v4 = vld [vmem:[#allocation45_spill] sm:$0xff]  ;;  %v5677_v35 = vld [vmem:[#allocation24_spill] sm:$0xff] }
 0x207   : > { %v3155_v38 = vpop.eup %3154  ;;  %3174 = vpow2.f32 %v2747_v2  ;;  %v2811_v2 = vmul.f32 -1.442695, %v5668_v4 }
 0x208   : > { %v3157_v61 = vpop.eup %3156  ;;  %3176 = vpow2.f32 %v2792_v54  ;;  %v5669_v54 = vld [vmem:[#allocation20_spill] sm:$0xff] }
 0x209   : > { %v3159_v41 = vpop.eup %3158  ;;  %3178 = vrcp.f32 %v1097_v48  ;;  %v1350_v20 = vadd.f32 1.0, %v3157_v61  ;;  %v2766_v56 = vmul.f32 -1.442695, %v5669_v54  ;;  %v5670_v48 = vld [vmem:[#allocation30_spill] sm:$0xff]  ;;  %v5672_v61 = vld [vmem:[#allocation23_spill] sm:$0xff] }
 0x20a   : > { %v3161_v10 = vpop.eup %3160  ;;  %3180 = vpow2.f32 %v2791_v18  ;;  %2473 = vrot.lane.b32.xlu1 %v3155_v38, %s3467_s30  ;;  %2471 = vrot.lane.b32.xlu0 %v3153_v46, %s3467_s30  ;;  %v1349_v9 = vadd.f32 1.0, %v3159_v41  ;;  %v2055_v46 = vadd.f32 1.0, %v5670_v48  ;;  %v5671_v38 = vld [vmem:[#allocation22_spill] sm:$0xff]  ;;  %v5682_v54 = vld [vmem:[#allocation19_spill] sm:$0xff]  ;;  %v5683_v48 = vld [vmem:[#allocation25_spill] sm:$0xff] }
 0x20b   : > { %v3163_v3 = vpop.eup %3162  ;;  %3182 = vrcp.f32 %v1348_v33  ;;  %v2689_v33 = vmul.f32 -1.442695, %v5671_v38  ;;  %v5684_v38 = vld [vmem:[#allocation88_spill] sm:$0xff] }
 0x20c   : > { %v3165_v30 = vpop.eup %3164  ;;  %3184 = vrcp.f32 %v1347_v25  ;;  %v2691_v25 = vmul.f32 -1.442695, %v5672_v61 }
 0x20d   : > { %v3167_v22 = vpop.eup %3166  ;;  %3186 = vpow2.f32 %v2793_v21  ;;  %v1364_v42 = vadd.f32 1.0, %v3165_v30 }
 0x20e   : > { %v3169_v15 = vpop.eup %3168  ;;  %3188 = vpow2.f32 %v2794_v27  ;;  %1497 = vrot.lane.b32.xlu1 %v3163_v3, %s3467_s30  ;;  %1495 = vrot.lane.b32.xlu0 %v3161_v10, %s3467_s30  ;;  %v1363_v0 = vadd.f32 1.0, %v3167_v22  ;;  %v5674_v22 = vld [vmem:[#allocation32_spill] sm:$0xff] }
 0x20f   : > { %v3171_v51 = vpop.eup %3170  ;;  %3190 = vrcp.f32 %v1350_v20  ;;  %v1366_v32 = vadd.f32 1.0, %v3169_v15  ;;  %v1098_v20 = vadd.f32 1.0, %v5026_v14  ;;  %v2705_v14 = vmul.f32 -1.442695, %v5675_v63 }
 0x210   : > { %v3173_v11 = vpop.eup %3172  ;;  %3192 = vrcp.f32 %v1349_v9 }
 0x211   : > { %v3175_v13 = vpop.eup %3174  ;;  %3194 = vpow2.f32 %v2807_v53  ;;  %v2692_v53 = vmul.f32 -1.442695, %v5674_v22 }
 0x212   : > { %v3177_v45 = vpop.eup %3176  ;;  %3196 = vpow2.f32 %v2808_v39  ;;  %2453 = vrot.lane.b32.xlu1 %v3173_v11, %s3467_s30  ;;  %2451 = vrot.lane.b32.xlu0 %v3171_v51, %s3467_s30  ;;  %v1365_v1 = vadd.f32 1.0, %v3175_v13 }
 0x213   : > { %v5069_v17 = vpop.eup %3178  ;;  %3198 = vrcp.f32 %v1364_v42  ;;  %v2306_v26 = vadd.f32 1.0, %v3177_v45 }
 0x214   : > { %v3181_v50 = vpop.eup %3180  ;;  %3200 = vrcp.f32 %v1363_v0  ;;  %v5676_v0 = vld [vmem:[#allocation40_spill] sm:$0xff] }
 0x215   : > { %v3183_v59 = vpop.eup %3182  ;;  %3202 = vrcp.f32 %v1366_v32  ;;  %v2305_v37 = vadd.f32 1.0, %v3181_v50  ;;  %v2706_v13 = vmul.f32 -1.442695, %v5676_v0  ;;  %v5678_v50 = vld [vmem:[#allocation27_spill] sm:$0xff] }
 0x216   : > { %v3185_v44 = vpop.eup %3184  ;;  %3204 = vpow2.f32 %v2810_v31  ;;  %1489 = vrot.lane.b32.xlu1 %v3183_v59, %s3467_s30  ;;  %v2751_v31 = vmul.f32 -1.442695, %v5677_v35  ;;  %v5691_v35 = vld [vmem:[#allocation13_spill] sm:$0xff] }
 0x217   : > { %v3187_v43 = vpop.eup %3186  ;;  %3206 = vpow2.f32 %v2809_v62  ;;  %1487 = vrot.lane.b32.xlu0 %v3185_v44, %s3467_s30  ;;  %v5679_v44 = vld [vmem:[#allocation41_spill] sm:$0xff] }
 0x218   : > { %v3189_v12 = vpop.eup %3188  ;;  %3208 = vrcp.f32 %v1365_v1  ;;  %v2307_v18 = vadd.f32 1.0, %v3187_v43  ;;  %v2707_v1 = vmul.f32 -1.442695, %v5678_v50  ;;  %v5680_v43 = vld [vmem:[#allocation21_spill] sm:$0xff]  ;;  %v5692_v50 = vld [vmem:[#allocation47_spill] sm:$0xff] }
 0x219   : > { %v3191_v16 = vpop.eup %3190  ;;  %3210 = vrcp.f32 %v2306_v26  ;;  %v2308_v57 = vadd.f32 1.0, %v3189_v12 }
 0x21a   : > { %v3193_v8 = vpop.eup %3192  ;;  %3212 = vpow2.f32 %v2812_v55  ;;  %1493 = vrot.lane.b32.xlu1 %v3191_v16, %s3467_s30  ;;  %v2708_v55 = vmul.f32 -1.442695, %v5679_v44 }
 0x21b   : > { %v3195_v60 = vpop.eup %3194  ;;  %3214 = vpow2.f32 %v2811_v2  ;;  %1491 = vrot.lane.b32.xlu0 %v3193_v8, %s3467_s30 }
 0x21c   : > { %v3197_v47 = vpop.eup %3196  ;;  %3216 = vrcp.f32 %v2305_v37  ;;  %v2321_v10 = vadd.f32 1.0, %v3195_v60  ;;  %v5681_v37 = vld [vmem:[#allocation34_spill] sm:$0xff] }
 0x21d   : > { %v3199_v52 = vpop.eup %3198  ;;  %3218 = vpow2.f32 %v2766_v56  ;;  %v2322_v23 = vadd.f32 1.0, %v3197_v47  ;;  %v2752_v16 = vmul.f32 -1.442695, %v5681_v37 }
 0x21e   : > { %v3201_v7 = vpop.eup %3200  ;;  %3220 = vrcp.f32 %v2055_v46  ;;  %1521 = vrot.lane.b32.xlu1 %v3199_v52, %s3467_s30  ;;  %v2753_v46 = vmul.f32 -1.442695, %v5683_v48  ;;  %v5693_v48 = vld [vmem:[#allocation50_spill] sm:$0xff] }
 0x21f   : > { %v3203_v41 = vpop.eup %3202  ;;  %3222 = vrcp.f32 %v2308_v57  ;;  %1519 = vrot.lane.b32.xlu0 %v3201_v7, %s3467_s30 }
 0x220   : > { %v3205_v21 = vpop.eup %3204  ;;  %3224 = vrcp.f32 %v2307_v18 }
 0x221   : > { %v3207_v27 = vpop.eup %3206  ;;  %3226 = vpow2.f32 %v2689_v33  ;;  %v2324_v5 = vadd.f32 1.0, %v3205_v21 }
 0x222   : > { %v3209_v3 = vpop.eup %3208  ;;  %3228 = vpow2.f32 %v2691_v25  ;;  %1525 = vrot.lane.b32.xlu1 %v3203_v41, %s3467_s30  ;;  %v2323_v30 = vadd.f32 1.0, %v3207_v27  ;;  %v5685_v41 = vld [vmem:[#allocation86_spill] sm:$0xff] }
 0x223   : > { %v3211_v6 = vpop.eup %3210  ;;  %3230 = vrcp.f32 %v2322_v23  ;;  %1523 = vrot.lane.b32.xlu0 %v3209_v3, %s3467_s30 }
 0x224   : > { %v3213_v40 = vpop.eup %3212  ;;  %3232 = vrcp.f32 %v2321_v10  ;;  %v5686_v10 = vld [vmem:[#allocation28_spill] sm:$0xff] }
 0x225   : > { %v3215_v9 = vpop.eup %3214  ;;  %3234 = vpow2.f32 %v2690_v29  ;;  %v2326_v39 = vadd.f32 1.0, %v3213_v40  ;;  %v2767_v27 = vmul.f32 -1.442695, %v5686_v10  ;;  %v5687_v29 = vld [vmem:[#allocation29_spill] sm:$0xff] }
 0x226   : > { %v3217_v15 = vpop.eup %3216  ;;  %3236 = vrcp.f32 %v1098_v20  ;;  %2445 = vrot.lane.b32.xlu1 %v3211_v6, %s3467_s30  ;;  %v2325_v42 = vadd.f32 1.0, %v3215_v9  ;;  %v2769_v3 = vmul.f32 -1.442695, %v5687_v29 }
 0x227   : > { %v3219_v58 = vpop.eup %3218  ;;  %3238 = vrcp.f32 %v2324_v5  ;;  %2443 = vrot.lane.b32.xlu0 %v3217_v15, %s3467_s30  ;;  %v5688_v5 = vld [vmem:[#allocation35_spill] sm:$0xff] }
 0x228   : > { %v5092_v51 = vpop.eup %3220  ;;  %3240 = vrcp.f32 %v2323_v30  ;;  %v2056_v45 = vadd.f32 1.0, %v3219_v58  ;;  %v2754_v40 = vmul.f32 -1.442695, %v5688_v5 }
 0x229   : > { %v3223_v11 = vpop.eup %3222  ;;  %3242 = vpow2.f32 %v2692_v53 }
 0x22a   : > { %v3225_v32 = vpop.eup %3224  ;;  %3244 = vpow2.f32 %v2705_v14  ;;  %2449 = vrot.lane.b32.xlu1 %v3223_v11, %s3467_s30  ;;  %v5689_v14 = vld [vmem:[#allocation46_spill] sm:$0xff] }
 0x22b   : > { %v3227_v19 = vpop.eup %3226  ;;  %3246 = vrcp.f32 %v2326_v39  ;;  %2447 = vrot.lane.b32.xlu0 %v3225_v32, %s3467_s30  ;;  %v1468_v59 = vpop.permute.xlu1 %1467  ;;  %v2768_v58 = vmul.f32 -1.442695, %v5689_v14 }
 0x22c   : > { %v3229_v62 = vpop.eup %3228  ;;  %3248 = vrcp.f32 %v2325_v42  ;;  %v1561_v4 = vsel %vm323_vm0, %v5680_v43, %v1468_v59  ;;  %v1464_v2 = vpop.permute.xlu0 %1463  ;;  %v1083_v57 = vadd.f32 1.0, %v3227_v19 }
 0x22d   : > { %v3231_v26 = vpop.eup %3230  ;;  %3250 = vpow2.f32 %v2706_v13  ;;  %1593 = vst [vmem:[%s5100_s7 + $0x20] sm:$0xff] %v1561_v4  ;;  %v1559_v56 = vsel %vm323_vm0, %v5682_v54, %v1464_v2  ;;  %v1085_v52 = vadd.f32 1.0, %v3229_v62  ;;  %v5690_v13 = vld [vmem:[#allocation89_spill] sm:$0xff] }
 0x22e   : > { %v3233_v12 = vpop.eup %3232  ;;  %3252 = vrcp.f32 %v2056_v45  ;;  %2477 = vrot.lane.b32.xlu1 %v3231_v26, %s3467_s30  ;;  %1591 = vst [vmem:[%s5100_s7] sm:$0xff] %v1559_v56 }
 0x22f   : > { %v3235_v8 = vpop.eup %3234  ;;  %3254 = vpow2.f32 %v2751_v31  ;;  %2475 = vrot.lane.b32.xlu0 %v3233_v12, %s3467_s30  ;;  %v1470_v47 = vpop.permute.xlu1 %1469 }
 0x230   : > { %v3237_v60 = vpop.eup %3236  ;;  %3256 = vpow2.f32 %v2707_v1  ;;  %v1562_v33 = vsel %vm323_vm0, %v5684_v38, %v1470_v47  ;;  %v1466_v7 = vpop.permute.xlu0 %1465  ;;  %v1084_v25 = vadd.f32 1.0, %v3235_v8  ;;  %v2770_v1 = vmul.f32 -1.442695, %v5692_v50  ;;  %v5694_v47 = vld [vmem:[#allocation60_spill] sm:$0xff]  ;;  %v5700_v50 = vld [vmem:[#allocation15_spill] sm:$0xff] }
 0x231   : > { %v3239_v18 = vpop.eup %3238  ;;  %3258 = vpow2.f32 %v2708_v55  ;;  %1594 = vst [vmem:[%s5100_s7 + $0x28] sm:$0xff] %v1562_v33  ;;  %v1560_v23 = vsel %vm323_vm0, %v5685_v41, %v1466_v7 }
 0x232   : > { %v3241_v61 = vpop.eup %3240  ;;  %3260 = vpow2.f32 %v2752_v16  ;;  %2481 = vrot.lane.b32.xlu1 %v3239_v18, %s3467_s30  ;;  %1592 = vst [vmem:[%s5100_s7 + $0x8] sm:$0xff] %v1560_v23  ;;  %v2694_v18 = vmul.f32 -1.442695, %v5694_v47 }
 0x233   : > { %v3243_v21 = vpop.eup %3242  ;;  %3262 = vpow2.f32 %v2753_v46  ;;  %2479 = vrot.lane.b32.xlu0 %v3241_v61, %s3467_s30  ;;  %v1502_v20 = vpop.permute.xlu1 %1501  ;;  %v2693_v46 = vmul.f32 -1.442695, %v5693_v48 }
 0x234   : > { %v3245_v24 = vpop.eup %3244  ;;  %3264 = vrcp.f32 %v1083_v57  ;;  %v1578_v30 = vsel %vm323_vm0, %v3237_v60, %v1502_v20  ;;  %v1500_v9 = vpop.permute.xlu0 %1499  ;;  %v1086_v53 = vadd.f32 1.0, %v3243_v21  ;;  %v5696_v21 = vld [vmem:[#allocation61_spill] sm:$0xff] }
 0x235   : > { %v3247_v6 = vpop.eup %3246  ;;  %3266 = vrcp.f32 %v1085_v52  ;;  %1610 = vst [vmem:[%s5100_s7 + $0x128] sm:$0xff] %v1578_v30  ;;  %v1577_v15 = vsel %vm323_vm0, %v5069_v17, %v1500_v9  ;;  %v1099_v0 = vadd.f32 1.0, %v3245_v24  ;;  %v2696_v10 = vmul.f32 -1.442695, %v5696_v21 }
 0x236   : > { %v3249_v22 = vpop.eup %3248  ;;  %3268 = vrcp.f32 %v1084_v25  ;;  %2485 = vrot.lane.b32.xlu1 %v3247_v6, %s3467_s30  ;;  %1609 = vst [vmem:[%s5100_s7 + $0x120] sm:$0xff] %v1577_v15 }
 0x237   : > { %v3251_v63 = vpop.eup %3250  ;;  %3270 = vpow2.f32 %v2767_v27  ;;  %2483 = vrot.lane.b32.xlu0 %v3249_v22, %s3467_s30  ;;  %v2426_v42 = vpop.permute.xlu1 %2425 }
 0x238   : > { %v3253_v39 = vpop.eup %3252  ;;  %3272 = vpow2.f32 %v2769_v3  ;;  %v2520_v17 = vsel %vm323_vm0, %v5690_v13, %v2426_v42  ;;  %v2424_v32 = vpop.permute.xlu0 %2423  ;;  %v1100_v19 = vadd.f32 1.0, %v3251_v63  ;;  %v5697_v63 = vld [vmem:[#allocation14_spill] sm:$0xff] }
 0x239   : > { %v3255_v11 = vpop.eup %3254  ;;  %3274 = vpow2.f32 %v2754_v40  ;;  %2814 = vst [vmem:[%s5100_s7 + $0x18] sm:$0xff] %v2520_v17  ;;  %v2519_v31 = vsel %vm323_vm0, %v5691_v35, %v2424_v32  ;;  %v2710_v14 = vmul.f32 -1.442695, %v5697_v63  ;;  %v5699_v32 = vld [vmem:[#allocation77_spill] sm:$0xff] }
 0x23a   : > { %v3257_v45 = vpop.eup %3256  ;;  %3276 = vrcp.f32 %v1086_v53  ;;  %2813 = vst [vmem:[%s5100_s7 + $0x10] sm:$0xff] %v2519_v31  ;;  %v2041_v26 = vadd.f32 1.0, %v3255_v11  ;;  %v5698_v11 = vld [vmem:[#allocation76_spill] sm:$0xff] }
 0x23b   : > { %v3259_v62 = vpop.eup %3258  ;;  %3278 = vpow2.f32 %v2768_v58  ;;  %v2458_v44 = vpop.permute.xlu1 %2457  ;;  %v1101_v43 = vadd.f32 1.0, %v3257_v45  ;;  %v2711_v45 = vmul.f32 -1.442695, %v5699_v32 }
 0x23c   : > { %v3261_v59 = vpop.eup %3260  ;;  %3280 = vrcp.f32 %v1099_v0  ;;  %v2536_v4 = vsel %vm323_vm0, %v3253_v39, %v2458_v44  ;;  %v2456_v2 = vpop.permute.xlu0 %2455  ;;  %v1102_v37 = vadd.f32 1.0, %v3259_v62  ;;  %v2709_v0 = vmul.f32 -1.442695, %v5698_v11 }
 0x23d   : > { %v3263_v55 = vpop.eup %3262  ;;  %3282 = vrcp.f32 %v1100_v19  ;;  %2830 = vst [vmem:[%s5100_s7 + $0x118] sm:$0xff] %v2536_v4  ;;  %v2535_v16 = vsel %vm323_vm0, %v5092_v51, %v2456_v2  ;;  %v2042_v56 = vadd.f32 1.0, %v3261_v59  ;;  %v5695_v51 = vld [vmem:[#allocation51_spill] sm:$0xff] }
 0x23e   : > { %v3265_v12 = vpop.eup %3264  ;;  %3284 = vpow2.f32 %v2770_v1  ;;  %2829 = vst [vmem:[%s5100_s7 + $0x110] sm:$0xff] %v2535_v16  ;;  %v2695_v7 = vmul.f32 -1.442695, %v5695_v51  ;;  %v2043_v41 = vadd.f32 1.0, %v3263_v55  ;;  %v2712_v1 = vmul.f32 -1.442695, %v5700_v50 }
 0x23f   : > { %v3267_v54 = vpop.eup %3266  ;;  %3286 = vrcp.f32 %v2041_v26  ;;  %v1474_v60 = vpop.permute.xlu1 %1473  ;;  %v5701_v55 = vld [vmem:[#allocation55_spill] sm:$0xff] }
 0x240   : > { %v3269_v8 = vpop.eup %3268  ;;  %3288 = vrcp.f32 %v1101_v43  ;;  %v1472_v38 = vpop.permute.xlu0 %1471  ;;  %v2755_v43 = vmul.f32 -1.442695, %v5701_v55  ;;  %v5710_v55 = vld [vmem:[#allocation87_spill] sm:$0xff] }
 0x241   : > { %v3271_v57 = vpop.eup %3270  ;;  %v1564_v52 = vsel %vm323_vm0, %v3269_v8, %v1474_v60  ;;  %3290 = vrcp.f32 %v1102_v37  ;;  %v1563_v61 = vsel %vm323_vm0, %v3265_v12, %v1472_v38  ;;  %v5702_v12 = vld [vmem:[#allocation56_spill] sm:$0xff] }
 0x242   : > { %v3273_v33 = vpop.eup %3272  ;;  %1596 = vst [vmem:[%s5100_s7 + $0x48] sm:$0xff] %v1564_v52  ;;  %3292 = vrcp.f32 %v2042_v56  ;;  %1595 = vst [vmem:[%s5100_s7 + $0x40] sm:$0xff] %v1563_v61  ;;  %v2057_v29 = vadd.f32 1.0, %v3271_v57  ;;  %v2757_v37 = vmul.f32 -1.442695, %v5702_v12 }
 0x243   : > { %v3275_v25 = vpop.eup %3274  ;;  %3294 = vpow2.f32 %v2693_v46  ;;  %v1478_v27 = vpop.permute.xlu1 %1477  ;;  %v2059_v30 = vadd.f32 1.0, %v3273_v33 }
 0x244   : > { %v3277_v23 = vpop.eup %3276  ;;  %3296 = vpow2.f32 %v2694_v18  ;;  %v1476_v20 = vpop.permute.xlu0 %1475  ;;  %v2044_v6 = vadd.f32 1.0, %v3275_v25 }
 0x245   : > { %v3279_v24 = vpop.eup %3278  ;;  %v1566_v3 = vsel %vm323_vm0, %v3277_v23, %v1478_v27  ;;  %3298 = vpow2.f32 %v2695_v7  ;;  %v1565_v5 = vsel %vm323_vm0, %v3267_v54, %v1476_v20  ;;  %v5703_v54 = vld [vmem:[#allocation70_spill] sm:$0xff]  ;;  %v5704_v7 = vld [vmem:[#allocation71_spill] sm:$0xff] }
 0x246   : > { %1598 = vst [vmem:[%s5100_s7 + $0x68] sm:$0xff] %v1566_v3  ;;  %v3281_v40 = vpop.eup %3280  ;;  %3300 = vrcp.f32 %v2043_v41  ;;  %1597 = vst [vmem:[%s5100_s7 + $0x60] sm:$0xff] %v1565_v5  ;;  %v2058_v22 = vadd.f32 1.0, %v3279_v24  ;;  %v2756_v56 = vmul.f32 -1.442695, %v5703_v54  ;;  %v5705_v24 = vld [vmem:[#allocation78_spill] sm:$0xff] }
 0x247   : > { %v3283_v9 = vpop.eup %3282  ;;  %3302 = vpow2.f32 %v2696_v10  ;;  %v1506_v53 = vpop.permute.xlu1 %1505  ;;  %v2758_v61 = vmul.f32 -1.442695, %v5704_v7 }
 0x248   : > { %v3285_v15 = vpop.eup %3284  ;;  %3304 = vrcp.f32 %v2057_v29  ;;  %v1580_v58 = vsel %vm323_vm0, %v3283_v9, %v1506_v53  ;;  %v1504_v39 = vpop.permute.xlu0 %1503  ;;  %v2771_v29 = vmul.f32 -1.442695, %v5705_v24  ;;  %v5713_v24 = vld [vmem:[#allocation6_spill] sm:$0xff] }
 0x249   : > { %v3287_v42 = vpop.eup %3286  ;;  %3306 = vrcp.f32 %v2044_v6  ;;  %1612 = vst [vmem:[%s5100_s7 + $0x148] sm:$0xff] %v1580_v58  ;;  %v1579_v13 = vsel %vm323_vm0, %v3281_v40, %v1504_v39  ;;  %v2060_v35 = vadd.f32 1.0, %v3285_v15  ;;  %v5706_v6 = vld [vmem:[#allocation79_spill] sm:$0xff]  ;;  %v5708_v15 = vld [vmem:[#allocation16_spill] sm:$0xff] }
 0x24a   : > { %v3289_v17 = vpop.eup %3288  ;;  %3308 = vrcp.f32 %v2059_v30  ;;  %1611 = vst [vmem:[%s5100_s7 + $0x140] sm:$0xff] %v1579_v13  ;;  %v2773_v5 = vmul.f32 -1.442695, %v5706_v6  ;;  %v5707_v30 = vld [vmem:[#allocation80_spill] sm:$0xff]  ;;  %v2772_v63 = vmul.f32 -1.442695, %v5708_v15 }
 0x24b   : > { %v3291_v19 = vpop.eup %3290  ;;  %3310 = vrcp.f32 %v2058_v22  ;;  %v1510_v31 = vpop.permute.xlu1 %1509  ;;  %v2701_v9 = vmul.f32 -1.442695, %v5707_v30  ;;  %v5714_v6 = vld [vmem:[#allocation93_spill] sm:$0xff] }
 0x24c   : > { %v3293_v62 = vpop.eup %3292  ;;  %3312 = vpow2.f32 %v2710_v14  ;;  %v1582_v59 = vsel %vm323_vm0, %v3291_v19, %v1510_v31  ;;  %v1508_v26 = vpop.permute.xlu0 %1507 }
 0x24d   : > { %v3295_v44 = vpop.eup %3294  ;;  %3314 = vpow2.f32 %v2709_v0  ;;  %1614 = vst [vmem:[%s5100_s7 + $0x168] sm:$0xff] %v1582_v59  ;;  %v1581_v4 = vsel %vm323_vm0, %v3289_v17, %v1508_v26 }
 0x24e   : > { %v3297_v2 = vpop.eup %3296  ;;  %3316 = vpow2.f32 %v2711_v45  ;;  %1613 = vst [vmem:[%s5100_s7 + $0x160] sm:$0xff] %v1581_v4  ;;  %v1087_v46 = vadd.f32 1.0, %v3295_v44 }
 0x24f   : > { %v3299_v16 = vpop.eup %3298  ;;  %3318 = vrcp.f32 %v2060_v35  ;;  %v2430_v8 = vpop.permute.xlu1 %2429  ;;  %v1088_v18 = vadd.f32 1.0, %v3297_v2  ;;  %v5709_v35 = vld [vmem:[#allocation18_spill] sm:$0xff] }
 0x250   : > { %v3301_v48 = vpop.eup %3300  ;;  %3320 = vpow2.f32 %v2712_v1  ;;  %v2522_v60 = vsel %vm323_vm0, %v3293_v62, %v2430_v8  ;;  %v2428_v57 = vpop.permute.xlu0 %2427  ;;  %v1089_v33 = vadd.f32 1.0, %v3299_v16  ;;  %v2774_v31 = vmul.f32 -1.442695, %v5709_v35 }
 0x251   : > { %v3303_v47 = vpop.eup %3302  ;;  %3322 = vpow2.f32 %v2755_v43  ;;  %2816 = vst [vmem:[%s5100_s7 + $0x38] sm:$0xff] %v2522_v60  ;;  %v2521_v52 = vsel %vm323_vm0, %v3287_v42, %v2428_v57  ;;  %v2702_v43 = vmul.f32 -1.442695, %v5710_v55 }
 0x252   : > { %v3305_v38 = vpop.eup %3304  ;;  %3324 = vpow2.f32 %v2757_v37  ;;  %2815 = vst [vmem:[%s5100_s7 + $0x30] sm:$0xff] %v2521_v52  ;;  %v1090_v23 = vadd.f32 1.0, %v3303_v47  ;;  %v5712_v47 = vld [vmem:[#allocation33_spill] sm:$0xff] }
 0x253   : > { %v3307_v51 = vpop.eup %3306  ;;  %3326 = vpow2.f32 %v2756_v56  ;;  %v2434_v25 = vpop.permute.xlu1 %2433 }
 0x254   : > { %v3309_v41 = vpop.eup %3308  ;;  %3328 = vrcp.f32 %v1087_v46  ;;  %v2524_v21 = vsel %vm323_vm0, %v3307_v51, %v2434_v25  ;;  %v2432_v10 = vpop.permute.xlu0 %2431 }
 0x255   : > { %v3311_v27 = vpop.eup %3310  ;;  %3330 = vrcp.f32 %v1088_v18  ;;  %2818 = vst [vmem:[%s5100_s7 + $0x58] sm:$0xff] %v2524_v21  ;;  %v2523_v3 = vsel %vm323_vm0, %v3301_v48, %v2432_v10  ;;  %v5711_v48 = vld [vmem:[#allocation81_spill] sm:$0xff]  ;;  %v2764_v18 = vmul.f32 -1.442695, %v5712_v47 }
 0x256   : > { %v3313_v20 = vpop.eup %3312  ;;  %3332 = vrcp.f32 %v1089_v33  ;;  %2817 = vst [vmem:[%s5100_s7 + $0x50] sm:$0xff] %v2523_v3  ;;  %v2763_v46 = vmul.f32 -1.442695, %v5711_v48  ;;  %v2716_v48 = vmul.f32 -1.442695, %v4902_v34  ;;  %v5718_v47 = vld [vmem:[#allocation65_spill] sm:$0xff] }
 0x257   : > { %v3315_v40 = vpop.eup %3314  ;;  %3334 = vpow2.f32 %v2758_v61  ;;  %v2462_v22 = vpop.permute.xlu1 %2461  ;;  %v1104_v42 = vadd.f32 1.0, %v3313_v20 }
 0x258   : > { %v3317_v53 = vpop.eup %3316  ;;  %3336 = vrcp.f32 %v1090_v23  ;;  %v2538_v14 = vsel %vm323_vm0, %v3311_v27, %v2462_v22  ;;  %v2460_v58 = vpop.permute.xlu0 %2459  ;;  %v1103_v13 = vadd.f32 1.0, %v3315_v40 }
 0x259   : > { %v3319_v39 = vpop.eup %3318  ;;  %3338 = vpow2.f32 %v2771_v29  ;;  %2832 = vst [vmem:[%s5100_s7 + $0x138] sm:$0xff] %v2538_v14  ;;  %v2537_v11 = vsel %vm323_vm0, %v3305_v38, %v2460_v58  ;;  %v1105_v32 = vadd.f32 1.0, %v3317_v53  ;;  %v2697_v29 = vmul.f32 -1.442695, %v5713_v24  ;;  %v5715_v58 = vld [vmem:[#allocation7_spill] sm:$0xff] }
 0x25a   : > { %v3321_v0 = vpop.eup %3320  ;;  %3340 = vpow2.f32 %v2773_v5  ;;  %2831 = vst [vmem:[%s5100_s7 + $0x130] sm:$0xff] %v2537_v11  ;;  %v2698_v5 = vmul.f32 -1.442695, %v5714_v6  ;;  %v5721_v6 = vld [vmem:[#allocation85_spill] sm:$0xff] }
 0x25b   : > { %v3323_v17 = vpop.eup %3322  ;;  %3342 = vpow2.f32 %v2701_v9  ;;  %v2466_v45 = vpop.permute.xlu1 %2465  ;;  %v1106_v59 = vadd.f32 1.0, %v3321_v0  ;;  %v5716_v0 = vld [vmem:[#allocation94_spill] sm:$0xff] }
 0x25c   : > { %v3325_v19 = vpop.eup %3324  ;;  %3344 = vpow2.f32 %v2772_v63  ;;  %v2540_v62 = vsel %vm323_vm0, %v3319_v39, %v2466_v45  ;;  %v2464_v50 = vpop.permute.xlu0 %2463  ;;  %v2045_v2 = vadd.f32 1.0, %v3323_v17  ;;  %v2699_v39 = vmul.f32 -1.442695, %v5715_v58 }
 0x25d   : > { %v3327_v1 = vpop.eup %3326  ;;  %3346 = vrcp.f32 %v1104_v42  ;;  %2834 = vst [vmem:[%s5100_s7 + $0x158] sm:$0xff] %v2540_v62  ;;  %v2539_v26 = vsel %vm323_vm0, %v3309_v41, %v2464_v50  ;;  %v2047_v51 = vadd.f32 1.0, %v3325_v19 }
 0x25e   : > { %v3329_v44 = vpop.eup %3328  ;;  %3348 = vrcp.f32 %v1103_v13  ;;  %2833 = vst [vmem:[%s5100_s7 + $0x150] sm:$0xff] %v2539_v26  ;;  %v2046_v16 = vadd.f32 1.0, %v3327_v1  ;;  %v2700_v13 = vmul.f32 -1.442695, %v5716_v0  ;;  %v5723_v0 = vld [vmem:[#allocation44_spill] sm:$0xff] }
 0x25f   : > { %v3331_v4 = vpop.eup %3330  ;;  %3350 = vrcp.f32 %v1105_v32 }
 0x260   : > { %v1482_v12 = vpop.permute.xlu1 %1481  ;;  %v3333_v37 = vpop.eup %3332  ;;  %3352 = vpow2.f32 %v2774_v31 }
 0x261   : > { %v1568_v54 = vsel %vm323_vm0, %v3331_v4, %v1482_v12  ;;  %v1480_v56 = vpop.permute.xlu0 %1479  ;;  %v3335_v8 = vpop.eup %3334  ;;  %3354 = vrcp.f32 %v1106_v59  ;;  %v5717_v4 = vld [vmem:[#allocation8_spill] sm:$0xff] }
 0x262   : > { %1600 = vst [vmem:[%s5100_s7 + $0x88] sm:$0xff] %v1568_v54  ;;  %v1567_v60 = vsel %vm323_vm0, %v3329_v44, %v1480_v56  ;;  %v3337_v57 = vpop.eup %3336  ;;  %3356 = vpow2.f32 %v2702_v43  ;;  %v2048_v41 = vadd.f32 1.0, %v3335_v8  ;;  %v2714_v44 = vmul.f32 -1.442695, %v4899_v28 }
 0x263   : > { %1599 = vst [vmem:[%s5100_s7 + $0x80] sm:$0xff] %v1567_v60  ;;  %v3339_v52 = vpop.eup %3338  ;;  %3358 = vrcp.f32 %v2045_v2  ;;  %v2713_v2 = vmul.f32 -1.442695, %v5717_v4  ;;  %v2778_v4 = vmul.f32 -1.442695, %v4959_v49  ;;  %v5725_v49 = vld [vmem:[#allocation75_spill] sm:$0xff] }
 0x264   : > { %v1486_v38 = vpop.permute.xlu1 %1485  ;;  %v3341_v33 = vpop.eup %3340  ;;  %3360 = vrcp.f32 %v2046_v16  ;;  %v2061_v10 = vadd.f32 1.0, %v3339_v52 }
 0x265   : > { %v1570_v7 = vsel %vm323_vm0, %v3337_v57, %v1486_v38  ;;  %v1484_v61 = vpop.permute.xlu0 %1483  ;;  %v3343_v25 = vpop.eup %3342  ;;  %3362 = vpow2.f32 %v2763_v46  ;;  %v2063_v63 = vadd.f32 1.0, %v3341_v33  ;;  %v5719_v33 = vld [vmem:[#allocation3_spill] sm:$0xff] }
 0x266   : > { %1602 = vst [vmem:[%s5100_s7 + $0xa8] sm:$0xff] %v1570_v7  ;;  %v1569_v23 = vsel %vm323_vm0, %v3333_v37, %v1484_v61  ;;  %v3345_v21 = vpop.eup %3344  ;;  %3364 = vpow2.f32 %v2764_v18  ;;  %v1095_v62 = vadd.f32 1.0, %v3343_v25  ;;  %v2715_v18 = vmul.f32 -1.442695, %v5718_v47  ;;  %v5720_v25 = vld [vmem:[#allocation84_spill] sm:$0xff] }
 0x267   : > { %1601 = vst [vmem:[%s5100_s7 + $0xa0] sm:$0xff] %v1569_v23  ;;  %v3347_v27 = vpop.eup %3346  ;;  %3366 = vrcp.f32 %v2047_v51  ;;  %v2062_v22 = vadd.f32 1.0, %v3345_v21  ;;  %v2760_v51 = vmul.f32 -1.442695, %v5719_v33 }
 0x268   : > { %v1514_v3 = vpop.permute.xlu1 %1513  ;;  %v3349_v20 = vpop.eup %3348  ;;  %3368 = vrcp.f32 %v2048_v41  ;;  %v2759_v41 = vmul.f32 -1.442695, %v5720_v25 }
 0x269   : > { %v1584_v40 = vsel %vm323_vm0, %v3347_v27, %v1514_v3  ;;  %v1512_v30 = vpop.permute.xlu0 %1511  ;;  %v3351_v9 = vpop.eup %3350  ;;  %3370 = vrcp.f32 %v2061_v10 }
 0x26a   : > { %1616 = vst [vmem:[%s5100_s7 + $0x188] sm:$0xff] %v1584_v40  ;;  %v1583_v53 = vsel %vm323_vm0, %v3349_v20, %v1512_v30  ;;  %v3353_v15 = vpop.eup %3352  ;;  %3372 = vpow2.f32 %v2697_v29 }
 0x26b   : > { %1615 = vst [vmem:[%s5100_s7 + $0x180] sm:$0xff] %v1583_v53  ;;  %v3355_v14 = vpop.eup %3354  ;;  %3374 = vpow2.f32 %v2698_v5  ;;  %v2064_v19 = vadd.f32 1.0, %v3353_v15  ;;  %v2761_v5 = vmul.f32 -1.442695, %v5721_v6 }
 0x26c   : > { %v1518_v42 = vpop.permute.xlu1 %1517  ;;  %v3357_v11 = vpop.eup %3356  ;;  %3376 = vrcp.f32 %v2062_v22 }
 0x26d   : > { %v1586_v17 = vsel %vm323_vm0, %v3355_v14, %v1518_v42  ;;  %v1516_v32 = vpop.permute.xlu0 %1515  ;;  %v3359_v45 = vpop.eup %3358  ;;  %3378 = vrcp.f32 %v2063_v63  ;;  %v1096_v1 = vadd.f32 1.0, %v3357_v11 }
 0x26e   : > { %1618 = vst [vmem:[%s5100_s7 + $0x1a8] sm:$0xff] %v1586_v17  ;;  %v1585_v35 = vsel %vm323_vm0, %v3351_v9, %v1516_v32  ;;  %v3361_v31 = vpop.eup %3360  ;;  %3380 = vpow2.f32 %v2699_v39  ;;  %v5722_v9 = vld [vmem:[#allocation2_spill] sm:$0xff] }
 0x26f   : > { %1617 = vst [vmem:[%s5100_s7 + $0x1a0] sm:$0xff] %v1585_v35  ;;  %v3363_v50 = vpop.eup %3362  ;;  %3382 = vpow2.f32 %v2700_v13  ;;  %v2762_v22 = vmul.f32 -1.442695, %v5722_v9  ;;  %v2775_v13 = vmul.f32 -1.442695, %v5723_v0 }
 0x270   : > { %v2438_v59 = vpop.permute.xlu1 %2437  ;;  %v3365_v26 = vpop.eup %3364  ;;  %3384 = vrcp.f32 %v2064_v19  ;;  %v2053_v16 = vadd.f32 1.0, %v3363_v50 }
 0x271   : > { %v2526_v55 = vsel %vm323_vm0, %v3361_v31, %v2438_v59  ;;  %v2436_v43 = vpop.permute.xlu0 %2435  ;;  %v3367_v37 = vpop.eup %3366  ;;  %3386 = vrcp.f32 %v1095_v62  ;;  %v2054_v56 = vadd.f32 1.0, %v3365_v26 }
 0x272   : > { %2820 = vst [vmem:[%s5100_s7 + $0x78] sm:$0xff] %v2526_v55  ;;  %v2525_v12 = vsel %vm323_vm0, %v3359_v45, %v2436_v43  ;;  %v3369_v54 = vpop.eup %3368  ;;  %3388 = vrcp.f32 %v1096_v1  ;;  %v2776_v45 = vmul.f32 -1.442695, %v4956_v36 }
 0x273   : > { %2819 = vst [vmem:[%s5100_s7 + $0x70] sm:$0xff] %v2525_v12  ;;  %v3371_v28 = vpop.eup %3370  ;;  %3390 = vpow2.f32 %v2714_v44  ;;  %v5724_v44 = vld [vmem:[#allocation9_spill] sm:$0xff] }
 0x274   : > { %v2442_v8 = vpop.permute.xlu1 %2441  ;;  %v3373_v57 = vpop.eup %3372  ;;  %3392 = vpow2.f32 %v2713_v2  ;;  %v2777_v55 = vmul.f32 -1.442695, %v5724_v44 }
 0x275   : > { %v2528_v46 = vsel %vm323_vm0, %v3369_v54, %v2442_v8  ;;  %v2440_v60 = vpop.permute.xlu0 %2439  ;;  %v3375_v38 = vpop.eup %3374  ;;  %3394 = vrcp.f32 %v2053_v16  ;;  %v1091_v3 = vadd.f32 1.0, %v3373_v57 }
 0x276   : > { %2822 = vst [vmem:[%s5100_s7 + $0x98] sm:$0xff] %v2528_v46  ;;  %v2527_v52 = vsel %vm323_vm0, %v3367_v37, %v2440_v60  ;;  %v3377_v7 = vpop.eup %3376  ;;  %3396 = vrcp.f32 %v2054_v56  ;;  %v1092_v27 = vadd.f32 1.0, %v3375_v38  ;;  %v2780_v60 = vmul.f32 -1.442695, %v5725_v49 }
 0x277   : > { %2821 = vst [vmem:[%s5100_s7 + $0x90] sm:$0xff] %v2527_v52  ;;  %v3379_v61 = vpop.eup %3378  ;;  %3398 = vpow2.f32 %v2716_v48  ;;  %v5726_v52 = vld [vmem:[#allocation37_spill] sm:$0xff] }
 0x278   : > { %v2470_v34 = vpop.permute.xlu1 %2469  ;;  %v3381_v10 = vpop.eup %3380  ;;  %3400 = vpow2.f32 %v2715_v18  ;;  %v2779_v38 = vmul.f32 -1.442695, %v5726_v52 }
 0x279   : > { %v2542_v23 = vsel %vm323_vm0, %v3377_v7, %v2470_v34  ;;  %v2468_v21 = vpop.permute.xlu0 %2467  ;;  %v3383_v29 = vpop.eup %3382  ;;  %3402 = vpow2.f32 %v2760_v51  ;;  %v1093_v42 = vadd.f32 1.0, %v3381_v10 }
 0x27a   : > { %2836 = vst [vmem:[%s5100_s7 + $0x178] sm:$0xff] %v2542_v23  ;;  %v2541_v24 = vsel %vm323_vm0, %v3371_v28, %v2468_v21  ;;  %v3385_v20 = vpop.eup %3384  ;;  %3404 = vpow2.f32 %v2759_v41  ;;  %v1094_v14 = vadd.f32 1.0, %v3383_v29 }
 0x27b   : > { %2835 = vst [vmem:[%s5100_s7 + $0x170] sm:$0xff] %v2541_v24  ;;  %v3387_v30 = vpop.eup %3386  ;;  %3406 = vrcp.f32 %v1092_v27 }
 0x27c   : > { %v2474_v40 = vpop.permute.xlu1 %2473  ;;  %v3389_v63 = vpop.eup %3388  ;;  %3408 = vrcp.f32 %v1091_v3 }
 0x27d   : > { %v2544_v53 = vsel %vm323_vm0, %v3385_v20, %v2474_v40  ;;  %v2472_v15 = vpop.permute.xlu0 %2471  ;;  %v3391_v39 = vpop.eup %3390  ;;  %3410 = vpow2.f32 %v2761_v5 }
 0x27e   : > { %2838 = vst [vmem:[%s5100_s7 + $0x198] sm:$0xff] %v2544_v53  ;;  %v2543_v58 = vsel %vm323_vm0, %v3379_v61, %v2472_v15  ;;  %v3393_v11 = vpop.eup %3392  ;;  %3412 = vpow2.f32 %v2762_v22  ;;  %v1108_v62 = vadd.f32 1.0, %v3391_v39 }
 0x27f   : > { %2837 = vst [vmem:[%s5100_s7 + $0x190] sm:$0xff] %v2543_v58  ;;  %v3395_v32 = vpop.eup %3394  ;;  %3414 = vrcp.f32 %v1094_v14  ;;  %v1107_v59 = vadd.f32 1.0, %v3393_v11 }
 0x280   : > { %v1498_v17 = vpop.permute.xlu1 %1497  ;;  %v3397_v31 = vpop.eup %3396  ;;  %3416 = vrcp.f32 %v1093_v42 }
 0x281   : > { %v1576_v19 = vsel %vm323_vm0, %v3389_v63, %v1498_v17  ;;  %v1496_v35 = vpop.permute.xlu0 %1495  ;;  %v3399_v1 = vpop.eup %3398  ;;  %3418 = vpow2.f32 %v2775_v13 }
 0x282   : > { %1608 = vst [vmem:[%s5100_s7 + $0x108] sm:$0xff] %v1576_v19  ;;  %v1575_v50 = vsel %vm323_vm0, %v3387_v30, %v1496_v35  ;;  %v3401_v26 = vpop.eup %3400  ;;  %3420 = vpow2.f32 %v2776_v45  ;;  %v1110_v37 = vadd.f32 1.0, %v3399_v1 }
 0x283   : > { %1607 = vst [vmem:[%s5100_s7 + $0x100] sm:$0xff] %v1575_v50  ;;  %v3403_v43 = vpop.eup %3402  ;;  %3422 = vrcp.f32 %v1108_v62  ;;  %v1109_v56 = vadd.f32 1.0, %v3401_v26 }
 0x284   : > { %v2454_v36 = vpop.permute.xlu1 %2453  ;;  %v3405_v54 = vpop.eup %3404  ;;  %3424 = vrcp.f32 %v1107_v59  ;;  %v2050_v28 = vadd.f32 1.0, %v3403_v43 }
 0x285   : > { %v2534_v2 = vsel %vm323_vm0, %v3397_v31, %v2454_v36  ;;  %v2452_v12 = vpop.permute.xlu0 %2451  ;;  %v3407_v8 = vpop.eup %3406  ;;  %3426 = vpow2.f32 %v2777_v55  ;;  %v2049_v7 = vadd.f32 1.0, %v3405_v54 }
 0x286   : > { %2828 = vst [vmem:[%s5100_s7 + $0xf8] sm:$0xff] %v2534_v2  ;;  %v2533_v16 = vsel %vm323_vm0, %v3395_v32, %v2452_v12  ;;  %v3409_v46 = vpop.eup %3408  ;;  %3428 = vpow2.f32 %v2778_v4 }
 0x287   : > { %2827 = vst [vmem:[%s5100_s7 + $0xf0] sm:$0xff] %v2533_v16  ;;  %v3411_v18 = vpop.eup %3410  ;;  %3430 = vrcp.f32 %v1110_v37 }
 0x288   : > { %v1490_v48 = vpop.permute.xlu1 %1489  ;;  %v3413_v51 = vpop.eup %3412  ;;  %3432 = vrcp.f32 %v1109_v56  ;;  %v2051_v29 = vadd.f32 1.0, %v3411_v18 }
 0x289   : > { %v1572_v57 = vsel %vm323_vm0, %v3407_v8, %v1490_v48  ;;  %v1488_v47 = vpop.permute.xlu0 %1487  ;;  %v3415_v34 = vpop.eup %3414  ;;  %3434 = vrcp.f32 %v2050_v28  ;;  %v2052_v10 = vadd.f32 1.0, %v3413_v51 }
 0x28a   : > { %1604 = vst [vmem:[%s5100_s7 + $0xc8] sm:$0xff] %v1572_v57  ;;  %v1571_v33 = vsel %vm323_vm0, %v3409_v46, %v1488_v47  ;;  %v3417_v25 = vpop.eup %3416  ;;  %3436 = vpow2.f32 %v2780_v60 }
 0x28b   : > { %1603 = vst [vmem:[%s5100_s7 + $0xc0] sm:$0xff] %v1571_v33  ;;  %v3419_v21 = vpop.eup %3418  ;;  %3438 = vpow2.f32 %v2779_v38 }
 0x28c   : > { %v1494_v61 = vpop.permute.xlu1 %1493  ;;  %v3421_v24 = vpop.eup %3420  ;;  %3440 = vrcp.f32 %v2049_v7  ;;  %v2065_v15 = vadd.f32 1.0, %v3419_v21 }
 0x28d   : > { %v1574_v41 = vsel %vm323_vm0, %v3415_v34, %v1494_v61  ;;  %v1492_v23 = vpop.permute.xlu0 %1491  ;;  %v3423_v3 = vpop.eup %3422  ;;  %3442 = vrcp.f32 %v2052_v10  ;;  %v2066_v9 = vadd.f32 1.0, %v3421_v24 }
 0x28e   : > { %1606 = vst [vmem:[%s5100_s7 + $0xe8] sm:$0xff] %v1574_v41  ;;  %v1573_v27 = vsel %vm323_vm0, %v3417_v25, %v1492_v23  ;;  %v3425_v6 = vpop.eup %3424  ;;  %3444 = vrcp.f32 %v2051_v29 }
 0x28f   : > { %1605 = vst [vmem:[%s5100_s7 + $0xe0] sm:$0xff] %v1573_v27  ;;  %v3427_v30 = vpop.eup %3426  ;;  %3446 = vrcp.f32 %v2066_v9 }
 0x290   : > { %v1522_v20 = vpop.permute.xlu1 %1521  ;;  %v3429_v53 = vpop.eup %3428  ;;  %v2067_v32 = vadd.f32 1.0, %v3427_v30  ;;  %3448 = vrcp.f32 %v2065_v15 }
 0x291   : > { %v1588_v5 = vsel %vm323_vm0, %v3423_v3, %v1522_v20  ;;  %v1520_v40 = vpop.permute.xlu0 %1519  ;;  %v3431_v63 = vpop.eup %3430  ;;  %v2068_v0 = vadd.f32 1.0, %v3429_v53 }
 0x292   : > { %1620 = vst [vmem:[%s5100_s7 + $0x1c8] sm:$0xff] %v1588_v5  ;;  %v1587_v22 = vsel %vm323_vm0, %v3425_v6, %v1520_v40  ;;  %v3433_v58 = vpop.eup %3432 }
 0x293   : > { %1619 = vst [vmem:[%s5100_s7 + $0x1c0] sm:$0xff] %v1587_v22  ;;  %v3435_v11 = vpop.eup %3434  ;;  %3450 = vrcp.f32 %v2068_v0 }
 0x294   : > { %v1526_v14 = vpop.permute.xlu1 %1525  ;;  %v3437_v17 = vpop.eup %3436  ;;  %3452 = vrcp.f32 %v2067_v32 }
 0x295   : > { %v1590_v39 = vsel %vm323_vm0, %v3431_v63, %v1526_v14  ;;  %v1524_v42 = vpop.permute.xlu0 %1523  ;;  %v3439_v45 = vpop.eup %3438  ;;  %v2070_v50 = vadd.f32 1.0, %v3437_v17 }
 0x296   : > { %1622 = vst [vmem:[%s5100_s7 + $0x1e8] sm:$0xff] %v1590_v39  ;;  %v1589_v13 = vsel %vm323_vm0, %v3433_v58, %v1524_v42  ;;  %v3441_v35 = vpop.eup %3440  ;;  %v2069_v59 = vadd.f32 1.0, %v3439_v45 }
 0x297   : > { %1621 = vst [vmem:[%s5100_s7 + $0x1e0] sm:$0xff] %v1589_v13  ;;  %v3443_v26 = vpop.eup %3442  ;;  %3454 = vrcp.f32 %v2070_v50 }
 0x298   : > { %v2446_v19 = vpop.permute.xlu1 %2445  ;;  %v3445_v55 = vpop.eup %3444  ;;  %3456 = vrcp.f32 %v2069_v59 }
 0x299   : > { %v2530_v31 = vsel %vm323_vm0, %v3435_v11, %v2446_v19  ;;  %v2444_v62 = vpop.permute.xlu0 %2443  ;;  %v3447_v2 = vpop.eup %3446 }
 0x29a   : > { %2824 = vst [vmem:[%s5100_s7 + $0xb8] sm:$0xff] %v2530_v31  ;;  %v2529_v1 = vsel %vm323_vm0, %v3441_v35, %v2444_v62  ;;  %v3449_v37 = vpop.eup %3448 }
 0x29b   : > { %2823 = vst [vmem:[%s5100_s7 + $0xb0] sm:$0xff] %v2529_v1 }
 0x29c   : > { %v2450_v44 = vpop.permute.xlu1 %2449 }
 0x29d   : > { %v2532_v36 = vsel %vm323_vm0, %v3443_v26, %v2450_v44  ;;  %v2448_v43 = vpop.permute.xlu0 %2447  ;;  %v3451_v8 = vpop.eup %3450 }
 0x29e   : > { %2826 = vst [vmem:[%s5100_s7 + $0xd8] sm:$0xff] %v2532_v36  ;;  %v2531_v4 = vsel %vm323_vm0, %v3445_v55, %v2448_v43  ;;  %v3453_v48 = vpop.eup %3452 }
 0x29f   : > { %2825 = vst [vmem:[%s5100_s7 + $0xd0] sm:$0xff] %v2531_v4 }
 0x2a0   : > { %v2478_v12 = vpop.permute.xlu1 %2477 }
 0x2a1   : > { %v2546_v16 = vsel %vm323_vm0, %v3447_v2, %v2478_v12  ;;  %v2476_v54 = vpop.permute.xlu0 %2475  ;;  %v3455_v57 = vpop.eup %3454 }
 0x2a2   : > { %2840 = vst [vmem:[%s5100_s7 + $0x1b8] sm:$0xff] %v2546_v16  ;;  %v2545_v56 = vsel %vm323_vm0, %v3449_v37, %v2476_v54  ;;  %v3457_v18 = vpop.eup %3456 }
 0x2a3   : > { %2839 = vst [vmem:[%s5100_s7 + $0x1b0] sm:$0xff] %v2545_v56 }
 0x2a4   : > { %v2482_v28 = vpop.permute.xlu1 %2481 }
 0x2a5   : > { %v2548_v46 = vsel %vm323_vm0, %v3451_v8, %v2482_v28  ;;  %v2480_v49 = vpop.permute.xlu0 %2479 }
 0x2a6   : > { %2842 = vst [vmem:[%s5100_s7 + $0x1d8] sm:$0xff] %v2548_v46  ;;  %v2547_v60 = vsel %vm323_vm0, %v3453_v48, %v2480_v49 }
 0x2a7   : > { %2841 = vst [vmem:[%s5100_s7 + $0x1d0] sm:$0xff] %v2547_v60 }
 0x2a8   : > { %v2486_v47 = vpop.permute.xlu1 %2485 }
 0x2a9   : > { %v2550_v52 = vsel %vm323_vm0, %v3455_v57, %v2486_v47  ;;  %v2484_v38 = vpop.permute.xlu0 %2483 }
 0x2aa   : > { %2844 = vst [vmem:[%s5100_s7 + $0x1f8] sm:$0xff] %v2550_v52  ;;  %v2549_v33 = vsel %vm323_vm0, %v3457_v18, %v2484_v38 }
 0x2ab   : > { %2843 = vst [vmem:[%s5100_s7 + $0x1f0] sm:$0xff] %v2549_v33 }
 0x2ac PF: > { %s13_s12 = sadd.s32 1, %s3465_s12  }
 0x2ad   : > { %p10_p4 = scmp.ge.s32.totalorder %s13_s12, 4  }
 0x2af   :  { %12 = sbr.rel (!%p10_p4) target bundleno = 1 (0x1), region = 63 }

</bundles_post_ra>
